<compile_context>
chip_gen: v7x
topology: tpu7x:2x2x1
jax: 0.10.0
libtpu: 0.0.40
codegen_flags: <defaults>
</compile_context>

<pallas_src>
from functools import partial

import jax
import jax.numpy as jnp
from jax.experimental import pallas as pl
from jax.experimental.pallas import tpu as pltpu


def cross_attn_kernel(x_ref, y_ref, gamma_ref, beta_ref,
                      wq_ref, wk_ref, wv_ref, wo_ref,
                      bq_ref, bk_ref, bv_ref, bo_ref,
                      out_ref, attn_ref, ctx_ref, *, num_heads):
    Bt, Lq, D = x_ref.shape
    Lk = y_ref.shape[1]
    Dh = D // num_heads
    cdt = wq_ref.dtype                                   # matmul operand dtype (f32 or bf16)

    # ---- residual + flatten batch tile (leading-axis merge: lane dim unchanged, free) ----
    x_res = x_ref[...].reshape(Bt * Lq, D).astype(jnp.float32)   # (Bt*Lq, D)
    y2 = y_ref[...].reshape(Bt * Lk, D).astype(cdt)              # (Bt*Lk, D)

    # ---- Pre-LN (PyTorch LayerNorm: biased variance, eps=1e-5), stats in f32 ----
    mean = jnp.mean(x_res, axis=-1, keepdims=True)
    var = jnp.mean((x_res - mean) ** 2, axis=-1, keepdims=True)
    xn = ((x_res - mean) * jax.lax.rsqrt(var + 1e-5)
          * gamma_ref[0] + beta_ref[0]).astype(cdt)              # (Bt*Lq, D)

    scale = 1.0 / jnp.sqrt(jnp.float32(Dh))
    attn_acc = jnp.zeros((Bt, Lq, Lk), jnp.float32)

    # ---- per-head attention (short static loop); weights are head-major so there are no
    #      lane-offset slices of activations anywhere in the loop ----
    for h in range(num_heads):
        qh = (jnp.dot(xn, wq_ref[h], preferred_element_type=jnp.float32)
              + bq_ref[h]).reshape(Bt, Lq, Dh)                   # (Bt, Lq, Dh) f32
        kh = (jnp.dot(y2, wk_ref[h], preferred_element_type=jnp.float32)
              + bk_ref[h]).reshape(Bt, Lk, Dh)
        vh = (jnp.dot(y2, wv_ref[h], preferred_element_type=jnp.float32)
              + bv_ref[h]).reshape(Bt, Lk, Dh)

        s = jnp.einsum('bqd,bkd->bqk', (qh * scale).astype(cdt), kh.astype(cdt),
                       preferred_element_type=jnp.float32)       # (Bt, Lq, Lk)
        s = s - jnp.max(s, axis=-1, keepdims=True)
        p = jnp.exp(s)
        p = p * pl.reciprocal(jnp.sum(p, axis=-1, keepdims=True), approx=False)
        attn_acc = attn_acc + p

        ctx_h = jnp.einsum('bqk,bkd->bqd', p.astype(cdt), vh.astype(cdt),
                           preferred_element_type=jnp.float32)   # (Bt, Lq, Dh)
        # head column of the fused out-projection input (lane-aligned when Dh % 128 == 0)
        ctx_ref[:, h * Dh:(h + 1) * Dh] = ctx_h.reshape(Bt * Lq, Dh)

    # ---- single fused out-projection (K = D) + residual, one lane-dense slab store ----
    out2 = (jnp.dot(ctx_ref[...].astype(cdt), wo_ref[...],
                    preferred_element_type=jnp.float32)
            + bo_ref[0] + x_res)                                 # (Bt*Lq, D) f32
    out_ref[...] = out2.reshape(Bt, Lq, D).astype(out_ref.dtype)
    attn_ref[...] = (attn_acc * (1.0 / num_heads)).astype(attn_ref.dtype)


def cross_attention_layer(x, y, params, num_heads, *, batch_tile=None,
                          compute_dtype=None, attn_dtype=jnp.float32,
                          vmem_limit_bytes=None, single_buffer_weights=True):
    B, Lq, D = x.shape
    _, Lk, _ = y.shape
    H = num_heads
    assert D % H == 0
    Dh = D // H

    if batch_tile is None:
        # >= 2 grid steps whenever possible: enables DMA/compute pipelining and lets the
        # "parallel" batch axis be split across v7x's two TensorCores.
        batch_tile = max(1, B // 2)
        while B % batch_tile:
            batch_tile -= 1
    assert B % batch_tile == 0

    cdt = compute_dtype if compute_dtype is not None else x.dtype

    # ---- weight prep hoisted to the wrapper (traced once by XLA, not per grid step) ----
    def shard_w(w):                       # PyTorch (D_out, D_in) -> head-major (H, D_in, Dh)
        return jnp.transpose(w.T.reshape(D, H, Dh), (1, 0, 2)).astype(cdt)

    def shard_b(b):                       # (1, D) -> (H, 1, Dh), kept f32 (added post-matmul)
        return b.reshape(H, Dh)[:, None, :].astype(jnp.float32)

    wq_t, wk_t, wv_t = shard_w(params["wq"]), shard_w(params["wk"]), shard_w(params["wv"])
    wo_t = params["wo"].T.astype(cdt)                              # (D, D)
    bq, bk, bv = shard_b(params["bq"]), shard_b(params["bk"]), shard_b(params["bv"])
    bo = params["bo"].astype(jnp.float32)
    gamma = params["gamma"].astype(jnp.float32)
    beta = params["beta"].astype(jnp.float32)

    def tile3(l, d):
        return pl.BlockSpec((batch_tile, l, d), lambda b: (b, 0, 0))

    def build(single_buffer):
        def const_spec(shape):
            n = len(shape)
            if single_buffer:
                # Constant index_map -> the block never changes; don't double-buffer it.
                return pl.BlockSpec(shape, lambda b: (0,) * n, pipeline_mode=pl.Buffered(1))
            return pl.BlockSpec(shape, lambda b: (0,) * n)

        grid_spec = pltpu.PrefetchScalarGridSpec(
            num_scalar_prefetch=0,
            grid=(B // batch_tile,),
            in_specs=[
                tile3(Lq, D),               # x
                tile3(Lk, D),               # y
                const_spec((1, D)),         # gamma
                const_spec((1, D)),         # beta
                const_spec((H, D, Dh)),     # Wq^T, head-major
                const_spec((H, D, Dh)),     # Wk^T, head-major
                const_spec((H, D, Dh)),     # Wv^T, head-major
                const_spec((D, D)),         # Wo^T (fused out-projection)
                const_spec((H, 1, Dh)),     # bq per head
                const_spec((H, 1, Dh)),     # bk per head
                const_spec((H, 1, Dh)),     # bv per head
                const_spec((1, D)),         # bo
            ],
            out_specs=[
                tile3(Lq, D),               # out
                tile3(Lq, Lk),              # averaged attention weights
            ],
            # f32 context slab: input to the single fused out-projection.
            scratch_shapes=[pltpu.VMEM((batch_tile * Lq, D), jnp.float32)],
        )
        return pl.pallas_call(
            partial(cross_attn_kernel, num_heads=num_heads),
            out_shape=(
                jax.ShapeDtypeStruct((B, Lq, D), x.dtype),
                jax.ShapeDtypeStruct((B, Lq, Lk), attn_dtype),
            ),
            grid_spec=grid_spec,
            compiler_params=pltpu.CompilerParams(
                dimension_semantics=("parallel",),
                vmem_limit_bytes=vmem_limit_bytes),
        )

    args = (x, y, gamma, beta, wq_t, wk_t, wv_t, wo_t, bq, bk, bv, bo)
    try:
        return build(single_buffer_weights)(*args)
    except Exception:
        if not single_buffer_weights:
            raise
        # TODO(synk): fallback for jax builds that reject single-buffered (Buffered(1)) weights.
        return build(False)(*args)


def reference(x, y, params, num_heads):
    """Pure-JAX reference mirroring the PyTorch module (dropout=0, no masks)."""
    B, Lq, D = x.shape
    Lk = y.shape[1]
    hd = D // num_heads
    mean = jnp.mean(x, axis=-1, keepdims=True)
    var = jnp.mean((x - mean) ** 2, axis=-1, keepdims=True)
    xn = (x - mean) / jnp.sqrt(var + 1e-5) * params["gamma"][0] + params["beta"][0]
    q = xn @ params["wq"].T + params["bq"][0]
    k = y @ params["wk"].T + params["bk"][0]
    v = y @ params["wv"].T + params["bv"][0]
    q = q.reshape(B, Lq, num_heads, hd).transpose(0, 2, 1, 3)
    k = k.reshape(B, Lk, num_heads, hd).transpose(0, 2, 1, 3)
    v = v.reshape(B, Lk, num_heads, hd).transpose(0, 2, 1, 3)
    s = jnp.einsum("bhqd,bhkd->bhqk", q, k) / jnp.sqrt(jnp.float32(hd))
    p = jax.nn.softmax(s, axis=-1)
    ctx = jnp.einsum("bhqk,bhkd->bhqd", p, v).transpose(0, 2, 1, 3).reshape(B, Lq, D)
    out = ctx @ params["wo"].T + params["bo"][0]
    return x + out, jnp.mean(p, axis=1)


if __name__ == "__main__":
    B, Lq, Lk, D, H = 2, 8, 8, 32, 4

    key = jax.random.PRNGKey(0)
    keys = jax.random.split(key, 12)
    params = {
        "gamma": 1.0 + 0.1 * jax.random.normal(keys[0], (1, D), jnp.float32),
        "beta":  0.1 * jax.random.normal(keys[1], (1, D), jnp.float32),
        "wq":    0.1 * jax.random.normal(keys[2], (D, D), jnp.float32),
        "wk":    0.1 * jax.random.normal(keys[3], (D, D), jnp.float32),
        "wv":    0.1 * jax.random.normal(keys[4], (D, D), jnp.float32),
        "bq":    0.1 * jax.random.normal(keys[5], (1, D), jnp.float32),
        "bk":    0.1 * jax.random.normal(keys[6], (1, D), jnp.float32),
        "bv":    0.1 * jax.random.normal(keys[7], (1, D), jnp.float32),
        "wo":    0.1 * jax.random.normal(keys[8], (D, D), jnp.float32),
        "bo":    0.1 * jax.random.normal(keys[9], (1, D), jnp.float32),
    }
    x = jax.random.normal(keys[10], (B, Lq, D), jnp.float32)
    y = jax.random.normal(keys[11], (B, Lk, D), jnp.float32)

    out, attn = cross_attention_layer(x, y, params, num_heads=H)
    out = jax.block_until_ready(out)
    attn = jax.block_until_ready(attn)

    ref_out, ref_attn = reference(x, y, params, H)
    assert out.shape == (B, Lq, D) and attn.shape == (B, Lq, Lk)
    assert jnp.allclose(out, ref_out, rtol=1e-3, atol=1e-3)
    assert jnp.allclose(attn, ref_attn, rtol=1e-3, atol=1e-3)

    print("KERNEL_OK")
</pallas_src>

<mosaic_0001>
module attributes {stable_mosaic.version = 11 : i64} {
  func.func @cross_attn_kernel(%arg0: i32, %arg1: memref<1x8x32xf32, #tpu.memory_space<vmem>>, %arg2: memref<1x8x32xf32, #tpu.memory_space<vmem>>, %arg3: memref<1x32xf32, #tpu.memory_space<vmem>>, %arg4: memref<1x32xf32, #tpu.memory_space<vmem>>, %arg5: memref<4x32x8xf32, #tpu.memory_space<vmem>>, %arg6: memref<4x32x8xf32, #tpu.memory_space<vmem>>, %arg7: memref<4x32x8xf32, #tpu.memory_space<vmem>>, %arg8: memref<32x32xf32, #tpu.memory_space<vmem>>, %arg9: memref<4x1x8xf32, #tpu.memory_space<vmem>>, %arg10: memref<4x1x8xf32, #tpu.memory_space<vmem>>, %arg11: memref<4x1x8xf32, #tpu.memory_space<vmem>>, %arg12: memref<1x32xf32, #tpu.memory_space<vmem>>, %arg13: memref<1x8x32xf32, #tpu.memory_space<vmem>>, %arg14: memref<1x8x8xf32, #tpu.memory_space<vmem>>, %arg15: memref<8x32xf32, #tpu.memory_space<vmem>>) attributes {dimension_semantics = [#tpu.dimension_semantics<parallel>], iteration_bounds = array<i64: 2>, scalar_prefetch = 0 : i64, scratch_operands = 1 : i64, tpu.core_type = #tpu.core_type<tc>, window_params = [{transform_indices = @transform_0, window_bounds = array<i64: 1, 8, 32>}, {transform_indices = @transform_1, window_bounds = array<i64: 1, 8, 32>}, {pipeline_mode = #tpu.pipeline_mode<synchronous>, transform_indices = @transform_2, window_bounds = array<i64: 1, 32>}, {pipeline_mode = #tpu.pipeline_mode<synchronous>, transform_indices = @transform_3, window_bounds = array<i64: 1, 32>}, {pipeline_mode = #tpu.pipeline_mode<synchronous>, transform_indices = @transform_4, window_bounds = array<i64: 4, 32, 8>}, {pipeline_mode = #tpu.pipeline_mode<synchronous>, transform_indices = @transform_5, window_bounds = array<i64: 4, 32, 8>}, {pipeline_mode = #tpu.pipeline_mode<synchronous>, transform_indices = @transform_6, window_bounds = array<i64: 4, 32, 8>}, {pipeline_mode = #tpu.pipeline_mode<synchronous>, transform_indices = @transform_7, window_bounds = array<i64: 32, 32>}, {pipeline_mode = #tpu.pipeline_mode<synchronous>, transform_indices = @transform_8, window_bounds = array<i64: 4, 1, 8>}, {pipeline_mode = #tpu.pipeline_mode<synchronous>, transform_indices = @transform_9, window_bounds = array<i64: 4, 1, 8>}, {pipeline_mode = #tpu.pipeline_mode<synchronous>, transform_indices = @transform_10, window_bounds = array<i64: 4, 1, 8>}, {pipeline_mode = #tpu.pipeline_mode<synchronous>, transform_indices = @transform_11, window_bounds = array<i64: 1, 32>}, {transform_indices = @transform_12, window_bounds = array<i64: 1, 8, 32>}, {transform_indices = @transform_13, window_bounds = array<i64: 1, 8, 8>}]} {
    %c0 = arith.constant 0 : index
    %c0_0 = arith.constant 0 : index
    %c0_1 = arith.constant 0 : index
    %0 = vector.load %arg1[%c0, %c0_0, %c0_1] : memref<1x8x32xf32, #tpu.memory_space<vmem>>, vector<1x8x32xf32>
    %1 = vector.shape_cast %0 : vector<1x8x32xf32> to vector<8x32xf32>
    %c0_2 = arith.constant 0 : index
    %c0_3 = arith.constant 0 : index
    %c0_4 = arith.constant 0 : index
    %2 = vector.load %arg2[%c0_2, %c0_3, %c0_4] : memref<1x8x32xf32, #tpu.memory_space<vmem>>, vector<1x8x32xf32>
    %3 = vector.shape_cast %2 : vector<1x8x32xf32> to vector<8x32xf32>
    %cst = arith.constant dense<0.000000e+00> : vector<8xf32>
    %4 = vector.multi_reduction <add>, %1, %cst [1] : vector<8x32xf32> to vector<8xf32>
    %5 = vector.shape_cast %4 : vector<8xf32> to vector<8x1xf32>
    %cst_5 = arith.constant 3.200000e+01 : f32
    %6 = vector.broadcast %cst_5 : f32 to vector<8x1xf32>
    %7 = arith.divf %5, %6 : vector<8x1xf32>
    %8 = vector.broadcast %7 : vector<8x1xf32> to vector<8x32xf32>
    %9 = arith.subf %1, %8 : vector<8x32xf32>
    %10 = arith.mulf %9, %9 : vector<8x32xf32>
    %cst_6 = arith.constant dense<0.000000e+00> : vector<8xf32>
    %11 = vector.multi_reduction <add>, %10, %cst_6 [1] : vector<8x32xf32> to vector<8xf32>
    %12 = vector.shape_cast %11 : vector<8xf32> to vector<8x1xf32>
    %cst_7 = arith.constant 3.200000e+01 : f32
    %13 = vector.broadcast %cst_7 : f32 to vector<8x1xf32>
    %14 = arith.divf %12, %13 : vector<8x1xf32>
    %15 = vector.broadcast %7 : vector<8x1xf32> to vector<8x32xf32>
    %16 = arith.subf %1, %15 : vector<8x32xf32>
    %cst_8 = arith.constant 9.99999974E-6 : f32
    %17 = vector.broadcast %cst_8 : f32 to vector<8x1xf32>
    %18 = arith.addf %14, %17 : vector<8x1xf32>
    %19 = math.rsqrt %18 : vector<8x1xf32>
    %20 = vector.broadcast %19 : vector<8x1xf32> to vector<8x32xf32>
    %21 = arith.mulf %16, %20 : vector<8x32xf32>
    %c0_9 = arith.constant 0 : index
    %c0_10 = arith.constant 0 : index
    %22 = vector.load %arg3[%c0_9, %c0_10] : memref<1x32xf32, #tpu.memory_space<vmem>>, vector<1x32xf32>
    %23 = vector.shape_cast %22 : vector<1x32xf32> to vector<32xf32>
    %24 = vector.shape_cast %23 : vector<32xf32> to vector<1x32xf32>
    %25 = vector.broadcast %24 : vector<1x32xf32> to vector<8x32xf32>
    %26 = arith.mulf %21, %25 : vector<8x32xf32>
    %c0_11 = arith.constant 0 : index
    %c0_12 = arith.constant 0 : index
    %27 = vector.load %arg4[%c0_11, %c0_12] : memref<1x32xf32, #tpu.memory_space<vmem>>, vector<1x32xf32>
    %28 = vector.shape_cast %27 : vector<1x32xf32> to vector<32xf32>
    %29 = vector.shape_cast %28 : vector<32xf32> to vector<1x32xf32>
    %30 = vector.broadcast %29 : vector<1x32xf32> to vector<8x32xf32>
    %31 = arith.addf %26, %30 : vector<8x32xf32>
    %cst_13 = arith.constant 8.000000e+00 : f32
    %32 = math.sqrt %cst_13 : f32
    %cst_14 = arith.constant 1.000000e+00 : f32
    %33 = arith.divf %cst_14, %32 : f32
    %cst_15 = arith.constant 0.000000e+00 : f32
    %34 = vector.broadcast %cst_15 : f32 to vector<1x8x8xf32>
    %c0_16 = arith.constant 0 : index
    %c0_17 = arith.constant 0 : index
    %c0_18 = arith.constant 0 : index
    %35 = vector.load %arg5[%c0_16, %c0_17, %c0_18] : memref<4x32x8xf32, #tpu.memory_space<vmem>>, vector<1x32x8xf32>
    %36 = vector.shape_cast %35 : vector<1x32x8xf32> to vector<32x8xf32>
    %cst_19 = arith.constant dense<0.000000e+00> : vector<8x8xf32>
    %37 = tpu.matmul %31, %36, %cst_19 {dimension_numbers = #tpu.dot_dimension_numbers<[1], [0], [0], [1], [0, 0, 1, 1], [], []>} : vector<8x32xf32>, vector<32x8xf32>, vector<8x8xf32> -> vector<8x8xf32>
    %c0_20 = arith.constant 0 : index
    %c0_21 = arith.constant 0 : index
    %c0_22 = arith.constant 0 : index
    %38 = vector.load %arg9[%c0_20, %c0_21, %c0_22] : memref<4x1x8xf32, #tpu.memory_space<vmem>>, vector<1x1x8xf32>
    %39 = vector.shape_cast %38 : vector<1x1x8xf32> to vector<1x8xf32>
    %40 = vector.broadcast %39 : vector<1x8xf32> to vector<8x8xf32>
    %41 = arith.addf %37, %40 : vector<8x8xf32>
    %42 = vector.shape_cast %41 : vector<8x8xf32> to vector<1x8x8xf32>
    %c0_23 = arith.constant 0 : index
    %c0_24 = arith.constant 0 : index
    %c0_25 = arith.constant 0 : index
    %43 = vector.load %arg6[%c0_23, %c0_24, %c0_25] : memref<4x32x8xf32, #tpu.memory_space<vmem>>, vector<1x32x8xf32>
    %44 = vector.shape_cast %43 : vector<1x32x8xf32> to vector<32x8xf32>
    %cst_26 = arith.constant dense<0.000000e+00> : vector<8x8xf32>
    %45 = tpu.matmul %3, %44, %cst_26 {dimension_numbers = #tpu.dot_dimension_numbers<[1], [0], [0], [1], [0, 0, 1, 1], [], []>} : vector<8x32xf32>, vector<32x8xf32>, vector<8x8xf32> -> vector<8x8xf32>
    %c0_27 = arith.constant 0 : index
    %c0_28 = arith.constant 0 : index
    %c0_29 = arith.constant 0 : index
    %46 = vector.load %arg10[%c0_27, %c0_28, %c0_29] : memref<4x1x8xf32, #tpu.memory_space<vmem>>, vector<1x1x8xf32>
    %47 = vector.shape_cast %46 : vector<1x1x8xf32> to vector<1x8xf32>
    %48 = vector.broadcast %47 : vector<1x8xf32> to vector<8x8xf32>
    %49 = arith.addf %45, %48 : vector<8x8xf32>
    %50 = vector.shape_cast %49 : vector<8x8xf32> to vector<1x8x8xf32>
    %c0_30 = arith.constant 0 : index
    %c0_31 = arith.constant 0 : index
    %c0_32 = arith.constant 0 : index
    %51 = vector.load %arg7[%c0_30, %c0_31, %c0_32] : memref<4x32x8xf32, #tpu.memory_space<vmem>>, vector<1x32x8xf32>
    %52 = vector.shape_cast %51 : vector<1x32x8xf32> to vector<32x8xf32>
    %cst_33 = arith.constant dense<0.000000e+00> : vector<8x8xf32>
    %53 = tpu.matmul %3, %52, %cst_33 {dimension_numbers = #tpu.dot_dimension_numbers<[1], [0], [0], [1], [0, 0, 1, 1], [], []>} : vector<8x32xf32>, vector<32x8xf32>, vector<8x8xf32> -> vector<8x8xf32>
    %c0_34 = arith.constant 0 : index
    %c0_35 = arith.constant 0 : index
    %c0_36 = arith.constant 0 : index
    %54 = vector.load %arg11[%c0_34, %c0_35, %c0_36] : memref<4x1x8xf32, #tpu.memory_space<vmem>>, vector<1x1x8xf32>
    %55 = vector.shape_cast %54 : vector<1x1x8xf32> to vector<1x8xf32>
    %56 = vector.broadcast %55 : vector<1x8xf32> to vector<8x8xf32>
    %57 = arith.addf %53, %56 : vector<8x8xf32>
    %58 = vector.shape_cast %57 : vector<8x8xf32> to vector<1x8x8xf32>
    %59 = vector.broadcast %33 : f32 to vector<1x8x8xf32>
    %60 = arith.mulf %42, %59 : vector<1x8x8xf32>
    "tpu.trace_start"() <{level = 10 : i32, message = "bqd,bkd->bqk"}> : () -> ()
    %cst_37 = arith.constant dense<0.000000e+00> : vector<1x8x8xf32>
    %61 = tpu.matmul %60, %50, %cst_37 {dimension_numbers = #tpu.dot_dimension_numbers<[2], [2], [1], [1], [0, 0, 0, 1, 1, 1], [0], [0]>} : vector<1x8x8xf32>, vector<1x8x8xf32>, vector<1x8x8xf32> -> vector<1x8x8xf32>
    "tpu.trace_stop"() : () -> ()
    %cst_38 = arith.constant dense<0xFF800000> : vector<1x8xf32>
    %62 = vector.multi_reduction <maximumf>, %61, %cst_38 [2] : vector<1x8x8xf32> to vector<1x8xf32>
    %63 = vector.shape_cast %62 : vector<1x8xf32> to vector<1x8x1xf32>
    %64 = vector.broadcast %63 : vector<1x8x1xf32> to vector<1x8x8xf32>
    %65 = arith.subf %61, %64 : vector<1x8x8xf32>
    %66 = math.exp %65 : vector<1x8x8xf32>
    %cst_39 = arith.constant dense<0.000000e+00> : vector<1x8xf32>
    %67 = vector.multi_reduction <add>, %66, %cst_39 [2] : vector<1x8x8xf32> to vector<1x8xf32>
    %68 = vector.shape_cast %67 : vector<1x8xf32> to vector<1x8x1xf32>
    %69 = tpu.reciprocal %68 : vector<1x8x1xf32> -> vector<1x8x1xf32>
    %70 = vector.broadcast %69 : vector<1x8x1xf32> to vector<1x8x8xf32>
    %71 = arith.mulf %66, %70 : vector<1x8x8xf32>
    %72 = arith.addf %34, %71 : vector<1x8x8xf32>
    "tpu.trace_start"() <{level = 10 : i32, message = "bqk,bkd->bqd"}> : () -> ()
    %cst_40 = arith.constant dense<0.000000e+00> : vector<1x8x8xf32>
    %73 = tpu.matmul %71, %58, %cst_40 {dimension_numbers = #tpu.dot_dimension_numbers<[2], [1], [1], [2], [0, 0, 0, 1, 1, 2], [0], [0]>} : vector<1x8x8xf32>, vector<1x8x8xf32>, vector<1x8x8xf32> -> vector<1x8x8xf32>
    "tpu.trace_stop"() : () -> ()
    %74 = vector.shape_cast %73 : vector<1x8x8xf32> to vector<8x8xf32>
    %c0_41 = arith.constant 0 : index
    %c0_42 = arith.constant 0 : index
    %75 = vector.load %arg15[%c0_41, %c0_42] : memref<8x32xf32, #tpu.memory_space<vmem>>, vector<8x8xf32>
    tpu.vector_store %arg15[%c0_41, %c0_42], %74 {strides = array<i32>} : memref<8x32xf32, #tpu.memory_space<vmem>>, vector<8x8xf32>,
    %c1 = arith.constant 1 : index
    %c0_43 = arith.constant 0 : index
    %c0_44 = arith.constant 0 : index
    %76 = vector.load %arg5[%c1, %c0_43, %c0_44] : memref<4x32x8xf32, #tpu.memory_space<vmem>>, vector<1x32x8xf32>
    %77 = vector.shape_cast %76 : vector<1x32x8xf32> to vector<32x8xf32>
    %cst_45 = arith.constant dense<0.000000e+00> : vector<8x8xf32>
    %78 = tpu.matmul %31, %77, %cst_45 {dimension_numbers = #tpu.dot_dimension_numbers<[1], [0], [0], [1], [0, 0, 1, 1], [], []>} : vector<8x32xf32>, vector<32x8xf32>, vector<8x8xf32> -> vector<8x8xf32>
    %c1_46 = arith.constant 1 : index
    %c0_47 = arith.constant 0 : index
    %c0_48 = arith.constant 0 : index
    %79 = vector.load %arg9[%c1_46, %c0_47, %c0_48] : memref<4x1x8xf32, #tpu.memory_space<vmem>>, vector<1x1x8xf32>
    %80 = vector.shape_cast %79 : vector<1x1x8xf32> to vector<1x8xf32>
    %81 = vector.broadcast %80 : vector<1x8xf32> to vector<8x8xf32>
    %82 = arith.addf %78, %81 : vector<8x8xf32>
    %83 = vector.shape_cast %82 : vector<8x8xf32> to vector<1x8x8xf32>
    %c1_49 = arith.constant 1 : index
    %c0_50 = arith.constant 0 : index
    %c0_51 = arith.constant 0 : index
    %84 = vector.load %arg6[%c1_49, %c0_50, %c0_51] : memref<4x32x8xf32, #tpu.memory_space<vmem>>, vector<1x32x8xf32>
    %85 = vector.shape_cast %84 : vector<1x32x8xf32> to vector<32x8xf32>
    %cst_52 = arith.constant dense<0.000000e+00> : vector<8x8xf32>
    %86 = tpu.matmul %3, %85, %cst_52 {dimension_numbers = #tpu.dot_dimension_numbers<[1], [0], [0], [1], [0, 0, 1, 1], [], []>} : vector<8x32xf32>, vector<32x8xf32>, vector<8x8xf32> -> vector<8x8xf32>
    %c1_53 = arith.constant 1 : index
    %c0_54 = arith.constant 0 : index
    %c0_55 = arith.constant 0 : index
    %87 = vector.load %arg10[%c1_53, %c0_54, %c0_55] : memref<4x1x8xf32, #tpu.memory_space<vmem>>, vector<1x1x8xf32>
    %88 = vector.shape_cast %87 : vector<1x1x8xf32> to vector<1x8xf32>
    %89 = vector.broadcast %88 : vector<1x8xf32> to vector<8x8xf32>
    %90 = arith.addf %86, %89 : vector<8x8xf32>
    %91 = vector.shape_cast %90 : vector<8x8xf32> to vector<1x8x8xf32>
    %c1_56 = arith.constant 1 : index
    %c0_57 = arith.constant 0 : index
    %c0_58 = arith.constant 0 : index
    %92 = vector.load %arg7[%c1_56, %c0_57, %c0_58] : memref<4x32x8xf32, #tpu.memory_space<vmem>>, vector<1x32x8xf32>
    %93 = vector.shape_cast %92 : vector<1x32x8xf32> to vector<32x8xf32>
    %cst_59 = arith.constant dense<0.000000e+00> : vector<8x8xf32>
    %94 = tpu.matmul %3, %93, %cst_59 {dimension_numbers = #tpu.dot_dimension_numbers<[1], [0], [0], [1], [0, 0, 1, 1], [], []>} : vector<8x32xf32>, vector<32x8xf32>, vector<8x8xf32> -> vector<8x8xf32>
    %c1_60 = arith.constant 1 : index
    %c0_61 = arith.constant 0 : index
    %c0_62 = arith.constant 0 : index
    %95 = vector.load %arg11[%c1_60, %c0_61, %c0_62] : memref<4x1x8xf32, #tpu.memory_space<vmem>>, vector<1x1x8xf32>
    %96 = vector.shape_cast %95 : vector<1x1x8xf32> to vector<1x8xf32>
    %97 = vector.broadcast %96 : vector<1x8xf32> to vector<8x8xf32>
    %98 = arith.addf %94, %97 : vector<8x8xf32>
    %99 = vector.shape_cast %98 : vector<8x8xf32> to vector<1x8x8xf32>
    %100 = vector.broadcast %33 : f32 to vector<1x8x8xf32>
    %101 = arith.mulf %83, %100 : vector<1x8x8xf32>
    "tpu.trace_start"() <{level = 10 : i32, message = "bqd,bkd->bqk"}> : () -> ()
    %cst_63 = arith.constant dense<0.000000e+00> : vector<1x8x8xf32>
    %102 = tpu.matmul %101, %91, %cst_63 {dimension_numbers = #tpu.dot_dimension_numbers<[2], [2], [1], [1], [0, 0, 0, 1, 1, 1], [0], [0]>} : vector<1x8x8xf32>, vector<1x8x8xf32>, vector<1x8x8xf32> -> vector<1x8x8xf32>
    "tpu.trace_stop"() : () -> ()
    %cst_64 = arith.constant dense<0xFF800000> : vector<1x8xf32>
    %103 = vector.multi_reduction <maximumf>, %102, %cst_64 [2] : vector<1x8x8xf32> to vector<1x8xf32>
    %104 = vector.shape_cast %103 : vector<1x8xf32> to vector<1x8x1xf32>
    %105 = vector.broadcast %104 : vector<1x8x1xf32> to vector<1x8x8xf32>
    %106 = arith.subf %102, %105 : vector<1x8x8xf32>
    %107 = math.exp %106 : vector<1x8x8xf32>
    %cst_65 = arith.constant dense<0.000000e+00> : vector<1x8xf32>
    %108 = vector.multi_reduction <add>, %107, %cst_65 [2] : vector<1x8x8xf32> to vector<1x8xf32>
    %109 = vector.shape_cast %108 : vector<1x8xf32> to vector<1x8x1xf32>
    %110 = tpu.reciprocal %109 : vector<1x8x1xf32> -> vector<1x8x1xf32>
    %111 = vector.broadcast %110 : vector<1x8x1xf32> to vector<1x8x8xf32>
    %112 = arith.mulf %107, %111 : vector<1x8x8xf32>
    %113 = arith.addf %72, %112 : vector<1x8x8xf32>
    "tpu.trace_start"() <{level = 10 : i32, message = "bqk,bkd->bqd"}> : () -> ()
    %cst_66 = arith.constant dense<0.000000e+00> : vector<1x8x8xf32>
    %114 = tpu.matmul %112, %99, %cst_66 {dimension_numbers = #tpu.dot_dimension_numbers<[2], [1], [1], [2], [0, 0, 0, 1, 1, 2], [0], [0]>} : vector<1x8x8xf32>, vector<1x8x8xf32>, vector<1x8x8xf32> -> vector<1x8x8xf32>
    "tpu.trace_stop"() : () -> ()
    %115 = vector.shape_cast %114 : vector<1x8x8xf32> to vector<8x8xf32>
    %c0_67 = arith.constant 0 : index
    %c8 = arith.constant 8 : index
    %116 = vector.load %arg15[%c0_67, %c8] : memref<8x32xf32, #tpu.memory_space<vmem>>, vector<8x8xf32>
    tpu.vector_store %arg15[%c0_67, %c8], %115 {strides = array<i32>} : memref<8x32xf32, #tpu.memory_space<vmem>>, vector<8x8xf32>,
    %c2 = arith.constant 2 : index
    %c0_68 = arith.constant 0 : index
    %c0_69 = arith.constant 0 : index
    %117 = vector.load %arg5[%c2, %c0_68, %c0_69] : memref<4x32x8xf32, #tpu.memory_space<vmem>>, vector<1x32x8xf32>
    %118 = vector.shape_cast %117 : vector<1x32x8xf32> to vector<32x8xf32>
    %cst_70 = arith.constant dense<0.000000e+00> : vector<8x8xf32>
    %119 = tpu.matmul %31, %118, %cst_70 {dimension_numbers = #tpu.dot_dimension_numbers<[1], [0], [0], [1], [0, 0, 1, 1], [], []>} : vector<8x32xf32>, vector<32x8xf32>, vector<8x8xf32> -> vector<8x8xf32>
    %c2_71 = arith.constant 2 : index
    %c0_72 = arith.constant 0 : index
    %c0_73 = arith.constant 0 : index
    %120 = vector.load %arg9[%c2_71, %c0_72, %c0_73] : memref<4x1x8xf32, #tpu.memory_space<vmem>>, vector<1x1x8xf32>
    %121 = vector.shape_cast %120 : vector<1x1x8xf32> to vector<1x8xf32>
    %122 = vector.broadcast %121 : vector<1x8xf32> to vector<8x8xf32>
    %123 = arith.addf %119, %122 : vector<8x8xf32>
    %124 = vector.shape_cast %123 : vector<8x8xf32> to vector<1x8x8xf32>
    %c2_74 = arith.constant 2 : index
    %c0_75 = arith.constant 0 : index
    %c0_76 = arith.constant 0 : index
    %125 = vector.load %arg6[%c2_74, %c0_75, %c0_76] : memref<4x32x8xf32, #tpu.memory_space<vmem>>, vector<1x32x8xf32>
    %126 = vector.shape_cast %125 : vector<1x32x8xf32> to vector<32x8xf32>
    %cst_77 = arith.constant dense<0.000000e+00> : vector<8x8xf32>
    %127 = tpu.matmul %3, %126, %cst_77 {dimension_numbers = #tpu.dot_dimension_numbers<[1], [0], [0], [1], [0, 0, 1, 1], [], []>} : vector<8x32xf32>, vector<32x8xf32>, vector<8x8xf32> -> vector<8x8xf32>
    %c2_78 = arith.constant 2 : index
    %c0_79 = arith.constant 0 : index
    %c0_80 = arith.constant 0 : index
    %128 = vector.load %arg10[%c2_78, %c0_79, %c0_80] : memref<4x1x8xf32, #tpu.memory_space<vmem>>, vector<1x1x8xf32>
    %129 = vector.shape_cast %128 : vector<1x1x8xf32> to vector<1x8xf32>
    %130 = vector.broadcast %129 : vector<1x8xf32> to vector<8x8xf32>
    %131 = arith.addf %127, %130 : vector<8x8xf32>
    %132 = vector.shape_cast %131 : vector<8x8xf32> to vector<1x8x8xf32>
    %c2_81 = arith.constant 2 : index
    %c0_82 = arith.constant 0 : index
    %c0_83 = arith.constant 0 : index
    %133 = vector.load %arg7[%c2_81, %c0_82, %c0_83] : memref<4x32x8xf32, #tpu.memory_space<vmem>>, vector<1x32x8xf32>
    %134 = vector.shape_cast %133 : vector<1x32x8xf32> to vector<32x8xf32>
    %cst_84 = arith.constant dense<0.000000e+00> : vector<8x8xf32>
    %135 = tpu.matmul %3, %134, %cst_84 {dimension_numbers = #tpu.dot_dimension_numbers<[1], [0], [0], [1], [0, 0, 1, 1], [], []>} : vector<8x32xf32>, vector<32x8xf32>, vector<8x8xf32> -> vector<8x8xf32>
    %c2_85 = arith.constant 2 : index
    %c0_86 = arith.constant 0 : index
    %c0_87 = arith.constant 0 : index
    %136 = vector.load %arg11[%c2_85, %c0_86, %c0_87] : memref<4x1x8xf32, #tpu.memory_space<vmem>>, vector<1x1x8xf32>
    %137 = vector.shape_cast %136 : vector<1x1x8xf32> to vector<1x8xf32>
    %138 = vector.broadcast %137 : vector<1x8xf32> to vector<8x8xf32>
    %139 = arith.addf %135, %138 : vector<8x8xf32>
    %140 = vector.shape_cast %139 : vector<8x8xf32> to vector<1x8x8xf32>
    %141 = vector.broadcast %33 : f32 to vector<1x8x8xf32>
    %142 = arith.mulf %124, %141 : vector<1x8x8xf32>
    "tpu.trace_start"() <{level = 10 : i32, message = "bqd,bkd->bqk"}> : () -> ()
    %cst_88 = arith.constant dense<0.000000e+00> : vector<1x8x8xf32>
    %143 = tpu.matmul %142, %132, %cst_88 {dimension_numbers = #tpu.dot_dimension_numbers<[2], [2], [1], [1], [0, 0, 0, 1, 1, 1], [0], [0]>} : vector<1x8x8xf32>, vector<1x8x8xf32>, vector<1x8x8xf32> -> vector<1x8x8xf32>
    "tpu.trace_stop"() : () -> ()
    %cst_89 = arith.constant dense<0xFF800000> : vector<1x8xf32>
    %144 = vector.multi_reduction <maximumf>, %143, %cst_89 [2] : vector<1x8x8xf32> to vector<1x8xf32>
    %145 = vector.shape_cast %144 : vector<1x8xf32> to vector<1x8x1xf32>
    %146 = vector.broadcast %145 : vector<1x8x1xf32> to vector<1x8x8xf32>
    %147 = arith.subf %143, %146 : vector<1x8x8xf32>
    %148 = math.exp %147 : vector<1x8x8xf32>
    %cst_90 = arith.constant dense<0.000000e+00> : vector<1x8xf32>
    %149 = vector.multi_reduction <add>, %148, %cst_90 [2] : vector<1x8x8xf32> to vector<1x8xf32>
    %150 = vector.shape_cast %149 : vector<1x8xf32> to vector<1x8x1xf32>
    %151 = tpu.reciprocal %150 : vector<1x8x1xf32> -> vector<1x8x1xf32>
    %152 = vector.broadcast %151 : vector<1x8x1xf32> to vector<1x8x8xf32>
    %153 = arith.mulf %148, %152 : vector<1x8x8xf32>
    %154 = arith.addf %113, %153 : vector<1x8x8xf32>
    "tpu.trace_start"() <{level = 10 : i32, message = "bqk,bkd->bqd"}> : () -> ()
    %cst_91 = arith.constant dense<0.000000e+00> : vector<1x8x8xf32>
    %155 = tpu.matmul %153, %140, %cst_91 {dimension_numbers = #tpu.dot_dimension_numbers<[2], [1], [1], [2], [0, 0, 0, 1, 1, 2], [0], [0]>} : vector<1x8x8xf32>, vector<1x8x8xf32>, vector<1x8x8xf32> -> vector<1x8x8xf32>
    "tpu.trace_stop"() : () -> ()
    %156 = vector.shape_cast %155 : vector<1x8x8xf32> to vector<8x8xf32>
    %c0_92 = arith.constant 0 : index
    %c16 = arith.constant 16 : index
    %157 = vector.load %arg15[%c0_92, %c16] : memref<8x32xf32, #tpu.memory_space<vmem>>, vector<8x8xf32>
    tpu.vector_store %arg15[%c0_92, %c16], %156 {strides = array<i32>} : memref<8x32xf32, #tpu.memory_space<vmem>>, vector<8x8xf32>,
    %c3 = arith.constant 3 : index
    %c0_93 = arith.constant 0 : index
    %c0_94 = arith.constant 0 : index
    %158 = vector.load %arg5[%c3, %c0_93, %c0_94] : memref<4x32x8xf32, #tpu.memory_space<vmem>>, vector<1x32x8xf32>
    %159 = vector.shape_cast %158 : vector<1x32x8xf32> to vector<32x8xf32>
    %cst_95 = arith.constant dense<0.000000e+00> : vector<8x8xf32>
    %160 = tpu.matmul %31, %159, %cst_95 {dimension_numbers = #tpu.dot_dimension_numbers<[1], [0], [0], [1], [0, 0, 1, 1], [], []>} : vector<8x32xf32>, vector<32x8xf32>, vector<8x8xf32> -> vector<8x8xf32>
    %c3_96 = arith.constant 3 : index
    %c0_97 = arith.constant 0 : index
    %c0_98 = arith.constant 0 : index
    %161 = vector.load %arg9[%c3_96, %c0_97, %c0_98] : memref<4x1x8xf32, #tpu.memory_space<vmem>>, vector<1x1x8xf32>
    %162 = vector.shape_cast %161 : vector<1x1x8xf32> to vector<1x8xf32>
    %163 = vector.broadcast %162 : vector<1x8xf32> to vector<8x8xf32>
    %164 = arith.addf %160, %163 : vector<8x8xf32>
    %165 = vector.shape_cast %164 : vector<8x8xf32> to vector<1x8x8xf32>
    %c3_99 = arith.constant 3 : index
    %c0_100 = arith.constant 0 : index
    %c0_101 = arith.constant 0 : index
    %166 = vector.load %arg6[%c3_99, %c0_100, %c0_101] : memref<4x32x8xf32, #tpu.memory_space<vmem>>, vector<1x32x8xf32>
    %167 = vector.shape_cast %166 : vector<1x32x8xf32> to vector<32x8xf32>
    %cst_102 = arith.constant dense<0.000000e+00> : vector<8x8xf32>
    %168 = tpu.matmul %3, %167, %cst_102 {dimension_numbers = #tpu.dot_dimension_numbers<[1], [0], [0], [1], [0, 0, 1, 1], [], []>} : vector<8x32xf32>, vector<32x8xf32>, vector<8x8xf32> -> vector<8x8xf32>
    %c3_103 = arith.constant 3 : index
    %c0_104 = arith.constant 0 : index
    %c0_105 = arith.constant 0 : index
    %169 = vector.load %arg10[%c3_103, %c0_104, %c0_105] : memref<4x1x8xf32, #tpu.memory_space<vmem>>, vector<1x1x8xf32>
    %170 = vector.shape_cast %169 : vector<1x1x8xf32> to vector<1x8xf32>
    %171 = vector.broadcast %170 : vector<1x8xf32> to vector<8x8xf32>
    %172 = arith.addf %168, %171 : vector<8x8xf32>
    %173 = vector.shape_cast %172 : vector<8x8xf32> to vector<1x8x8xf32>
    %c3_106 = arith.constant 3 : index
    %c0_107 = arith.constant 0 : index
    %c0_108 = arith.constant 0 : index
    %174 = vector.load %arg7[%c3_106, %c0_107, %c0_108] : memref<4x32x8xf32, #tpu.memory_space<vmem>>, vector<1x32x8xf32>
    %175 = vector.shape_cast %174 : vector<1x32x8xf32> to vector<32x8xf32>
    %cst_109 = arith.constant dense<0.000000e+00> : vector<8x8xf32>
    %176 = tpu.matmul %3, %175, %cst_109 {dimension_numbers = #tpu.dot_dimension_numbers<[1], [0], [0], [1], [0, 0, 1, 1], [], []>} : vector<8x32xf32>, vector<32x8xf32>, vector<8x8xf32> -> vector<8x8xf32>
    %c3_110 = arith.constant 3 : index
    %c0_111 = arith.constant 0 : index
    %c0_112 = arith.constant 0 : index
    %177 = vector.load %arg11[%c3_110, %c0_111, %c0_112] : memref<4x1x8xf32, #tpu.memory_space<vmem>>, vector<1x1x8xf32>
    %178 = vector.shape_cast %177 : vector<1x1x8xf32> to vector<1x8xf32>
    %179 = vector.broadcast %178 : vector<1x8xf32> to vector<8x8xf32>
    %180 = arith.addf %176, %179 : vector<8x8xf32>
    %181 = vector.shape_cast %180 : vector<8x8xf32> to vector<1x8x8xf32>
    %182 = vector.broadcast %33 : f32 to vector<1x8x8xf32>
    %183 = arith.mulf %165, %182 : vector<1x8x8xf32>
    "tpu.trace_start"() <{level = 10 : i32, message = "bqd,bkd->bqk"}> : () -> ()
    %cst_113 = arith.constant dense<0.000000e+00> : vector<1x8x8xf32>
    %184 = tpu.matmul %183, %173, %cst_113 {dimension_numbers = #tpu.dot_dimension_numbers<[2], [2], [1], [1], [0, 0, 0, 1, 1, 1], [0], [0]>} : vector<1x8x8xf32>, vector<1x8x8xf32>, vector<1x8x8xf32> -> vector<1x8x8xf32>
    "tpu.trace_stop"() : () -> ()
    %cst_114 = arith.constant dense<0xFF800000> : vector<1x8xf32>
    %185 = vector.multi_reduction <maximumf>, %184, %cst_114 [2] : vector<1x8x8xf32> to vector<1x8xf32>
    %186 = vector.shape_cast %185 : vector<1x8xf32> to vector<1x8x1xf32>
    %187 = vector.broadcast %186 : vector<1x8x1xf32> to vector<1x8x8xf32>
    %188 = arith.subf %184, %187 : vector<1x8x8xf32>
    %189 = math.exp %188 : vector<1x8x8xf32>
    %cst_115 = arith.constant dense<0.000000e+00> : vector<1x8xf32>
    %190 = vector.multi_reduction <add>, %189, %cst_115 [2] : vector<1x8x8xf32> to vector<1x8xf32>
    %191 = vector.shape_cast %190 : vector<1x8xf32> to vector<1x8x1xf32>
    %192 = tpu.reciprocal %191 : vector<1x8x1xf32> -> vector<1x8x1xf32>
    %193 = vector.broadcast %192 : vector<1x8x1xf32> to vector<1x8x8xf32>
    %194 = arith.mulf %189, %193 : vector<1x8x8xf32>
    %195 = arith.addf %154, %194 : vector<1x8x8xf32>
    "tpu.trace_start"() <{level = 10 : i32, message = "bqk,bkd->bqd"}> : () -> ()
    %cst_116 = arith.constant dense<0.000000e+00> : vector<1x8x8xf32>
    %196 = tpu.matmul %194, %181, %cst_116 {dimension_numbers = #tpu.dot_dimension_numbers<[2], [1], [1], [2], [0, 0, 0, 1, 1, 2], [0], [0]>} : vector<1x8x8xf32>, vector<1x8x8xf32>, vector<1x8x8xf32> -> vector<1x8x8xf32>
    "tpu.trace_stop"() : () -> ()
    %197 = vector.shape_cast %196 : vector<1x8x8xf32> to vector<8x8xf32>
    %c0_117 = arith.constant 0 : index
    %c24 = arith.constant 24 : index
    %198 = vector.load %arg15[%c0_117, %c24] : memref<8x32xf32, #tpu.memory_space<vmem>>, vector<8x8xf32>
    tpu.vector_store %arg15[%c0_117, %c24], %197 {strides = array<i32>} : memref<8x32xf32, #tpu.memory_space<vmem>>, vector<8x8xf32>,
    %c0_118 = arith.constant 0 : index
    %c0_119 = arith.constant 0 : index
    %199 = vector.load %arg15[%c0_118, %c0_119] : memref<8x32xf32, #tpu.memory_space<vmem>>, vector<8x32xf32>
    %c0_120 = arith.constant 0 : index
    %c0_121 = arith.constant 0 : index
    %200 = vector.load %arg8[%c0_120, %c0_121] : memref<32x32xf32, #tpu.memory_space<vmem>>, vector<32x32xf32>
    %cst_122 = arith.constant dense<0.000000e+00> : vector<8x32xf32>
    %201 = tpu.matmul %199, %200, %cst_122 {dimension_numbers = #tpu.dot_dimension_numbers<[1], [0], [0], [1], [0, 0, 1, 1], [], []>} : vector<8x32xf32>, vector<32x32xf32>, vector<8x32xf32> -> vector<8x32xf32>
    %c0_123 = arith.constant 0 : index
    %c0_124 = arith.constant 0 : index
    %202 = vector.load %arg12[%c0_123, %c0_124] : memref<1x32xf32, #tpu.memory_space<vmem>>, vector<1x32xf32>
    %203 = vector.shape_cast %202 : vector<1x32xf32> to vector<32xf32>
    %204 = vector.shape_cast %203 : vector<32xf32> to vector<1x32xf32>
    %205 = vector.broadcast %204 : vector<1x32xf32> to vector<8x32xf32>
    %206 = arith.addf %201, %205 : vector<8x32xf32>
    %207 = arith.addf %206, %1 : vector<8x32xf32>
    %208 = vector.shape_cast %207 : vector<8x32xf32> to vector<1x8x32xf32>
    %c0_125 = arith.constant 0 : index
    %c0_126 = arith.constant 0 : index
    %c0_127 = arith.constant 0 : index
    %209 = vector.load %arg13[%c0_125, %c0_126, %c0_127] : memref<1x8x32xf32, #tpu.memory_space<vmem>>, vector<1x8x32xf32>
    tpu.vector_store %arg13[%c0_125, %c0_126, %c0_127], %208 {strides = array<i32>} : memref<1x8x32xf32, #tpu.memory_space<vmem>>, vector<1x8x32xf32>,
    %cst_128 = arith.constant 2.500000e-01 : f32
    %210 = vector.broadcast %cst_128 : f32 to vector<1x8x8xf32>
    %211 = arith.mulf %195, %210 : vector<1x8x8xf32>
    %c0_129 = arith.constant 0 : index
    %c0_130 = arith.constant 0 : index
    %c0_131 = arith.constant 0 : index
    %212 = vector.load %arg14[%c0_129, %c0_130, %c0_131] : memref<1x8x8xf32, #tpu.memory_space<vmem>>, vector<1x8x8xf32>
    tpu.vector_store %arg14[%c0_129, %c0_130, %c0_131], %211 {strides = array<i32>} : memref<1x8x8xf32, #tpu.memory_space<vmem>>, vector<1x8x8xf32>,
    return
  }
  func.func @transform_0(%arg0: i32) -> (i32, i32, i32) {
    %c0_i32 = arith.constant 0 : i32
    %c0_i32_0 = arith.constant 0 : i32
    %c0_i32_1 = arith.constant 0 : i32
    return %arg0, %c0_i32, %c0_i32_0 : i32, i32, i32
  }
  func.func @transform_1(%arg0: i32) -> (i32, i32, i32) {
    %c0_i32 = arith.constant 0 : i32
    %c0_i32_0 = arith.constant 0 : i32
    %c0_i32_1 = arith.constant 0 : i32
    return %arg0, %c0_i32, %c0_i32_0 : i32, i32, i32
  }
  func.func @transform_2(%arg0: i32) -> (i32, i32) {
    %c0_i32 = arith.constant 0 : i32
    %c0_i32_0 = arith.constant 0 : i32
    %c0_i32_1 = arith.constant 0 : i32
    return %c0_i32, %c0_i32_0 : i32, i32
  }
  func.func @transform_3(%arg0: i32) -> (i32, i32) {
    %c0_i32 = arith.constant 0 : i32
    %c0_i32_0 = arith.constant 0 : i32
    %c0_i32_1 = arith.constant 0 : i32
    return %c0_i32, %c0_i32_0 : i32, i32
  }
  func.func @transform_4(%arg0: i32) -> (i32, i32, i32) {
    %c0_i32 = arith.constant 0 : i32
    %c0_i32_0 = arith.constant 0 : i32
    %c0_i32_1 = arith.constant 0 : i32
    %c0_i32_2 = arith.constant 0 : i32
    return %c0_i32, %c0_i32_0, %c0_i32_1 : i32, i32, i32
  }
  func.func @transform_5(%arg0: i32) -> (i32, i32, i32) {
    %c0_i32 = arith.constant 0 : i32
    %c0_i32_0 = arith.constant 0 : i32
    %c0_i32_1 = arith.constant 0 : i32
    %c0_i32_2 = arith.constant 0 : i32
    return %c0_i32, %c0_i32_0, %c0_i32_1 : i32, i32, i32
  }
  func.func @transform_6(%arg0: i32) -> (i32, i32, i32) {
    %c0_i32 = arith.constant 0 : i32
    %c0_i32_0 = arith.constant 0 : i32
    %c0_i32_1 = arith.constant 0 : i32
    %c0_i32_2 = arith.constant 0 : i32
    return %c0_i32, %c0_i32_0, %c0_i32_1 : i32, i32, i32
  }
  func.func @transform_7(%arg0: i32) -> (i32, i32) {
    %c0_i32 = arith.constant 0 : i32
    %c0_i32_0 = arith.constant 0 : i32
    %c0_i32_1 = arith.constant 0 : i32
    return %c0_i32, %c0_i32_0 : i32, i32
  }
  func.func @transform_8(%arg0: i32) -> (i32, i32, i32) {
    %c0_i32 = arith.constant 0 : i32
    %c0_i32_0 = arith.constant 0 : i32
    %c0_i32_1 = arith.constant 0 : i32
    %c0_i32_2 = arith.constant 0 : i32
    return %c0_i32, %c0_i32_0, %c0_i32_1 : i32, i32, i32
  }
  func.func @transform_9(%arg0: i32) -> (i32, i32, i32) {
    %c0_i32 = arith.constant 0 : i32
    %c0_i32_0 = arith.constant 0 : i32
    %c0_i32_1 = arith.constant 0 : i32
    %c0_i32_2 = arith.constant 0 : i32
    return %c0_i32, %c0_i32_0, %c0_i32_1 : i32, i32, i32
  }
  func.func @transform_10(%arg0: i32) -> (i32, i32, i32) {
    %c0_i32 = arith.constant 0 : i32
    %c0_i32_0 = arith.constant 0 : i32
    %c0_i32_1 = arith.constant 0 : i32
    %c0_i32_2 = arith.constant 0 : i32
    return %c0_i32, %c0_i32_0, %c0_i32_1 : i32, i32, i32
  }
  func.func @transform_11(%arg0: i32) -> (i32, i32) {
    %c0_i32 = arith.constant 0 : i32
    %c0_i32_0 = arith.constant 0 : i32
    %c0_i32_1 = arith.constant 0 : i32
    return %c0_i32, %c0_i32_0 : i32, i32
  }
  func.func @transform_12(%arg0: i32) -> (i32, i32, i32) {
    %c0_i32 = arith.constant 0 : i32
    %c0_i32_0 = arith.constant 0 : i32
    %c0_i32_1 = arith.constant 0 : i32
    return %arg0, %c0_i32, %c0_i32_0 : i32, i32, i32
  }
  func.func @transform_13(%arg0: i32) -> (i32, i32, i32) {
    %c0_i32 = arith.constant 0 : i32
    %c0_i32_0 = arith.constant 0 : i32
    %c0_i32_1 = arith.constant 0 : i32
    return %arg0, %c0_i32, %c0_i32_0 : i32, i32, i32
  }
}

module attributes {stable_mosaic.version = 11 : i64} {
  func.func @cross_attn_kernel(%arg0: i32, %arg1: memref<1x8x32xf32, #tpu.memory_space<vmem>>, %arg2: memref<1x8x32xf32, #tpu.memory_space<vmem>>, %arg3: memref<1x32xf32, #tpu.memory_space<vmem>>, %arg4: memref<1x32xf32, #tpu.memory_space<vmem>>, %arg5: memref<4x32x8xf32, #tpu.memory_space<vmem>>, %arg6: memref<4x32x8xf32, #tpu.memory_space<vmem>>, %arg7: memref<4x32x8xf32, #tpu.memory_space<vmem>>, %arg8: memref<32x32xf32, #tpu.memory_space<vmem>>, %arg9: memref<4x1x8xf32, #tpu.memory_space<vmem>>, %arg10: memref<4x1x8xf32, #tpu.memory_space<vmem>>, %arg11: memref<4x1x8xf32, #tpu.memory_space<vmem>>, %arg12: memref<1x32xf32, #tpu.memory_space<vmem>>, %arg13: memref<1x8x32xf32, #tpu.memory_space<vmem>>, %arg14: memref<1x8x8xf32, #tpu.memory_space<vmem>>, %arg15: memref<8x32xf32, #tpu.memory_space<vmem>>) attributes {dimension_semantics = [#tpu.dimension_semantics<parallel>], iteration_bounds = array<i64: 2>, scalar_prefetch = 0 : i64, scratch_operands = 1 : i64, tpu.core_type = #tpu.core_type<tc>, window_params = [{transform_indices = @transform_0, window_bounds = array<i64: 1, 8, 32>}, {transform_indices = @transform_1, window_bounds = array<i64: 1, 8, 32>}, {pipeline_mode = #tpu.pipeline_mode<synchronous>, transform_indices = @transform_2, window_bounds = array<i64: 1, 32>}, {pipeline_mode = #tpu.pipeline_mode<synchronous>, transform_indices = @transform_3, window_bounds = array<i64: 1, 32>}, {pipeline_mode = #tpu.pipeline_mode<synchronous>, transform_indices = @transform_4, window_bounds = array<i64: 4, 32, 8>}, {pipeline_mode = #tpu.pipeline_mode<synchronous>, transform_indices = @transform_5, window_bounds = array<i64: 4, 32, 8>}, {pipeline_mode = #tpu.pipeline_mode<synchronous>, transform_indices = @transform_6, window_bounds = array<i64: 4, 32, 8>}, {pipeline_mode = #tpu.pipeline_mode<synchronous>, transform_indices = @transform_7, window_bounds = array<i64: 32, 32>}, {pipeline_mode = #tpu.pipeline_mode<synchronous>, transform_indices = @transform_8, window_bounds = array<i64: 4, 1, 8>}, {pipeline_mode = #tpu.pipeline_mode<synchronous>, transform_indices = @transform_9, window_bounds = array<i64: 4, 1, 8>}, {pipeline_mode = #tpu.pipeline_mode<synchronous>, transform_indices = @transform_10, window_bounds = array<i64: 4, 1, 8>}, {pipeline_mode = #tpu.pipeline_mode<synchronous>, transform_indices = @transform_11, window_bounds = array<i64: 1, 32>}, {transform_indices = @transform_12, window_bounds = array<i64: 1, 8, 32>}, {transform_indices = @transform_13, window_bounds = array<i64: 1, 8, 8>}]} {
    %c0 = arith.constant 0 : index
    %c0_0 = arith.constant 0 : index
    %c0_1 = arith.constant 0 : index
    %0 = vector.load %arg1[%c0, %c0_0, %c0_1] : memref<1x8x32xf32, #tpu.memory_space<vmem>>, vector<1x8x32xf32>
    %1 = vector.shape_cast %0 : vector<1x8x32xf32> to vector<8x32xf32>
    %c0_2 = arith.constant 0 : index
    %c0_3 = arith.constant 0 : index
    %c0_4 = arith.constant 0 : index
    %2 = vector.load %arg2[%c0_2, %c0_3, %c0_4] : memref<1x8x32xf32, #tpu.memory_space<vmem>>, vector<1x8x32xf32>
    %3 = vector.shape_cast %2 : vector<1x8x32xf32> to vector<8x32xf32>
    %cst = arith.constant dense<0.000000e+00> : vector<8xf32>
    %4 = vector.multi_reduction <add>, %1, %cst [1] : vector<8x32xf32> to vector<8xf32>
    %5 = vector.shape_cast %4 : vector<8xf32> to vector<8x1xf32>
    %cst_5 = arith.constant 3.200000e+01 : f32
    %6 = vector.broadcast %cst_5 : f32 to vector<8x1xf32>
    %7 = arith.divf %5, %6 : vector<8x1xf32>
    %8 = vector.broadcast %7 : vector<8x1xf32> to vector<8x32xf32>
    %9 = arith.subf %1, %8 : vector<8x32xf32>
    %10 = arith.mulf %9, %9 : vector<8x32xf32>
    %cst_6 = arith.constant dense<0.000000e+00> : vector<8xf32>
    %11 = vector.multi_reduction <add>, %10, %cst_6 [1] : vector<8x32xf32> to vector<8xf32>
    %12 = vector.shape_cast %11 : vector<8xf32> to vector<8x1xf32>
    %cst_7 = arith.constant 3.200000e+01 : f32
    %13 = vector.broadcast %cst_7 : f32 to vector<8x1xf32>
    %14 = arith.divf %12, %13 : vector<8x1xf32>
    %15 = vector.broadcast %7 : vector<8x1xf32> to vector<8x32xf32>
    %16 = arith.subf %1, %15 : vector<8x32xf32>
    %cst_8 = arith.constant 9.99999974E-6 : f32
    %17 = vector.broadcast %cst_8 : f32 to vector<8x1xf32>
    %18 = arith.addf %14, %17 : vector<8x1xf32>
    %19 = math.rsqrt %18 : vector<8x1xf32>
    %20 = vector.broadcast %19 : vector<8x1xf32> to vector<8x32xf32>
    %21 = arith.mulf %16, %20 : vector<8x32xf32>
    %c0_9 = arith.constant 0 : index
    %c0_10 = arith.constant 0 : index
    %22 = vector.load %arg3[%c0_9, %c0_10] : memref<1x32xf32, #tpu.memory_space<vmem>>, vector<1x32xf32>
    %23 = vector.shape_cast %22 : vector<1x32xf32> to vector<32xf32>
    %24 = vector.shape_cast %23 : vector<32xf32> to vector<1x32xf32>
    %25 = vector.broadcast %24 : vector<1x32xf32> to vector<8x32xf32>
    %26 = arith.mulf %21, %25 : vector<8x32xf32>
    %c0_11 = arith.constant 0 : index
    %c0_12 = arith.constant 0 : index
    %27 = vector.load %arg4[%c0_11, %c0_12] : memref<1x32xf32, #tpu.memory_space<vmem>>, vector<1x32xf32>
    %28 = vector.shape_cast %27 : vector<1x32xf32> to vector<32xf32>
    %29 = vector.shape_cast %28 : vector<32xf32> to vector<1x32xf32>
    %30 = vector.broadcast %29 : vector<1x32xf32> to vector<8x32xf32>
    %31 = arith.addf %26, %30 : vector<8x32xf32>
    %cst_13 = arith.constant 8.000000e+00 : f32
    %32 = math.sqrt %cst_13 : f32
    %cst_14 = arith.constant 1.000000e+00 : f32
    %33 = arith.divf %cst_14, %32 : f32
    %cst_15 = arith.constant 0.000000e+00 : f32
    %34 = vector.broadcast %cst_15 : f32 to vector<1x8x8xf32>
    %c0_16 = arith.constant 0 : index
    %c0_17 = arith.constant 0 : index
    %c0_18 = arith.constant 0 : index
    %35 = vector.load %arg5[%c0_16, %c0_17, %c0_18] : memref<4x32x8xf32, #tpu.memory_space<vmem>>, vector<1x32x8xf32>
    %36 = vector.shape_cast %35 : vector<1x32x8xf32> to vector<32x8xf32>
    %cst_19 = arith.constant dense<0.000000e+00> : vector<8x8xf32>
    %37 = tpu.matmul %31, %36, %cst_19 {dimension_numbers = #tpu.dot_dimension_numbers<[1], [0], [0], [1], [0, 0, 1, 1], [], []>} : vector<8x32xf32>, vector<32x8xf32>, vector<8x8xf32> -> vector<8x8xf32>
    %c0_20 = arith.constant 0 : index
    %c0_21 = arith.constant 0 : index
    %c0_22 = arith.constant 0 : index
    %38 = vector.load %arg9[%c0_20, %c0_21, %c0_22] : memref<4x1x8xf32, #tpu.memory_space<vmem>>, vector<1x1x8xf32>
    %39 = vector.shape_cast %38 : vector<1x1x8xf32> to vector<1x8xf32>
    %40 = vector.broadcast %39 : vector<1x8xf32> to vector<8x8xf32>
    %41 = arith.addf %37, %40 : vector<8x8xf32>
    %42 = vector.shape_cast %41 : vector<8x8xf32> to vector<1x8x8xf32>
    %c0_23 = arith.constant 0 : index
    %c0_24 = arith.constant 0 : index
    %c0_25 = arith.constant 0 : index
    %43 = vector.load %arg6[%c0_23, %c0_24, %c0_25] : memref<4x32x8xf32, #tpu.memory_space<vmem>>, vector<1x32x8xf32>
    %44 = vector.shape_cast %43 : vector<1x32x8xf32> to vector<32x8xf32>
    %cst_26 = arith.constant dense<0.000000e+00> : vector<8x8xf32>
    %45 = tpu.matmul %3, %44, %cst_26 {dimension_numbers = #tpu.dot_dimension_numbers<[1], [0], [0], [1], [0, 0, 1, 1], [], []>} : vector<8x32xf32>, vector<32x8xf32>, vector<8x8xf32> -> vector<8x8xf32>
    %c0_27 = arith.constant 0 : index
    %c0_28 = arith.constant 0 : index
    %c0_29 = arith.constant 0 : index
    %46 = vector.load %arg10[%c0_27, %c0_28, %c0_29] : memref<4x1x8xf32, #tpu.memory_space<vmem>>, vector<1x1x8xf32>
    %47 = vector.shape_cast %46 : vector<1x1x8xf32> to vector<1x8xf32>
    %48 = vector.broadcast %47 : vector<1x8xf32> to vector<8x8xf32>
    %49 = arith.addf %45, %48 : vector<8x8xf32>
    %50 = vector.shape_cast %49 : vector<8x8xf32> to vector<1x8x8xf32>
    %c0_30 = arith.constant 0 : index
    %c0_31 = arith.constant 0 : index
    %c0_32 = arith.constant 0 : index
    %51 = vector.load %arg7[%c0_30, %c0_31, %c0_32] : memref<4x32x8xf32, #tpu.memory_space<vmem>>, vector<1x32x8xf32>
    %52 = vector.shape_cast %51 : vector<1x32x8xf32> to vector<32x8xf32>
    %cst_33 = arith.constant dense<0.000000e+00> : vector<8x8xf32>
    %53 = tpu.matmul %3, %52, %cst_33 {dimension_numbers = #tpu.dot_dimension_numbers<[1], [0], [0], [1], [0, 0, 1, 1], [], []>} : vector<8x32xf32>, vector<32x8xf32>, vector<8x8xf32> -> vector<8x8xf32>
    %c0_34 = arith.constant 0 : index
    %c0_35 = arith.constant 0 : index
    %c0_36 = arith.constant 0 : index
    %54 = vector.load %arg11[%c0_34, %c0_35, %c0_36] : memref<4x1x8xf32, #tpu.memory_space<vmem>>, vector<1x1x8xf32>
    %55 = vector.shape_cast %54 : vector<1x1x8xf32> to vector<1x8xf32>
    %56 = vector.broadcast %55 : vector<1x8xf32> to vector<8x8xf32>
    %57 = arith.addf %53, %56 : vector<8x8xf32>
    %58 = vector.shape_cast %57 : vector<8x8xf32> to vector<1x8x8xf32>
    %59 = vector.broadcast %33 : f32 to vector<1x8x8xf32>
    %60 = arith.mulf %42, %59 : vector<1x8x8xf32>
    "tpu.trace_start"() <{level = 10 : i32, message = "bqd,bkd->bqk"}> : () -> ()
    %cst_37 = arith.constant dense<0.000000e+00> : vector<1x8x8xf32>
    %61 = tpu.matmul %60, %50, %cst_37 {dimension_numbers = #tpu.dot_dimension_numbers<[2], [2], [1], [1], [0, 0, 0, 1, 1, 1], [0], [0]>} : vector<1x8x8xf32>, vector<1x8x8xf32>, vector<1x8x8xf32> -> vector<1x8x8xf32>
    "tpu.trace_stop"() : () -> ()
    %cst_38 = arith.constant dense<0xFF800000> : vector<1x8xf32>
    %62 = vector.multi_reduction <maximumf>, %61, %cst_38 [2] : vector<1x8x8xf32> to vector<1x8xf32>
    %63 = vector.shape_cast %62 : vector<1x8xf32> to vector<1x8x1xf32>
    %64 = vector.broadcast %63 : vector<1x8x1xf32> to vector<1x8x8xf32>
    %65 = arith.subf %61, %64 : vector<1x8x8xf32>
    %66 = math.exp %65 : vector<1x8x8xf32>
    %cst_39 = arith.constant dense<0.000000e+00> : vector<1x8xf32>
    %67 = vector.multi_reduction <add>, %66, %cst_39 [2] : vector<1x8x8xf32> to vector<1x8xf32>
    %68 = vector.shape_cast %67 : vector<1x8xf32> to vector<1x8x1xf32>
    %69 = tpu.reciprocal %68 : vector<1x8x1xf32> -> vector<1x8x1xf32>
    %70 = vector.broadcast %69 : vector<1x8x1xf32> to vector<1x8x8xf32>
    %71 = arith.mulf %66, %70 : vector<1x8x8xf32>
    %72 = arith.addf %34, %71 : vector<1x8x8xf32>
    "tpu.trace_start"() <{level = 10 : i32, message = "bqk,bkd->bqd"}> : () -> ()
    %cst_40 = arith.constant dense<0.000000e+00> : vector<1x8x8xf32>
    %73 = tpu.matmul %71, %58, %cst_40 {dimension_numbers = #tpu.dot_dimension_numbers<[2], [1], [1], [2], [0, 0, 0, 1, 1, 2], [0], [0]>} : vector<1x8x8xf32>, vector<1x8x8xf32>, vector<1x8x8xf32> -> vector<1x8x8xf32>
    "tpu.trace_stop"() : () -> ()
    %74 = vector.shape_cast %73 : vector<1x8x8xf32> to vector<8x8xf32>
    %c0_41 = arith.constant 0 : index
    %c0_42 = arith.constant 0 : index
    %75 = vector.load %arg15[%c0_41, %c0_42] : memref<8x32xf32, #tpu.memory_space<vmem>>, vector<8x8xf32>
    tpu.vector_store %arg15[%c0_41, %c0_42], %74 {strides = array<i32>} : memref<8x32xf32, #tpu.memory_space<vmem>>, vector<8x8xf32>,
    %c1 = arith.constant 1 : index
    %c0_43 = arith.constant 0 : index
    %c0_44 = arith.constant 0 : index
    %76 = vector.load %arg5[%c1, %c0_43, %c0_44] : memref<4x32x8xf32, #tpu.memory_space<vmem>>, vector<1x32x8xf32>
    %77 = vector.shape_cast %76 : vector<1x32x8xf32> to vector<32x8xf32>
    %cst_45 = arith.constant dense<0.000000e+00> : vector<8x8xf32>
    %78 = tpu.matmul %31, %77, %cst_45 {dimension_numbers = #tpu.dot_dimension_numbers<[1], [0], [0], [1], [0, 0, 1, 1], [], []>} : vector<8x32xf32>, vector<32x8xf32>, vector<8x8xf32> -> vector<8x8xf32>
    %c1_46 = arith.constant 1 : index
    %c0_47 = arith.constant 0 : index
    %c0_48 = arith.constant 0 : index
    %79 = vector.load %arg9[%c1_46, %c0_47, %c0_48] : memref<4x1x8xf32, #tpu.memory_space<vmem>>, vector<1x1x8xf32>
    %80 = vector.shape_cast %79 : vector<1x1x8xf32> to vector<1x8xf32>
    %81 = vector.broadcast %80 : vector<1x8xf32> to vector<8x8xf32>
    %82 = arith.addf %78, %81 : vector<8x8xf32>
    %83 = vector.shape_cast %82 : vector<8x8xf32> to vector<1x8x8xf32>
    %c1_49 = arith.constant 1 : index
    %c0_50 = arith.constant 0 : index
    %c0_51 = arith.constant 0 : index
    %84 = vector.load %arg6[%c1_49, %c0_50, %c0_51] : memref<4x32x8xf32, #tpu.memory_space<vmem>>, vector<1x32x8xf32>
    %85 = vector.shape_cast %84 : vector<1x32x8xf32> to vector<32x8xf32>
    %cst_52 = arith.constant dense<0.000000e+00> : vector<8x8xf32>
    %86 = tpu.matmul %3, %85, %cst_52 {dimension_numbers = #tpu.dot_dimension_numbers<[1], [0], [0], [1], [0, 0, 1, 1], [], []>} : vector<8x32xf32>, vector<32x8xf32>, vector<8x8xf32> -> vector<8x8xf32>
    %c1_53 = arith.constant 1 : index
    %c0_54 = arith.constant 0 : index
    %c0_55 = arith.constant 0 : index
    %87 = vector.load %arg10[%c1_53, %c0_54, %c0_55] : memref<4x1x8xf32, #tpu.memory_space<vmem>>, vector<1x1x8xf32>
    %88 = vector.shape_cast %87 : vector<1x1x8xf32> to vector<1x8xf32>
    %89 = vector.broadcast %88 : vector<1x8xf32> to vector<8x8xf32>
    %90 = arith.addf %86, %89 : vector<8x8xf32>
    %91 = vector.shape_cast %90 : vector<8x8xf32> to vector<1x8x8xf32>
    %c1_56 = arith.constant 1 : index
    %c0_57 = arith.constant 0 : index
    %c0_58 = arith.constant 0 : index
    %92 = vector.load %arg7[%c1_56, %c0_57, %c0_58] : memref<4x32x8xf32, #tpu.memory_space<vmem>>, vector<1x32x8xf32>
    %93 = vector.shape_cast %92 : vector<1x32x8xf32> to vector<32x8xf32>
    %cst_59 = arith.constant dense<0.000000e+00> : vector<8x8xf32>
    %94 = tpu.matmul %3, %93, %cst_59 {dimension_numbers = #tpu.dot_dimension_numbers<[1], [0], [0], [1], [0, 0, 1, 1], [], []>} : vector<8x32xf32>, vector<32x8xf32>, vector<8x8xf32> -> vector<8x8xf32>
    %c1_60 = arith.constant 1 : index
    %c0_61 = arith.constant 0 : index
    %c0_62 = arith.constant 0 : index
    %95 = vector.load %arg11[%c1_60, %c0_61, %c0_62] : memref<4x1x8xf32, #tpu.memory_space<vmem>>, vector<1x1x8xf32>
    %96 = vector.shape_cast %95 : vector<1x1x8xf32> to vector<1x8xf32>
    %97 = vector.broadcast %96 : vector<1x8xf32> to vector<8x8xf32>
    %98 = arith.addf %94, %97 : vector<8x8xf32>
    %99 = vector.shape_cast %98 : vector<8x8xf32> to vector<1x8x8xf32>
    %100 = vector.broadcast %33 : f32 to vector<1x8x8xf32>
    %101 = arith.mulf %83, %100 : vector<1x8x8xf32>
    "tpu.trace_start"() <{level = 10 : i32, message = "bqd,bkd->bqk"}> : () -> ()
    %cst_63 = arith.constant dense<0.000000e+00> : vector<1x8x8xf32>
    %102 = tpu.matmul %101, %91, %cst_63 {dimension_numbers = #tpu.dot_dimension_numbers<[2], [2], [1], [1], [0, 0, 0, 1, 1, 1], [0], [0]>} : vector<1x8x8xf32>, vector<1x8x8xf32>, vector<1x8x8xf32> -> vector<1x8x8xf32>
    "tpu.trace_stop"() : () -> ()
    %cst_64 = arith.constant dense<0xFF800000> : vector<1x8xf32>
    %103 = vector.multi_reduction <maximumf>, %102, %cst_64 [2] : vector<1x8x8xf32> to vector<1x8xf32>
    %104 = vector.shape_cast %103 : vector<1x8xf32> to vector<1x8x1xf32>
    %105 = vector.broadcast %104 : vector<1x8x1xf32> to vector<1x8x8xf32>
    %106 = arith.subf %102, %105 : vector<1x8x8xf32>
    %107 = math.exp %106 : vector<1x8x8xf32>
    %cst_65 = arith.constant dense<0.000000e+00> : vector<1x8xf32>
    %108 = vector.multi_reduction <add>, %107, %cst_65 [2] : vector<1x8x8xf32> to vector<1x8xf32>
    %109 = vector.shape_cast %108 : vector<1x8xf32> to vector<1x8x1xf32>
    %110 = tpu.reciprocal %109 : vector<1x8x1xf32> -> vector<1x8x1xf32>
    %111 = vector.broadcast %110 : vector<1x8x1xf32> to vector<1x8x8xf32>
    %112 = arith.mulf %107, %111 : vector<1x8x8xf32>
    %113 = arith.addf %72, %112 : vector<1x8x8xf32>
    "tpu.trace_start"() <{level = 10 : i32, message = "bqk,bkd->bqd"}> : () -> ()
    %cst_66 = arith.constant dense<0.000000e+00> : vector<1x8x8xf32>
    %114 = tpu.matmul %112, %99, %cst_66 {dimension_numbers = #tpu.dot_dimension_numbers<[2], [1], [1], [2], [0, 0, 0, 1, 1, 2], [0], [0]>} : vector<1x8x8xf32>, vector<1x8x8xf32>, vector<1x8x8xf32> -> vector<1x8x8xf32>
    "tpu.trace_stop"() : () -> ()
    %115 = vector.shape_cast %114 : vector<1x8x8xf32> to vector<8x8xf32>
    %c0_67 = arith.constant 0 : index
    %c8 = arith.constant 8 : index
    %116 = vector.load %arg15[%c0_67, %c8] : memref<8x32xf32, #tpu.memory_space<vmem>>, vector<8x8xf32>
    tpu.vector_store %arg15[%c0_67, %c8], %115 {strides = array<i32>} : memref<8x32xf32, #tpu.memory_space<vmem>>, vector<8x8xf32>,
    %c2 = arith.constant 2 : index
    %c0_68 = arith.constant 0 : index
    %c0_69 = arith.constant 0 : index
    %117 = vector.load %arg5[%c2, %c0_68, %c0_69] : memref<4x32x8xf32, #tpu.memory_space<vmem>>, vector<1x32x8xf32>
    %118 = vector.shape_cast %117 : vector<1x32x8xf32> to vector<32x8xf32>
    %cst_70 = arith.constant dense<0.000000e+00> : vector<8x8xf32>
    %119 = tpu.matmul %31, %118, %cst_70 {dimension_numbers = #tpu.dot_dimension_numbers<[1], [0], [0], [1], [0, 0, 1, 1], [], []>} : vector<8x32xf32>, vector<32x8xf32>, vector<8x8xf32> -> vector<8x8xf32>
    %c2_71 = arith.constant 2 : index
    %c0_72 = arith.constant 0 : index
    %c0_73 = arith.constant 0 : index
    %120 = vector.load %arg9[%c2_71, %c0_72, %c0_73] : memref<4x1x8xf32, #tpu.memory_space<vmem>>, vector<1x1x8xf32>
    %121 = vector.shape_cast %120 : vector<1x1x8xf32> to vector<1x8xf32>
    %122 = vector.broadcast %121 : vector<1x8xf32> to vector<8x8xf32>
    %123 = arith.addf %119, %122 : vector<8x8xf32>
    %124 = vector.shape_cast %123 : vector<8x8xf32> to vector<1x8x8xf32>
    %c2_74 = arith.constant 2 : index
    %c0_75 = arith.constant 0 : index
    %c0_76 = arith.constant 0 : index
    %125 = vector.load %arg6[%c2_74, %c0_75, %c0_76] : memref<4x32x8xf32, #tpu.memory_space<vmem>>, vector<1x32x8xf32>
    %126 = vector.shape_cast %125 : vector<1x32x8xf32> to vector<32x8xf32>
    %cst_77 = arith.constant dense<0.000000e+00> : vector<8x8xf32>
    %127 = tpu.matmul %3, %126, %cst_77 {dimension_numbers = #tpu.dot_dimension_numbers<[1], [0], [0], [1], [0, 0, 1, 1], [], []>} : vector<8x32xf32>, vector<32x8xf32>, vector<8x8xf32> -> vector<8x8xf32>
    %c2_78 = arith.constant 2 : index
    %c0_79 = arith.constant 0 : index
    %c0_80 = arith.constant 0 : index
    %128 = vector.load %arg10[%c2_78, %c0_79, %c0_80] : memref<4x1x8xf32, #tpu.memory_space<vmem>>, vector<1x1x8xf32>
    %129 = vector.shape_cast %128 : vector<1x1x8xf32> to vector<1x8xf32>
    %130 = vector.broadcast %129 : vector<1x8xf32> to vector<8x8xf32>
    %131 = arith.addf %127, %130 : vector<8x8xf32>
    %132 = vector.shape_cast %131 : vector<8x8xf32> to vector<1x8x8xf32>
    %c2_81 = arith.constant 2 : index
    %c0_82 = arith.constant 0 : index
    %c0_83 = arith.constant 0 : index
    %133 = vector.load %arg7[%c2_81, %c0_82, %c0_83] : memref<4x32x8xf32, #tpu.memory_space<vmem>>, vector<1x32x8xf32>
    %134 = vector.shape_cast %133 : vector<1x32x8xf32> to vector<32x8xf32>
    %cst_84 = arith.constant dense<0.000000e+00> : vector<8x8xf32>
    %135 = tpu.matmul %3, %134, %cst_84 {dimension_numbers = #tpu.dot_dimension_numbers<[1], [0], [0], [1], [0, 0, 1, 1], [], []>} : vector<8x32xf32>, vector<32x8xf32>, vector<8x8xf32> -> vector<8x8xf32>
    %c2_85 = arith.constant 2 : index
    %c0_86 = arith.constant 0 : index
    %c0_87 = arith.constant 0 : index
    %136 = vector.load %arg11[%c2_85, %c0_86, %c0_87] : memref<4x1x8xf32, #tpu.memory_space<vmem>>, vector<1x1x8xf32>
    %137 = vector.shape_cast %136 : vector<1x1x8xf32> to vector<1x8xf32>
    %138 = vector.broadcast %137 : vector<1x8xf32> to vector<8x8xf32>
    %139 = arith.addf %135, %138 : vector<8x8xf32>
    %140 = vector.shape_cast %139 : vector<8x8xf32> to vector<1x8x8xf32>
    %141 = vector.broadcast %33 : f32 to vector<1x8x8xf32>
    %142 = arith.mulf %124, %141 : vector<1x8x8xf32>
    "tpu.trace_start"() <{level = 10 : i32, message = "bqd,bkd->bqk"}> : () -> ()
    %cst_88 = arith.constant dense<0.000000e+00> : vector<1x8x8xf32>
    %143 = tpu.matmul %142, %132, %cst_88 {dimension_numbers = #tpu.dot_dimension_numbers<[2], [2], [1], [1], [0, 0, 0, 1, 1, 1], [0], [0]>} : vector<1x8x8xf32>, vector<1x8x8xf32>, vector<1x8x8xf32> -> vector<1x8x8xf32>
    "tpu.trace_stop"() : () -> ()
    %cst_89 = arith.constant dense<0xFF800000> : vector<1x8xf32>
    %144 = vector.multi_reduction <maximumf>, %143, %cst_89 [2] : vector<1x8x8xf32> to vector<1x8xf32>
    %145 = vector.shape_cast %144 : vector<1x8xf32> to vector<1x8x1xf32>
    %146 = vector.broadcast %145 : vector<1x8x1xf32> to vector<1x8x8xf32>
    %147 = arith.subf %143, %146 : vector<1x8x8xf32>
    %148 = math.exp %147 : vector<1x8x8xf32>
    %cst_90 = arith.constant dense<0.000000e+00> : vector<1x8xf32>
    %149 = vector.multi_reduction <add>, %148, %cst_90 [2] : vector<1x8x8xf32> to vector<1x8xf32>
    %150 = vector.shape_cast %149 : vector<1x8xf32> to vector<1x8x1xf32>
    %151 = tpu.reciprocal %150 : vector<1x8x1xf32> -> vector<1x8x1xf32>
    %152 = vector.broadcast %151 : vector<1x8x1xf32> to vector<1x8x8xf32>
    %153 = arith.mulf %148, %152 : vector<1x8x8xf32>
    %154 = arith.addf %113, %153 : vector<1x8x8xf32>
    "tpu.trace_start"() <{level = 10 : i32, message = "bqk,bkd->bqd"}> : () -> ()
    %cst_91 = arith.constant dense<0.000000e+00> : vector<1x8x8xf32>
    %155 = tpu.matmul %153, %140, %cst_91 {dimension_numbers = #tpu.dot_dimension_numbers<[2], [1], [1], [2], [0, 0, 0, 1, 1, 2], [0], [0]>} : vector<1x8x8xf32>, vector<1x8x8xf32>, vector<1x8x8xf32> -> vector<1x8x8xf32>
    "tpu.trace_stop"() : () -> ()
    %156 = vector.shape_cast %155 : vector<1x8x8xf32> to vector<8x8xf32>
    %c0_92 = arith.constant 0 : index
    %c16 = arith.constant 16 : index
    %157 = vector.load %arg15[%c0_92, %c16] : memref<8x32xf32, #tpu.memory_space<vmem>>, vector<8x8xf32>
    tpu.vector_store %arg15[%c0_92, %c16], %156 {strides = array<i32>} : memref<8x32xf32, #tpu.memory_space<vmem>>, vector<8x8xf32>,
    %c3 = arith.constant 3 : index
    %c0_93 = arith.constant 0 : index
    %c0_94 = arith.constant 0 : index
    %158 = vector.load %arg5[%c3, %c0_93, %c0_94] : memref<4x32x8xf32, #tpu.memory_space<vmem>>, vector<1x32x8xf32>
    %159 = vector.shape_cast %158 : vector<1x32x8xf32> to vector<32x8xf32>
    %cst_95 = arith.constant dense<0.000000e+00> : vector<8x8xf32>
    %160 = tpu.matmul %31, %159, %cst_95 {dimension_numbers = #tpu.dot_dimension_numbers<[1], [0], [0], [1], [0, 0, 1, 1], [], []>} : vector<8x32xf32>, vector<32x8xf32>, vector<8x8xf32> -> vector<8x8xf32>
    %c3_96 = arith.constant 3 : index
    %c0_97 = arith.constant 0 : index
    %c0_98 = arith.constant 0 : index
    %161 = vector.load %arg9[%c3_96, %c0_97, %c0_98] : memref<4x1x8xf32, #tpu.memory_space<vmem>>, vector<1x1x8xf32>
    %162 = vector.shape_cast %161 : vector<1x1x8xf32> to vector<1x8xf32>
    %163 = vector.broadcast %162 : vector<1x8xf32> to vector<8x8xf32>
    %164 = arith.addf %160, %163 : vector<8x8xf32>
    %165 = vector.shape_cast %164 : vector<8x8xf32> to vector<1x8x8xf32>
    %c3_99 = arith.constant 3 : index
    %c0_100 = arith.constant 0 : index
    %c0_101 = arith.constant 0 : index
    %166 = vector.load %arg6[%c3_99, %c0_100, %c0_101] : memref<4x32x8xf32, #tpu.memory_space<vmem>>, vector<1x32x8xf32>
    %167 = vector.shape_cast %166 : vector<1x32x8xf32> to vector<32x8xf32>
    %cst_102 = arith.constant dense<0.000000e+00> : vector<8x8xf32>
    %168 = tpu.matmul %3, %167, %cst_102 {dimension_numbers = #tpu.dot_dimension_numbers<[1], [0], [0], [1], [0, 0, 1, 1], [], []>} : vector<8x32xf32>, vector<32x8xf32>, vector<8x8xf32> -> vector<8x8xf32>
    %c3_103 = arith.constant 3 : index
    %c0_104 = arith.constant 0 : index
    %c0_105 = arith.constant 0 : index
    %169 = vector.load %arg10[%c3_103, %c0_104, %c0_105] : memref<4x1x8xf32, #tpu.memory_space<vmem>>, vector<1x1x8xf32>
    %170 = vector.shape_cast %169 : vector<1x1x8xf32> to vector<1x8xf32>
    %171 = vector.broadcast %170 : vector<1x8xf32> to vector<8x8xf32>
    %172 = arith.addf %168, %171 : vector<8x8xf32>
    %173 = vector.shape_cast %172 : vector<8x8xf32> to vector<1x8x8xf32>
    %c3_106 = arith.constant 3 : index
    %c0_107 = arith.constant 0 : index
    %c0_108 = arith.constant 0 : index
    %174 = vector.load %arg7[%c3_106, %c0_107, %c0_108] : memref<4x32x8xf32, #tpu.memory_space<vmem>>, vector<1x32x8xf32>
    %175 = vector.shape_cast %174 : vector<1x32x8xf32> to vector<32x8xf32>
    %cst_109 = arith.constant dense<0.000000e+00> : vector<8x8xf32>
    %176 = tpu.matmul %3, %175, %cst_109 {dimension_numbers = #tpu.dot_dimension_numbers<[1], [0], [0], [1], [0, 0, 1, 1], [], []>} : vector<8x32xf32>, vector<32x8xf32>, vector<8x8xf32> -> vector<8x8xf32>
    %c3_110 = arith.constant 3 : index
    %c0_111 = arith.constant 0 : index
    %c0_112 = arith.constant 0 : index
    %177 = vector.load %arg11[%c3_110, %c0_111, %c0_112] : memref<4x1x8xf32, #tpu.memory_space<vmem>>, vector<1x1x8xf32>
    %178 = vector.shape_cast %177 : vector<1x1x8xf32> to vector<1x8xf32>
    %179 = vector.broadcast %178 : vector<1x8xf32> to vector<8x8xf32>
    %180 = arith.addf %176, %179 : vector<8x8xf32>
    %181 = vector.shape_cast %180 : vector<8x8xf32> to vector<1x8x8xf32>
    %182 = vector.broadcast %33 : f32 to vector<1x8x8xf32>
    %183 = arith.mulf %165, %182 : vector<1x8x8xf32>
    "tpu.trace_start"() <{level = 10 : i32, message = "bqd,bkd->bqk"}> : () -> ()
    %cst_113 = arith.constant dense<0.000000e+00> : vector<1x8x8xf32>
    %184 = tpu.matmul %183, %173, %cst_113 {dimension_numbers = #tpu.dot_dimension_numbers<[2], [2], [1], [1], [0, 0, 0, 1, 1, 1], [0], [0]>} : vector<1x8x8xf32>, vector<1x8x8xf32>, vector<1x8x8xf32> -> vector<1x8x8xf32>
    "tpu.trace_stop"() : () -> ()
    %cst_114 = arith.constant dense<0xFF800000> : vector<1x8xf32>
    %185 = vector.multi_reduction <maximumf>, %184, %cst_114 [2] : vector<1x8x8xf32> to vector<1x8xf32>
    %186 = vector.shape_cast %185 : vector<1x8xf32> to vector<1x8x1xf32>
    %187 = vector.broadcast %186 : vector<1x8x1xf32> to vector<1x8x8xf32>
    %188 = arith.subf %184, %187 : vector<1x8x8xf32>
    %189 = math.exp %188 : vector<1x8x8xf32>
    %cst_115 = arith.constant dense<0.000000e+00> : vector<1x8xf32>
    %190 = vector.multi_reduction <add>, %189, %cst_115 [2] : vector<1x8x8xf32> to vector<1x8xf32>
    %191 = vector.shape_cast %190 : vector<1x8xf32> to vector<1x8x1xf32>
    %192 = tpu.reciprocal %191 : vector<1x8x1xf32> -> vector<1x8x1xf32>
    %193 = vector.broadcast %192 : vector<1x8x1xf32> to vector<1x8x8xf32>
    %194 = arith.mulf %189, %193 : vector<1x8x8xf32>
    %195 = arith.addf %154, %194 : vector<1x8x8xf32>
    "tpu.trace_start"() <{level = 10 : i32, message = "bqk,bkd->bqd"}> : () -> ()
    %cst_116 = arith.constant dense<0.000000e+00> : vector<1x8x8xf32>
    %196 = tpu.matmul %194, %181, %cst_116 {dimension_numbers = #tpu.dot_dimension_numbers<[2], [1], [1], [2], [0, 0, 0, 1, 1, 2], [0], [0]>} : vector<1x8x8xf32>, vector<1x8x8xf32>, vector<1x8x8xf32> -> vector<1x8x8xf32>
    "tpu.trace_stop"() : () -> ()
    %197 = vector.shape_cast %196 : vector<1x8x8xf32> to vector<8x8xf32>
    %c0_117 = arith.constant 0 : index
    %c24 = arith.constant 24 : index
    %198 = vector.load %arg15[%c0_117, %c24] : memref<8x32xf32, #tpu.memory_space<vmem>>, vector<8x8xf32>
    tpu.vector_store %arg15[%c0_117, %c24], %197 {strides = array<i32>} : memref<8x32xf32, #tpu.memory_space<vmem>>, vector<8x8xf32>,
    %c0_118 = arith.constant 0 : index
    %c0_119 = arith.constant 0 : index
    %199 = vector.load %arg15[%c0_118, %c0_119] : memref<8x32xf32, #tpu.memory_space<vmem>>, vector<8x32xf32>
    %c0_120 = arith.constant 0 : index
    %c0_121 = arith.constant 0 : index
    %200 = vector.load %arg8[%c0_120, %c0_121] : memref<32x32xf32, #tpu.memory_space<vmem>>, vector<32x32xf32>
    %cst_122 = arith.constant dense<0.000000e+00> : vector<8x32xf32>
    %201 = tpu.matmul %199, %200, %cst_122 {dimension_numbers = #tpu.dot_dimension_numbers<[1], [0], [0], [1], [0, 0, 1, 1], [], []>} : vector<8x32xf32>, vector<32x32xf32>, vector<8x32xf32> -> vector<8x32xf32>
    %c0_123 = arith.constant 0 : index
    %c0_124 = arith.constant 0 : index
    %202 = vector.load %arg12[%c0_123, %c0_124] : memref<1x32xf32, #tpu.memory_space<vmem>>, vector<1x32xf32>
    %203 = vector.shape_cast %202 : vector<1x32xf32> to vector<32xf32>
    %204 = vector.shape_cast %203 : vector<32xf32> to vector<1x32xf32>
    %205 = vector.broadcast %204 : vector<1x32xf32> to vector<8x32xf32>
    %206 = arith.addf %201, %205 : vector<8x32xf32>
    %207 = arith.addf %206, %1 : vector<8x32xf32>
    %208 = vector.shape_cast %207 : vector<8x32xf32> to vector<1x8x32xf32>
    %c0_125 = arith.constant 0 : index
    %c0_126 = arith.constant 0 : index
    %c0_127 = arith.constant 0 : index
    %209 = vector.load %arg13[%c0_125, %c0_126, %c0_127] : memref<1x8x32xf32, #tpu.memory_space<vmem>>, vector<1x8x32xf32>
    tpu.vector_store %arg13[%c0_125, %c0_126, %c0_127], %208 {strides = array<i32>} : memref<1x8x32xf32, #tpu.memory_space<vmem>>, vector<1x8x32xf32>,
    %cst_128 = arith.constant 2.500000e-01 : f32
    %210 = vector.broadcast %cst_128 : f32 to vector<1x8x8xf32>
    %211 = arith.mulf %195, %210 : vector<1x8x8xf32>
    %c0_129 = arith.constant 0 : index
    %c0_130 = arith.constant 0 : index
    %c0_131 = arith.constant 0 : index
    %212 = vector.load %arg14[%c0_129, %c0_130, %c0_131] : memref<1x8x8xf32, #tpu.memory_space<vmem>>, vector<1x8x8xf32>
    tpu.vector_store %arg14[%c0_129, %c0_130, %c0_131], %211 {strides = array<i32>} : memref<1x8x8xf32, #tpu.memory_space<vmem>>, vector<1x8x8xf32>,
    return
  }
  func.func @transform_0(%arg0: i32) -> (i32, i32, i32) {
    %c0_i32 = arith.constant 0 : i32
    %c0_i32_0 = arith.constant 0 : i32
    %c0_i32_1 = arith.constant 0 : i32
    return %arg0, %c0_i32, %c0_i32_0 : i32, i32, i32
  }
  func.func @transform_1(%arg0: i32) -> (i32, i32, i32) {
    %c0_i32 = arith.constant 0 : i32
    %c0_i32_0 = arith.constant 0 : i32
    %c0_i32_1 = arith.constant 0 : i32
    return %arg0, %c0_i32, %c0_i32_0 : i32, i32, i32
  }
  func.func @transform_2(%arg0: i32) -> (i32, i32) {
    %c0_i32 = arith.constant 0 : i32
    %c0_i32_0 = arith.constant 0 : i32
    %c0_i32_1 = arith.constant 0 : i32
    return %c0_i32, %c0_i32_0 : i32, i32
  }
  func.func @transform_3(%arg0: i32) -> (i32, i32) {
    %c0_i32 = arith.constant 0 : i32
    %c0_i32_0 = arith.constant 0 : i32
    %c0_i32_1 = arith.constant 0 : i32
    return %c0_i32, %c0_i32_0 : i32, i32
  }
  func.func @transform_4(%arg0: i32) -> (i32, i32, i32) {
    %c0_i32 = arith.constant 0 : i32
    %c0_i32_0 = arith.constant 0 : i32
    %c0_i32_1 = arith.constant 0 : i32
    %c0_i32_2 = arith.constant 0 : i32
    return %c0_i32, %c0_i32_0, %c0_i32_1 : i32, i32, i32
  }
  func.func @transform_5(%arg0: i32) -> (i32, i32, i32) {
    %c0_i32 = arith.constant 0 : i32
    %c0_i32_0 = arith.constant 0 : i32
    %c0_i32_1 = arith.constant 0 : i32
    %c0_i32_2 = arith.constant 0 : i32
    return %c0_i32, %c0_i32_0, %c0_i32_1 : i32, i32, i32
  }
  func.func @transform_6(%arg0: i32) -> (i32, i32, i32) {
    %c0_i32 = arith.constant 0 : i32
    %c0_i32_0 = arith.constant 0 : i32
    %c0_i32_1 = arith.constant 0 : i32
    %c0_i32_2 = arith.constant 0 : i32
    return %c0_i32, %c0_i32_0, %c0_i32_1 : i32, i32, i32
  }
  func.func @transform_7(%arg0: i32) -> (i32, i32) {
    %c0_i32 = arith.constant 0 : i32
    %c0_i32_0 = arith.constant 0 : i32
    %c0_i32_1 = arith.constant 0 : i32
    return %c0_i32, %c0_i32_0 : i32, i32
  }
  func.func @transform_8(%arg0: i32) -> (i32, i32, i32) {
    %c0_i32 = arith.constant 0 : i32
    %c0_i32_0 = arith.constant 0 : i32
    %c0_i32_1 = arith.constant 0 : i32
    %c0_i32_2 = arith.constant 0 : i32
    return %c0_i32, %c0_i32_0, %c0_i32_1 : i32, i32, i32
  }
  func.func @transform_9(%arg0: i32) -> (i32, i32, i32) {
    %c0_i32 = arith.constant 0 : i32
    %c0_i32_0 = arith.constant 0 : i32
    %c0_i32_1 = arith.constant 0 : i32
    %c0_i32_2 = arith.constant 0 : i32
    return %c0_i32, %c0_i32_0, %c0_i32_1 : i32, i32, i32
  }
  func.func @transform_10(%arg0: i32) -> (i32, i32, i32) {
    %c0_i32 = arith.constant 0 : i32
    %c0_i32_0 = arith.constant 0 : i32
    %c0_i32_1 = arith.constant 0 : i32
    %c0_i32_2 = arith.constant 0 : i32
    return %c0_i32, %c0_i32_0, %c0_i32_1 : i32, i32, i32
  }
  func.func @transform_11(%arg0: i32) -> (i32, i32) {
    %c0_i32 = arith.constant 0 : i32
    %c0_i32_0 = arith.constant 0 : i32
    %c0_i32_1 = arith.constant 0 : i32
    return %c0_i32, %c0_i32_0 : i32, i32
  }
  func.func @transform_12(%arg0: i32) -> (i32, i32, i32) {
    %c0_i32 = arith.constant 0 : i32
    %c0_i32_0 = arith.constant 0 : i32
    %c0_i32_1 = arith.constant 0 : i32
    return %arg0, %c0_i32, %c0_i32_0 : i32, i32, i32
  }
  func.func @transform_13(%arg0: i32) -> (i32, i32, i32) {
    %c0_i32 = arith.constant 0 : i32
    %c0_i32_0 = arith.constant 0 : i32
    %c0_i32_1 = arith.constant 0 : i32
    return %arg0, %c0_i32, %c0_i32_0 : i32, i32, i32
  }
}

</mosaic_0001>

<bundles_post_ra>
// kernel: tpu_custom_call.1
= control target key start
LH: loop header
LB: loop body
LE: loop exit
PB: predicated region body
PF: predicated region fallthrough
CT: control target
= control target key end

     0   :  { %s3568_s0 = inlined_call_operand.vmem [shape: f32[2,8,32], index: 0, kind: input, shape index: {}]   ;;  %s3569_s1 = inlined_call_operand.vmem [shape: f32[2,8,32], index: 1, kind: input, shape index: {}]   ;;  %s3570_s2 = inlined_call_operand.vmem [shape: f32[1,32], index: 2, kind: input, shape index: {}]   ;;  %s3571_s3 = inlined_call_operand.vmem [shape: f32[1,32], index: 3, kind: input, shape index: {}]   ;;  %s3572_s4 = inlined_call_operand.vmem [shape: f32[4,32,8], index: 4, kind: input, shape index: {}]   ;;  %s3573_s5 = inlined_call_operand.vmem [shape: f32[4,32,8], index: 5, kind: input, shape index: {}]   ;;  %s3574_s6 = inlined_call_operand.vmem [shape: f32[4,32,8], index: 6, kind: input, shape index: {}]   ;;  %s3575_s7 = inlined_call_operand.vmem [shape: f32[32,32], index: 7, kind: input, shape index: {}]   ;;  %s3576_s8 = inlined_call_operand.vmem [shape: f32[4,1,8], index: 8, kind: input, shape index: {}]   ;;  %s3577_s9 = inlined_call_operand.vmem [shape: f32[4,1,8], index: 9, kind: input, shape index: {}]   ;;  %s3578_s10 = inlined_call_operand.vmem [shape: f32[4,1,8], index: 10, kind: input, shape index: {}]   ;;  %s3579_s11 = inlined_call_operand.vmem [shape: f32[1,32], index: 11, kind: input, shape index: {}]   ;;  %s3580_s12 = inlined_call_operand.hbm [shape: f32[2,8,32], index: 12, kind: output, shape index: {0}]   ;;  %s3581_s13 = inlined_call_operand.hbm [shape: f32[2,8,8], index: 13, kind: output, shape index: {1}]  }
   0x1   :  { %3586 = sst [smem:[#allocation11_spill]] %s3568_s0 }
   0x2   :  { %3587 = sst [smem:[#allocation12_spill]] %s3569_s1 }
   0x3   :  { %3588 = sst [smem:[#allocation13_spill]] %s3570_s2 }
   0x4   :  { %19 = vsyncpa [#allocation4], 0 }
   0x5   :  { %21 = vsyncpa [#allocation4 + $0x1], 0 }
   0x6   :  { %22 = vsyncpa [#allocation6], 0 }
   0x7   :  { %24 = vsyncpa [#allocation6 + $0x1], 0  ;;  %s3068_s25 = smov 0   ;;  %s3070_s26 = smov 0  }
   0x8   :  { %s3072_s27 = smov 0   ;;  %s3074_s28 = smov 0  }
   0x9 LB: > { %3589 = sst [smem:[#allocation9_spill]] %s2984_s27  ;;  %s3089_s29 = sadd.s32 4294967295, %s2988_s28   ;;  %s2988_s28 = sphi %s3074_s28, %s3603_s28   ;;  %s2984_s27 = sphi %s3072_s27, %s3600_s27   ;;  %s2980_s26 = sphi %s3070_s26, %s3602_s26   ;;  %s2976_s25 = sphi %s3068_s25, %s3601_s25  }
   0xa   : > { %s2385_s30 = sadd.s32 4294967294, %s2988_s28   ;;  %s3093_s14 = sadd.s32 1, %s2988_s28  }
   0xb   : > { %s299_s15 = sadd.s32 1, %s2984_s27  ;;  %s296_s16 = ssub.s32 %s2988_s28, %s3093_s14 }
   0xc   : > { %p309_p0 = scmp.ne.s32.totalorder %s2984_s27, %s2980_s26  ;;  %p297_p1 = scmp.eq.s32.totalorder %s296_s16, 0 }
   0xd   : > { %p310_p2 = scmp.eq.s32.totalorder %s3089_s29, 1  ;;  %p315_p3 = scmp.ne.s32.totalorder %s2980_s26, %s2976_s25 }
   0xe   : > { %p316_p4 = scmp.eq.s32.totalorder %s2385_s30, 1  ;;  %p2388_p7 = scmp.ge.s32.totalorder %s2988_s28, 1 }
   0xf   : > { %s3104_s17 = scalar_select %p297_p1, %s2984_s27, %s299_s15  }
  0x10   : > { %p3106_p5 = por %p310_p2, %p309_p0  ;;  %p3110_p6 = por %p316_p4, %p315_p3 }
  0x11   : > { %3590 = sst [smem:[#allocation10_spill]] %s3104_s17  ;;  %p404_p8 = scmp.lt.s32.totalorder %s2988_s28, 3 }
  0x13   : > { %p405_p9 = pnand %p2388_p7, %p404_p8 }
  0x14   : > { %p456_p10 = scmp.lt.s32.totalorder (!%p405_p9), %s3089_s29, 1  ;;  %vm466_vm0 = vcmask (!%p405_p9), 261120   ;;  %s3593_s0 = sld [smem:[#allocation11_spill]] (!%p405_p9)  ;;  %v581_v7 = vld [vmem:[%s3573_s5] sm:$0xff] (!%p405_p9)  ;;  %v582_v8 = vld [vmem:[%s3573_s5 + $0x8] sm:$0xff] (!%p405_p9)  ;;  %v2990_v10 = vmov (!%p405_p9), 0.0|0.0  }
  0x15   : > { %408 = sbr.rel (%p405_p9) target bundleno = 3906 (0xf42), region = 68  ;;  %v497_v9 = vld [vmem:[%s3572_s4] sm:$0xff] (!%p405_p9)  ;;  %2754 = vmatprep.subr.bf16.mxu1 (!%p405_p9), %v2990_v10  ;;  %2748 = vmatprep.subr.bf16.mxu0 (!%p405_p9), %v2990_v10  ;;  %v2755_v11 = vpack.c.bf16 (!%p405_p9), %v582_v8, %v581_v7  ;;  %v498_v12 = vld [vmem:[%s3572_s4 + $0x8] sm:$0xff] (!%p405_p9)  ;;  %v583_v13 = vld [vmem:[%s3573_s5 + $0x10] sm:$0xff] (!%p405_p9)  ;;  %vm2991_vm1 = vmmov (!%p405_p9), 0   ;;  %v2992_v18 = vmov (!%p405_p9), 0.0  }
  0x16   : > { %v584_v14 = vld [vmem:[%s3573_s5 + $0x18] sm:$0xff] (!%p405_p9)  ;;  %v2749_v15 = vpack.c.bf16 (!%p405_p9), %v498_v12, %v497_v9  ;;  %v499_v16 = vld [vmem:[%s3572_s4 + $0x10] sm:$0xff] (!%p405_p9)  ;;  %2584 = vmatprep.mubr.msk.f32.mxu1 (!%p405_p9), %vm2991_vm1, %v2992_v18  ;;  %2573 = vmatprep.mubr.msk.f32.mxu0 (!%p405_p9), %vm2991_vm1, %v2992_v18  ;;  %s3595_s1 = sld [smem:[#allocation12_spill]] (!%p405_p9)  ;;  %s3596_s2 = sld [smem:[#allocation13_spill]] (!%p405_p9)  ;;  %v665_v28 = vld [vmem:[%s3574_s6] sm:$0xff] (!%p405_p9)  ;;  %vm747_vm2 = vcmask (!%p405_p9), 64512  }
  0x17   : > { %v500_v17 = vld [vmem:[%s3572_s4 + $0x18] sm:$0xff] (!%p405_p9)  ;;  %2756 = vmatpush3.bf16.msra.mxu1 (!%p405_p9), %v2755_v11  ;;  %v2758_v19 = vpack.c.bf16 (!%p405_p9), %v584_v14, %v583_v13  ;;  %v666_v29 = vld [vmem:[%s3574_s6 + $0x8] sm:$0xff] (!%p405_p9)  ;;  %v2394_v30 = vld [vmem:[%s3571_s3] ss:$0 sm:$0xff] (!%p405_p9)  ;;  %vm1325_vm3 = vcmask (!%p405_p9), 130112   ;;  %vm1742_vm4 = vcmask (!%p405_p9), 195712  }
  0x18   : > { %2750 = vmatpush3.bf16.msra.mxu0 (!%p405_p9), %v2749_v15  ;;  %2757 = vmatprep.subr.bf16.mxu1 (!%p405_p9), %v2990_v10  ;;  %v2752_v20 = vpack.c.bf16 (!%p405_p9), %v500_v17, %v499_v16  ;;  %v2761_v32 = vpack.c.bf16 (!%p405_p9), %v666_v29, %v665_v28  ;;  %v667_v34 = vld [vmem:[%s3574_s6 + $0x10] sm:$0xff] (!%p405_p9)  ;;  %v668_v35 = vld [vmem:[%s3574_s6 + $0x18] sm:$0xff] (!%p405_p9)  ;;  %v2404_v37 = vld [vmem:[%s3572_s4 + $0x20] sm:$0xff] (!%p405_p9)  ;;  %s3465_s27 = sand.u32 (!%p405_p9), 1, %s2980_s26   ;;  %s2995_s16 = smov (!%p405_p9), 24   ;;  %vm2159_vm5 = vcmask (!%p405_p9), 261312  }
  0x19   : > { %2751 = vmatprep.subr.bf16.mxu0 (!%p405_p9), %v2990_v10  ;;  %v2764_v36 = vpack.c.bf16 (!%p405_p9), %v668_v35, %v667_v34  ;;  %v2405_v38 = vld [vmem:[%s3572_s4 + $0x28] sm:$0xff] (!%p405_p9)  ;;  %v2406_v40 = vld [vmem:[%s3572_s4 + $0x30] sm:$0xff] (!%p405_p9)  ;;  %v2407_v41 = vld [vmem:[%s3572_s4 + $0x38] sm:$0xff] (!%p405_p9)  ;;  %s3584_s17 = sshll.u32 (!%p405_p9), %s3465_s27, 3  ;;  %s3585_s22 = sshll.u32 (!%p405_p9), %s3089_s29, 7 }
  0x1a   : > { %v2767_v39 = vpack.c.bf16 (!%p405_p9), %v2405_v38, %v2404_v37  ;;  %v2770_v42 = vpack.c.bf16 (!%p405_p9), %v2407_v41, %v2406_v40  ;;  %v2418_v43 = vld [vmem:[%s3574_s6 + $0x20] sm:$0xff] (!%p405_p9)  ;;  %v2419_v44 = vld [vmem:[%s3574_s6 + $0x28] sm:$0xff] (!%p405_p9)  ;;  %v2420_v46 = vld [vmem:[%s3574_s6 + $0x30] sm:$0xff] (!%p405_p9)  ;;  %s2256_s30 = scalar_lea.sflag (!%p405_p9), [#allocation6], %s3465_s27 }
  0x1b   : > { %2759 = vmatpush3.bf16.msra.mxu1 (!%p405_p9), %v2758_v19  ;;  %v2779_v45 = vpack.c.bf16 (!%p405_p9), %v2419_v44, %v2418_v43  ;;  %v2421_v47 = vld [vmem:[%s3574_s6 + $0x38] sm:$0xff] (!%p405_p9)  ;;  %v2428_v49 = vld [vmem:[%s3572_s4 + $0x40] sm:$0xff] (!%p405_p9)  ;;  %v2429_v50 = vld [vmem:[%s3572_s4 + $0x48] sm:$0xff] (!%p405_p9) }
  0x1c   : > { %s3118_s20 = scalar_select %p456_p10, %s3089_s29, 1  ;;  %2753 = vmatpush3.bf16.msra.mxu0 %v2752_v20  ;;  %2598 = vmatprep.subr.mxu1 %v2992_v18  ;;  %v2393_v26 = vld [vmem:[%s3596_s2] ss:$0 sm:$0xff]  ;;  %v2782_v48 = vpack.c.bf16 %v2421_v47, %v2420_v46  ;;  %v2785_v51 = vpack.c.bf16 %v2429_v50, %v2428_v49  ;;  %v2430_v52 = vld [vmem:[%s3572_s4 + $0x50] sm:$0xff]  ;;  %v2431_v53 = vld [vmem:[%s3572_s4 + $0x58] sm:$0xff] }
  0x1d   : > { %2760 = vmatprep.subr.bf16.mxu0 %v2990_v10  ;;  %v2788_v54 = vpack.c.bf16 %v2431_v53, %v2430_v52  ;;  %v2442_v55 = vld [vmem:[%s3574_s6 + $0x40] sm:$0xff]  ;;  %v2443_v56 = vld [vmem:[%s3574_s6 + $0x48] sm:$0xff]  ;;  %v2444_v58 = vld [vmem:[%s3574_s6 + $0x50] sm:$0xff] }
  0x1e   : > { %s3582_s21 = sshll.u32 %s3118_s20, 3  ;;  %v2797_v57 = vpack.c.bf16 %v2443_v56, %v2442_v55  ;;  %v2445_v59 = vld [vmem:[%s3574_s6 + $0x58] sm:$0xff]  ;;  %v2452_v61 = vld [vmem:[%s3572_s4 + $0x60] sm:$0xff]  ;;  %v2453_v62 = vld [vmem:[%s3572_s4 + $0x68] sm:$0xff] }
  0x1f   : > { %s459_s24 = scalar_lea.vmem %s3593_s0, %s3582_s21  ;;  %s3594_s0 = sshll.u32 %s3118_s20, 3  ;;  %v2800_v60 = vpack.c.bf16 %v2445_v59, %v2444_v58  ;;  %v2803_v63 = vpack.c.bf16 %v2453_v62, %v2452_v61  ;;  %v2395_v8 = vld [vmem:[%s3576_s8] ss:$0 sm:$0xff]  ;;  %v2412_v40 = vld [vmem:[%s3573_s5 + $0x28] sm:$0xff]  ;;  %v2413_v44 = vld [vmem:[%s3573_s5 + $0x30] sm:$0xff] }
  0x20   : > { %v3126_v0 = vld [vmem:[%s459_s24] sm:$0xff]  ;;  %s463_s15 = scalar_lea.vmem %s3595_s1, %s3594_s0  ;;  %s2993_s0 = smov 8  }
  0x21   : > { %v467_v1 = vsel %vm466_vm0, %v3126_v0, 0.0  ;;  %v3169_v21 = vld [vmem:[%s463_s15] sm:$0xff]  ;;  %s2994_s21 = smov 16   ;;  %s455_s20 = scalar_lea.vmem [#allocation5], %s3584_s17 }
  0x22   : > { %468 = vadd.xlane.f32.xlu0 %v467_v1  ;;  %2585 = vmatmul.mubr.msk.f32.vlgmr.msra.gmra.mrb[0].mxu1 %vm466_vm0, %v3169_v21  ;;  %v2454_v1 = vld [vmem:[%s3572_s4 + $0x70] sm:$0xff]  ;;  %v2399_v14 = vld [vmem:[%s3578_s10] ss:$0 sm:$0xff]  ;;  %v2409_v49 = vld [vmem:[%s3576_s8 + $0x1] ss:$0 sm:$0xff] }
  0x23   : > { %2600 = vmatprep.mubr.msk.f32.mxu1 %vm2991_vm1, %v2992_v18  ;;  %v2416_v50 = vld [vmem:[%s3577_s9 + $0x1] ss:$0 sm:$0xff] }
  0x24   : > { %v2423_v52 = vld [vmem:[%s3578_s10 + $0x1] ss:$0 sm:$0xff] }
  0xaf   : > { %v469_v2 = vpop.xlane.xlu0 %468 }
  0xb0   : > { %v471_v3 = vmul.f32 0.03125, %v469_v2  ;;  %v2455_v2 = vld [vmem:[%s3572_s4 + $0x78] sm:$0xff] }
  0xb2   : > { %v472_v4 = vsub.f32 %v3126_v0, %v471_v3  ;;  %v2806_v3 = vpack.c.bf16 %v2455_v2, %v2454_v1 }
  0xb4   : > { %v473_v5 = vmul.f32 %v472_v4, %v472_v4 }
  0xb6   : > { %v474_v6 = vsel %vm466_vm0, %v473_v5, 0.0 }
  0xb7   : > { %475 = vadd.xlane.f32.xlu0 %v474_v6  ;;  %v2397_v6 = vld [vmem:[%s3577_s9] ss:$0 sm:$0xff] }
 0x144   : > { %v476_v22 = vpop.xlane.xlu0 %475 }
 0x145   : > { %v477_v23 = vmul.f32 0.03125, %v476_v22 }
 0x147   : > { %v478_v24 = vadd.f32 1e-05, %v477_v23 }
 0x149   : > { %2876 = vrsqrt.f32 %v478_v24 }
 0x153   : > { %v2877_v25 = vpop.eup %2876 }
 0x154   : > { %v480_v27 = vmul.f32 %v2877_v25, %v472_v4  ;;  %v661_v4 = vpop.f32.mrb[0].mxu1 }
 0x155   : > { %v2586_v5 = vpop.f32.mrb[1].mxu1  ;;  %v662_v7 = vadd.f32 %v2397_v6, %v661_v4  ;;  %v2435_v4 = vld [vmem:[%s3573_s5 + $0x40] sm:$0xff] }
 0x156   : > { %v488_v31 = vmul.f32 %v2393_v26, %v480_v27  ;;  %v2436_v5 = vld [vmem:[%s3573_s5 + $0x48] sm:$0xff] }
 0x157   : > { %2599 = vmatpush3.xpose.msk.msra.mxu1 %vm747_vm2, %v662_v7  ;;  %v2791_v7 = vpack.c.bf16 %v2436_v5, %v2435_v4  ;;  %v2471_v5 = vld [vmem:[%s3578_s10 + $0x3] ss:$0 sm:$0xff] }
 0x158   : > { %v3189_v33 = vadd.f32 %v2394_v30, %v488_v31  ;;  %2603 = vmatprep.subr.mxu1 %v2992_v18 }
 0x15a   : > { %2574 = vmatmul.mubr.msk.f32.vlgmr.msra.gmra.mrb[0].mxu0 %vm466_vm0, %v3189_v33 }
 0x15b   : > { %2762 = vmatpush3.bf16.msra.mxu0 %v2761_v32  ;;  %2595 = vmatprep.mubr.msk.f32.mxu0 %vm2991_vm1, %v2992_v18 }
 0x15c   : > { %2763 = vmatprep.subr.bf16.mxu0 %v2990_v10 }
 0x15f   : > { %2765 = vmatpush3.bf16.msra.mxu0 %v2764_v36 }
 0x160   : > { %2766 = vmatprep.subr.bf16.mxu0 %v2990_v10 }
 0x162   : > { %2596 = vmatmul.mubr.msk.f32.vlgmr.msra.gmra.mrb[2].mxu0 %vm466_vm0, %v3169_v21 }
 0x163   : > { %2768 = vmatpush3.bf16.msra.mxu0 %v2767_v39  ;;  %2616 = vmatprep.mubr.msk.f32.mxu0 %vm2991_vm1, %v2992_v18  ;;  %v2411_v39 = vld [vmem:[%s3573_s5 + $0x20] sm:$0xff] }
 0x164   : > { %2769 = vmatprep.subr.bf16.mxu0 %v2990_v10 }
 0x167   : > { %2771 = vmatpush3.bf16.msra.mxu0 %v2770_v42  ;;  %v2773_v42 = vpack.c.bf16 %v2412_v40, %v2411_v39 }
 0x168   : > { %2778 = vmatprep.subr.bf16.mxu0 %v2990_v10 }
 0x16a   : > { %2617 = vmatmul.mubr.msk.f32.vlgmr.msra.gmra.mrb[4].mxu0 %vm466_vm0, %v3189_v33 }
 0x16b   : > { %2780 = vmatpush3.bf16.msra.mxu0 %v2779_v45  ;;  %2638 = vmatprep.mubr.msk.f32.mxu0 %vm2991_vm1, %v2992_v18  ;;  %v2414_v45 = vld [vmem:[%s3573_s5 + $0x38] sm:$0xff] }
 0x16c   : > { %2781 = vmatprep.subr.bf16.mxu0 %v2990_v10  ;;  %v2776_v46 = vpack.c.bf16 %v2414_v45, %v2413_v44 }
 0x16f   : > { %2783 = vmatpush3.bf16.msra.mxu0 %v2782_v48 }
 0x170   : > { %2784 = vmatprep.subr.bf16.mxu0 %v2990_v10 }
 0x172   : > { %2639 = vmatmul.mubr.msk.f32.vlgmr.msra.gmra.mrb[6].mxu0 %vm466_vm0, %v3169_v21 }
 0x173   : > { %2786 = vmatpush3.bf16.msra.mxu0 %v2785_v51  ;;  %2659 = vmatprep.mubr.msk.f32.mxu0 %vm2991_vm1, %v2992_v18 }
 0x174   : > { %2787 = vmatprep.subr.bf16.mxu0 %v2990_v10 }
 0x177   : > { %2789 = vmatpush3.bf16.msra.mxu0 %v2788_v54 }
 0x178   : > { %2796 = vmatprep.subr.bf16.mxu0 %v2990_v10 }
 0x17a   : > { %2660 = vmatmul.mubr.msk.f32.vlgmr.msra.gmra.mrb[8].mxu0 %vm466_vm0, %v3189_v33 }
 0x17b   : > { %2798 = vmatpush3.bf16.msra.mxu0 %v2797_v57  ;;  %2681 = vmatprep.mubr.msk.f32.mxu0 %vm2991_vm1, %v2992_v18 }
 0x17c   : > { %2799 = vmatprep.subr.bf16.mxu0 %v2990_v10 }
 0x17f   : > { %2801 = vmatpush3.bf16.msra.mxu0 %v2800_v60 }
 0x180   : > { %2802 = vmatprep.subr.bf16.mxu0 %v2990_v10 }
 0x182   : > { %2682 = vmatmul.mubr.msk.f32.vlgmr.msra.gmra.mrb[10].mxu0 %vm466_vm0, %v3169_v21 }
 0x183   : > { %2804 = vmatpush3.bf16.msra.mxu0 %v2803_v63  ;;  %2702 = vmatprep.mubr.msk.f32.mxu0 %vm2991_vm1, %v2992_v18 }
 0x184   : > { %2805 = vmatprep.subr.bf16.mxu0 %v2990_v10 }
 0x187   : > { %2807 = vmatpush3.bf16.msra.mxu0 %v2806_v3 }
 0x188   : > { %2814 = vmatprep.subr.bf16.mxu0 %v2990_v10 }
 0x18a   : > { %2703 = vmatmul.mubr.msk.f32.vlgmr.msra.gmra.mrb[12].mxu0 %vm466_vm0, %v3189_v33 }
 0x18b   : > { %2724 = vmatprep.mubr.msk.f32.mxu0 %vm2991_vm1, %v2992_v18 }
 0x22d   : > { %v577_v9 = vpop.f32.mrb[0].mxu0 }
 0x22e   : > { %v578_v11 = vadd.f32 %v2395_v8, %v577_v9  ;;  %v2575_v12 = vpop.f32.mrb[1].mxu0  ;;  %v2437_v9 = vld [vmem:[%s3573_s5 + $0x50] sm:$0xff] }
 0x230   : > { %v746_v13 = vmul.f32 0.35355338, %v578_v11  ;;  %v2438_v11 = vld [vmem:[%s3573_s5 + $0x58] sm:$0xff] }
 0x231   : > { %v2794_v12 = vpack.c.bf16 %v2438_v11, %v2437_v9 }
 0x232   : > { %2601 = vmatmul.mubr.msk.f32.vlgmr.msra.gmra.mrb[2].mxu1 %vm747_vm2, %v746_v13 }
 0x233   : > { %2605 = vmatprep.mubr.msk.f32.mxu1 %vm2991_vm1, %v2992_v18 }
 0x235   : > { %v742_v15 = vpop.f32.mrb[2].mxu0 }
 0x236   : > { %v743_v16 = vadd.f32 %v2399_v14, %v742_v15  ;;  %v2597_v17 = vpop.f32.mrb[3].mxu0  ;;  %v2433_v15 = vld [vmem:[%s3576_s8 + $0x2] ss:$0 sm:$0xff] }
 0x238   : > { %2604 = vmatpush3.msra.mxu1 %v743_v16  ;;  %v2440_v16 = vld [vmem:[%s3577_s9 + $0x2] ss:$0 sm:$0xff] }
 0x239   : > { %2772 = vmatprep.subr.bf16.mxu1 %v2990_v10 }
 0x23d   : > { %v989_v19 = vpop.f32.mrb[4].mxu0 }
 0x23e   : > { %v2618_v20 = vpop.f32.mrb[5].mxu0  ;;  %v990_v51 = vadd.f32 %v2409_v49, %v989_v19  ;;  %v2447_v19 = vld [vmem:[%s3578_s10 + $0x2] ss:$0 sm:$0xff]  ;;  %v2464_v49 = vld [vmem:[%s3577_s9 + $0x3] ss:$0 sm:$0xff] }
 0x240   : > { %v1159_v57 = vmul.f32 0.35355338, %v990_v51 }
 0x245   : > { %v1155_v22 = vpop.f32.mrb[6].mxu0 }
 0x246   : > { %v2640_v23 = vpop.f32.mrb[7].mxu0  ;;  %v1156_v56 = vadd.f32 %v2423_v52, %v1155_v22 }
 0x24d   : > { %v3312_v24 = vpop.f32.mrb[8].mxu0 }
 0x24e   : > { %v2661_v25 = vpop.f32.mrb[9].mxu0  ;;  %v1407_v17 = vadd.f32 %v2433_v15, %v3312_v24  ;;  %v2162_v15 = vld [vmem:[%s3575_s7] sm:$0xff] }
 0x255   : > { %v3314_v26 = vpop.f32.mrb[10].mxu0 }
 0x256   : > { %v2683_v27 = vpop.f32.mrb[11].mxu0  ;;  %v1573_v25 = vadd.f32 %v2447_v19, %v3314_v26  ;;  %v2164_v19 = vld [vmem:[%s3575_s7 + $0x10] sm:$0xff] }
 0x257   : > { %v1576_v27 = vmul.f32 0.35355338, %v1407_v17 }
 0x25d   : > { %v3316_v28 = vpop.f32.mrb[12].mxu0 }
 0x25e   : > { %v2704_v29 = vpop.f32.mrb[13].mxu0 }
 0x305   : > { %v820_v30 = vpop.f32.mrb[2].mxu1 }
 0x306   : > { %v2602_v31 = vpop.f32.mrb[3].mxu1  ;;  %v824_v32 = vsel %vm747_vm2, %v820_v30, -inf }
 0x307   : > { %825 = vmax.xlane.f32.xlu1 %v824_v32 }
 0x394   : > { %v826_v33 = vpop.xlane.xlu1 %825 }
 0x395   : > { %v827_v34 = vsub.f32 %v820_v30, %v826_v33 }
 0x397   : > { %v828_v35 = vmul.f32 1.442695, %v827_v34 }
 0x399   : > { %2878 = vpow2.f32 %v828_v35 }
 0x3a3   : > { %v2879_v36 = vpop.eup %2878 }
 0x3a4   : > { %v830_v37 = vsel %vm747_vm2, %v2879_v36, 0.0 }
 0x3a5   : > { %831 = vadd.xlane.f32.xlu1 %v830_v37  ;;  %v2460_v37 = vld [vmem:[%s3573_s5 + $0x68] sm:$0xff] }
 0x432   : > { %v832_v38 = vpop.xlane.xlu1 %831 }
 0x433   : > { %2880 = vrcp.f32 %v832_v38 }
 0x43d   : > { %v2881_v41 = vpop.eup %2880 }
 0x43e   : > { %v3326_v43 = vmul.f32 %v2881_v41, %v2879_v36  ;;  %v2459_v36 = vld [vmem:[%s3573_s5 + $0x60] sm:$0xff]  ;;  %v2461_v41 = vld [vmem:[%s3573_s5 + $0x70] sm:$0xff] }
 0x43f   : > { %v2809_v39 = vpack.c.bf16 %v2460_v37, %v2459_v36 }
 0x440   : > { %2606 = vmatmul.mubr.msk.f32.vlgmr.msra.gmra.mrb[4].mxu1 %vm747_vm2, %v3326_v43 }
 0x441   : > { %2774 = vmatpush3.bf16.msra.mxu1 %v2773_v42  ;;  %2627 = vmatprep.mubr.msk.f32.mxu1 %vm2991_vm1, %v2992_v18  ;;  %v2462_v42 = vld [vmem:[%s3573_s5 + $0x78] sm:$0xff] }
 0x442   : > { %2775 = vmatprep.subr.bf16.mxu1 %v2990_v10 }
 0x445   : > { %2777 = vmatpush3.bf16.msra.mxu1 %v2776_v46  ;;  %v2812_v46 = vpack.c.bf16 %v2462_v42, %v2461_v41 }
 0x446   : > { %2641 = vmatprep.subr.mxu1 %v2992_v18 }
 0x448   : > { %2628 = vmatmul.mubr.msk.f32.vlgmr.msra.gmra.mrb[6].mxu1 %vm466_vm0, %v3169_v21 }
 0x449   : > { %2643 = vmatprep.mubr.msk.f32.mxu1 %vm2991_vm1, %v2992_v18 }
 0x513   : > { %v905_v47 = vpop.f32.mrb[4].mxu1 }
 0x514   : > { %909 = vst.msk [vmem:[#allocation2] sm:$0xff] %vm747_vm2, %v905_v47  ;;  %v2607_v48 = vpop.f32.mrb[5].mxu1 }
 0x515   : > { %v2457_v48 = vld [vmem:[%s3576_s8 + $0x3] ss:$0 sm:$0xff] }
 0x51b   : > { %v1072_v53 = vpop.f32.mrb[6].mxu1 }
 0x51c   : > { %v1073_v54 = vadd.f32 %v2416_v50, %v1072_v53  ;;  %v2629_v55 = vpop.f32.mrb[7].mxu1  ;;  %v1824_v50 = vadd.f32 %v2457_v48, %v3316_v28  ;;  %v2467_v28 = vld [vmem:[%s3574_s6 + $0x68] sm:$0xff] }
 0x51d   : > { %v2466_v55 = vld [vmem:[%s3574_s6 + $0x60] sm:$0xff] }
 0x51e   : > { %2642 = vmatpush3.xpose.msk.msra.mxu1 %vm747_vm2, %v1073_v54  ;;  %v1993_v54 = vmul.f32 0.35355338, %v1824_v50 }
 0x51f   : > { %2646 = vmatprep.subr.mxu1 %v2992_v18 }
 0x521   : > { %2644 = vmatmul.mubr.msk.f32.vlgmr.msra.gmra.mrb[8].mxu1 %vm747_vm2, %v1159_v57  ;;  %v2815_v57 = vpack.c.bf16 %v2467_v28, %v2466_v55 }
 0x522   : > { %2647 = vmatpush3.msra.mxu1 %v1156_v56  ;;  %2648 = vmatprep.mubr.msk.f32.mxu1 %vm2991_vm1, %v2992_v18  ;;  %v2468_v56 = vld [vmem:[%s3574_s6 + $0x70] sm:$0xff] }
 0x523   : > { %2790 = vmatprep.subr.bf16.mxu1 %v2990_v10  ;;  %2816 = vmatpush3.bf16.msra.mxu0 %v2815_v57 }
 0x524   : > { %2817 = vmatprep.subr.bf16.mxu0 %v2990_v10 }
 0x5f4   : > { %v1232_v58 = vpop.f32.mrb[8].mxu1 }
 0x5f5   : > { %v2645_v59 = vpop.f32.mrb[9].mxu1  ;;  %v1236_v60 = vsel %vm747_vm2, %v1232_v58, -inf }
 0x5f6   : > { %1237 = vmax.xlane.f32.xlu0 %v1236_v60 }
 0x683   : > { %v1238_v61 = vpop.xlane.xlu0 %1237 }
 0x684   : > { %v1239_v62 = vsub.f32 %v1232_v58, %v1238_v61  ;;  %v2469_v58 = vld [vmem:[%s3574_s6 + $0x78] sm:$0xff] }
 0x685   : > { %v2818_v59 = vpack.c.bf16 %v2469_v58, %v2468_v56 }
 0x686   : > { %v1240_v63 = vmul.f32 1.442695, %v1239_v62 }
 0x687   : > { %2819 = vmatpush3.bf16.msra.mxu0 %v2818_v59 }
 0x688   : > { %2882 = vpow2.f32 %v1240_v63  ;;  %2820 = vmatprep.subr.bf16.mxu0 %v2990_v10 }
 0x68a   : > { %2725 = vmatmul.mubr.msk.f32.vlgmr.msra.gmra.mrb[14].mxu0 %vm466_vm0, %v3169_v21 }
 0x68b   : > { %2745 = vmatprep.mubr.msk.f32.mxu0 %vm2991_vm1, %v2992_v18 }
 0x692   : > { %v2883_v1 = vpop.eup %2882 }
 0x693   : > { %v1242_v2 = vsel %vm747_vm2, %v2883_v1, 0.0 }
 0x694   : > { %1243 = vadd.xlane.f32.xlu1 %v1242_v2 }
 0x721   : > { %v1244_v3 = vpop.xlane.xlu1 %1243 }
 0x722   : > { %2884 = vrcp.f32 %v1244_v3 }
 0x72c   : > { %v2885_v6 = vpop.eup %2884 }
 0x72d   : > { %v1246_v8 = vmul.f32 %v2885_v6, %v2883_v1 }
 0x72f   : > { %2649 = vmatmul.mubr.msk.f32.vlgmr.msra.gmra.mrb[10].mxu1 %vm747_vm2, %v1246_v8  ;;  %v1247_v44 = vadd.f32 %v1246_v8, %v3326_v43 }
 0x730   : > { %2792 = vmatpush3.bf16.msra.mxu1 %v2791_v7  ;;  %2670 = vmatprep.mubr.msk.f32.mxu1 %vm2991_vm1, %v2992_v18 }
 0x731   : > { %2793 = vmatprep.subr.bf16.mxu1 %v2990_v10 }
 0x734   : > { %2795 = vmatpush3.bf16.msra.mxu1 %v2794_v12 }
 0x735   : > { %2684 = vmatprep.subr.mxu1 %v2992_v18 }
 0x737   : > { %2671 = vmatmul.mubr.msk.f32.vlgmr.msra.gmra.mrb[12].mxu1 %vm466_vm0, %v3169_v21 }
 0x738   : > { %2686 = vmatprep.mubr.msk.f32.mxu1 %vm2991_vm1, %v2992_v18 }
 0x802   : > { %v3383_v13 = vpop.f32.mrb[10].mxu1 }
 0x803   : > { %v2650_v14 = vpop.f32.mrb[11].mxu1 }
 0x80a   : > { %v1489_v20 = vpop.f32.mrb[12].mxu1 }
 0x80b   : > { %v1490_v22 = vadd.f32 %v2440_v16, %v1489_v20  ;;  %v2672_v23 = vpop.f32.mrb[13].mxu1  ;;  %v2163_v16 = vld [vmem:[%s3575_s7 + $0x8] sm:$0xff]  ;;  %v2165_v20 = vld [vmem:[%s3575_s7 + $0x18] sm:$0xff] }
 0x80c   : > { %v2821_v17 = vpack.c.bf16 %v2163_v16, %v2162_v15 }
 0x80d   : > { %2685 = vmatpush3.xpose.msk.msra.mxu1 %vm747_vm2, %v1490_v22  ;;  %v2824_v22 = vpack.c.bf16 %v2165_v20, %v2164_v19 }
 0x80e   : > { %2689 = vmatprep.subr.mxu1 %v2992_v18  ;;  %2822 = vmatpush3.bf16.msra.mxu0 %v2821_v17 }
 0x80f   : > { %2823 = vmatprep.subr.bf16.mxu0 %v2990_v10 }
 0x810   : > { %2687 = vmatmul.mubr.msk.f32.vlgmr.msra.gmra.mrb[14].mxu1 %vm747_vm2, %v1576_v27 }
 0x811   : > { %2690 = vmatpush3.msra.mxu1 %v1573_v25  ;;  %2691 = vmatprep.mubr.msk.f32.mxu1 %vm2991_vm1, %v2992_v18 }
 0x812   : > { %2808 = vmatprep.subr.bf16.mxu1 %v2990_v10  ;;  %2825 = vmatpush3.bf16.msra.mxu0 %v2824_v22 }
 0x8e3   : > { %v1649_v24 = vpop.f32.mrb[14].mxu1 }
 0x8e4   : > { %v2688_v29 = vpop.f32.mrb[15].mxu1  ;;  %v1653_v30 = vsel %vm747_vm2, %v1649_v24, -inf }
 0x8e5   : > { %1654 = vmax.xlane.f32.xlu0 %v1653_v30 }
 0x972   : > { %v1655_v31 = vpop.xlane.xlu0 %1654 }
 0x973   : > { %v1656_v26 = vsub.f32 %v1649_v24, %v1655_v31 }
 0x975   : > { %v1657_v32 = vmul.f32 1.442695, %v1656_v26 }
 0x977   : > { %2886 = vpow2.f32 %v1657_v32 }
 0x981   : > { %v2887_v33 = vpop.eup %2886 }
 0x982   : > { %v1659_v34 = vsel %vm747_vm2, %v2887_v33, 0.0 }
 0x983   : > { %1660 = vadd.xlane.f32.xlu1 %v1659_v34 }
 0xa10   : > { %v1661_v35 = vpop.xlane.xlu1 %1660 }
 0xa11   : > { %2888 = vrcp.f32 %v1661_v35 }
 0xa1b   : > { %v2889_v38 = vpop.eup %2888 }
 0xa1c   : > { %v1663_v40 = vmul.f32 %v2889_v38, %v2887_v33 }
 0xa1e   : > { %2692 = vmatmul.mubr.msk.f32.vlgmr.msra.gmra.mrb[16].mxu1 %vm747_vm2, %v1663_v40  ;;  %v3418_v45 = vadd.f32 %v1663_v40, %v1247_v44 }
 0xa1f   : > { %2810 = vmatpush3.bf16.msra.mxu1 %v2809_v39  ;;  %2713 = vmatprep.mubr.msk.f32.mxu1 %vm2991_vm1, %v2992_v18 }
 0xa20   : > { %2811 = vmatprep.subr.bf16.mxu1 %v2990_v10 }
 0xa23   : > { %2813 = vmatpush3.bf16.msra.mxu1 %v2812_v46 }
 0xa24   : > { %2727 = vmatprep.subr.mxu1 %v2992_v18 }
 0xa26   : > { %2714 = vmatmul.mubr.msk.f32.vlgmr.msra.gmra.mrb[18].mxu1 %vm466_vm0, %v3169_v21 }
 0xa27   : > { %2729 = vmatprep.mubr.msk.f32.mxu1 %vm2991_vm1, %v2992_v18 }
 0xaf1   : > { %v1734_v43 = vpop.f32.mrb[16].mxu1 }
 0xaf2   : > { %v2693_v47 = vpop.f32.mrb[17].mxu1 }
 0xaf9   : > { %v1906_v51 = vpop.f32.mrb[18].mxu1 }
 0xafa   : > { %v1907_v52 = vadd.f32 %v2464_v49, %v1906_v51  ;;  %v2715_v53 = vpop.f32.mrb[19].mxu1 }
 0xafc   : > { %2728 = vmatpush3.xpose.msk.msra.mxu1 %vm747_vm2, %v1907_v52 }
 0xafd   : > { %2732 = vmatprep.subr.mxu1 %v2992_v18 }
 0xaff   : > { %2730 = vmatmul.mubr.msk.f32.vlgmr.msra.gmra.mrb[20].mxu1 %vm747_vm2, %v1993_v54 }
 0xb00   : > { %2734 = vmatprep.mubr.msk.f32.mxu1 %vm2991_vm1, %v2992_v18  ;;  %v1989_v18 = vpop.f32.mrb[14].mxu0 }
 0xb01   : > { %v2726_v6 = vpop.f32.mrb[15].mxu0  ;;  %v1990_v7 = vadd.f32 %v2471_v5, %v1989_v18 }
 0xb03   : > { %2733 = vmatpush3.msra.mxu1 %v1990_v7 }
 0xbd2   : > { %v2066_v60 = vpop.f32.mrb[20].mxu1 }
 0xbd3   : > { %v2731_v61 = vpop.f32.mrb[21].mxu1  ;;  %v2070_v62 = vsel %vm747_vm2, %v2066_v60, -inf }
 0xbd4   : > { %2071 = vmax.xlane.f32.xlu0 %v2070_v62 }
 0xbea   : > { %1322 = vrot.lane.b32.xlu0 %v3383_v13, %s2993_s0  ;;  %s3493_s0 = scalar_lea.hbm %s3581_s13, %s3585_s22 }
 0xc61   : > { %v2072_v63 = vpop.xlane.xlu0 %2071 }
 0xc62   : > { %v2073_v1 = vsub.f32 %v2066_v60, %v2072_v63 }
 0xc64   : > { %v2074_v2 = vmul.f32 1.442695, %v2073_v1 }
 0xc65   : > { %v1323_v3 = vpop.permute.xlu0 %1322 }
 0xc66   : > { %2890 = vpow2.f32 %v2074_v2  ;;  %1326 = vst.msk [vmem:[#allocation2] sm:$0xff] %vm1325_vm3, %v1323_v3 }
 0xc70   : > { %v2891_v21 = vpop.eup %2890 }
 0xc71   : > { %v2076_v4 = vsel %vm747_vm2, %v2891_v21, 0.0 }
 0xc72   : > { %2077 = vadd.xlane.f32.xlu1 %v2076_v4 }
 0xc83   : > { %1739 = vrot.lane.b32.xlu1 %v1734_v43, %s2994_s21  ;;  %s2282_s21 = sshll.u32 %s455_s20, 4  ;;  %s2283_s21 = int_to_ptr.vmem [resolvable:$true] %s2282_s21 }
 0xc84   : > { %s2894_s15 = scalar_lea.vmem %s2283_s21, 128 }
 0xc85   : > { %p2895_p11 = scmp.ne.s32.totalorder %s2283_s21, %s2894_s15 }
 0xc87   : > { %p2896_p12 = pnand %p2895_p11, %p3106_p5 }
 0xc89   : > { %p2897_p13 = pneg %p2896_p12 }
 0xcff   : > { %v2078_v8 = vpop.xlane.xlu1 %2077 }
 0xd00   : > { %2892 = vrcp.f32 %v2078_v8 }
 0xd03   : > { %v1740_v9 = vpop.permute.xlu1 %1739 }
 0xd04   : > { %1743 = vst.msk [vmem:[#allocation2] sm:$0xff] %vm1742_vm4, %v1740_v9 }
 0xd0a   : > { %v2893_v11 = vpop.eup %2892 }
 0xd0b   : > { %v2080_v12 = vmul.f32 %v2893_v11, %v2891_v21 }
 0xd0d   : > { %2735 = vmatmul.mubr.msk.f32.vlgmr.msra.gmra.mrb[22].mxu1 %vm747_vm2, %v2080_v12  ;;  %v2081_v13 = vadd.f32 %v2080_v12, %v3418_v45 }
 0xd0f   : > { %v2248_v14 = vmul.f32 0.25, %v2081_v13 }
 0xd11   : > { %2249 = vst.msk [vmem:[%s455_s20] sm:$0xff] %vm747_vm2, %v2248_v14 }
 0xde0   : > { %v2151_v23 = vpop.f32.mrb[22].mxu1 }
 0xde1   : > { %2156 = vrot.lane.b32.xlu1 %v2151_v23, %s2995_s16  ;;  %v2736_v25 = vpop.f32.mrb[23].mxu1  ;;  %s2996_s16 = smov [#allocation5]  }
 0xde2   : > { %s2898_s17 = sshll.u32 %s2996_s16, 4  ;;  %s2899_s17 = int_to_ptr.vmem [resolvable:$false] %s2898_s17 }
 0xde3   : > { %s2900_s1 = scalar_lea.vmem %s2899_s17, 256  ;;  %p2901_p0 = scmp.lt.s32.totalorder %s2283_s21, %s2899_s17 }
 0xde4   : > { %p2902_p1 = scmp.lt.s32.totalorder %s2900_s1, %s2894_s15 }
 0xde6   : > { %p2903_p2 = por %p2902_p1, %p2901_p0 }
 0xde8   : > { %p2904_p3 = pnand %p2903_p2, %p2897_p13 }
 0xe53   : > { %v2157_v27 = vpop.permute.xlu1 %2156 }
 0xe54   : > { %2160 = vst.msk [vmem:[#allocation2] sm:$0xff] %vm2159_vm5, %v2157_v27 }
 0xe5b   : > { %v2161_v24 = vld [vmem:[#allocation2] sm:$0xff] }
 0xe5c   : > { %2746 = vmatmul.mubr.msk.f32.vlgmr.msra.gmra.mrb[16].mxu0 %vm466_vm0, %v2161_v24 }
 0xe5d   : > { %2907 = shalt.err (!%p2904_p3)
}
 0xe5e   : > { %s2908_s20 = scalar_lea.hbm %s3493_s0, 128  ;;  %s2912_s16 = scalar_lea.hbm %s3581_s13, 256 }
 0xe5f   : > { %p2909_p4 = scmp.ne.s32.totalorder %s3493_s0, %s2908_s20  ;;  %p2913_p9 = scmp.lt.u32.totalorder %s3493_s0, %s3581_s13 }
 0xe60   : > { %p2914_p10 = scmp.lt.u32.totalorder %s2912_s16, %s2908_s20  ;;  %p2916_p12 = scmp.lt.u32.totalorder %s2908_s20, %s3493_s0 }
 0xe61   : > { %p2910_p7 = pnand %p2909_p4, %p3106_p5 }
 0xe62   : > { %p2915_p11 = por %p2914_p10, %p2913_p9 }
 0xe63   : > { %p2911_p8 = pneg %p2910_p7 }
 0xe64   : > { %p2917_p13 = por %p2916_p12, %p2915_p11 }
 0xe66   : > { %p2918_p0 = pnand %p2917_p13, %p2911_p8 }
 0xe68   : > { %2921 = shalt.err (!%p2918_p0)
}
 0xe69   : > { %2827 = dma.vmem_to_hbm [thread:$0]  (%p3106_p5), %s2283_s21, 128, %s3493_s0, %s2256_s30   ;;  %v2476_v10 = vld [vmem:[%s3579_s11] ss:$0 sm:$0xff] }
 0xe6a   : > { %s3597_s22 = sshll.u32 %s3465_s27, 3  ;;  %s3598_s20 = sshll.u32 %s3089_s29, 7 }
 0xe6b   : > { %s448_s23 = scalar_lea.vmem [#allocation3], %s3597_s22  ;;  %s3524_s2 = scalar_lea.hbm %s3580_s12, %s3598_s20 }
 0xe6c   : > { %s2269_s24 = sshll.u32 %s448_s23, 4  ;;  %s2251_s0 = scalar_lea.sflag [#allocation4], %s3465_s27  ;;  %s3526_s24 = int_to_ptr.vmem [resolvable:$true] %s2269_s24 }
 0xe6d   : > { %s2922_s21 = scalar_lea.vmem %s3526_s24, 128  ;;  %s2997_s30 = smov [#allocation3]  }
 0xe6e   : > { %p2923_p1 = scmp.ne.s32.totalorder %s3526_s24, %s2922_s21  ;;  %s2926_s29 = sshll.u32 %s2997_s30, 4  ;;  %s2927_s29 = int_to_ptr.vmem [resolvable:$false] %s2926_s29 }
 0xe6f   : > { %s2928_s1 = scalar_lea.vmem %s2927_s29, 256  ;;  %p2929_p4 = scmp.lt.s32.totalorder %s3526_s24, %s2927_s29 }
 0xe70   : > { %p2924_p2 = pnand %p2923_p1, %p3106_p5  ;;  %p2930_p7 = scmp.lt.s32.totalorder %s2928_s1, %s2922_s21 }
 0xe72   : > { %p2925_p3 = pneg %p2924_p2  ;;  %p2931_p8 = por %p2930_p7, %p2929_p4 }
 0xe74   : > { %p2932_p9 = pnand %p2931_p8, %p2925_p3 }
 0xf2f   : > { %v2242_v29 = vpop.f32.mrb[16].mxu0 }
 0xf30   : > { %v2243_v30 = vadd.f32 %v2476_v10, %v2242_v29  ;;  %v2747_v31 = vpop.f32.mrb[17].mxu0 }
 0xf32   : > { %v2246_v26 = vadd.f32 %v2243_v30, %v3126_v0 }
 0xf34   : > { %2247 = vst.msk [vmem:[%s448_s23] sm:$0xff] %vm466_vm0, %v2246_v26 }
 0xf35   : > { %2935 = shalt.err (!%p2932_p9)
}
 0xf36   : > { %s2936_s27 = scalar_lea.hbm %s3524_s2, 128  ;;  %s2940_s23 = scalar_lea.hbm %s3580_s12, 256 }
 0xf37   : > { %p2937_p10 = scmp.ne.s32.totalorder %s3524_s2, %s2936_s27  ;;  %p2941_p13 = scmp.lt.u32.totalorder %s3524_s2, %s3580_s12 }
 0xf38   : > { %p2942_p0 = scmp.lt.u32.totalorder %s2940_s23, %s2936_s27  ;;  %p2944_p2 = scmp.lt.u32.totalorder %s2936_s27, %s3524_s2 }
 0xf39   : > { %p2938_p11 = pnand %p2937_p10, %p3106_p5 }
 0xf3a   : > { %p2943_p1 = por %p2942_p0, %p2941_p13 }
 0xf3b   : > { %p2939_p12 = pneg %p2938_p11 }
 0xf3c   : > { %p2945_p3 = por %p2944_p2, %p2943_p1 }
 0xf3e   : > { %p2946_p4 = pnand %p2945_p3, %p2939_p12 }
 0xf40   : > { %2949 = shalt.err (!%p2946_p4)
}
 0xf41   : > { %2826 = dma.vmem_to_hbm [thread:$0]  (%p3106_p5), %s3526_s24, 128, %s3524_s2, %s2251_s0  }
 0xf42 PF: > { %p2837_p7 = scmp.ge.s32.totalorder %s2988_s28, 2  ;;  %s2294_s17 = sand.u32 1, %s2976_s25  }
 0xf43   : > { %s2295_s21 = scalar_lea.sflag [#allocation4], %s2294_s17 }
 0xf44   : > { %p2831_p8 = pnand %p2837_p7, %p3110_p6 }
 0xf46   : > { %2967 = dma.done.wait (!%p2831_p8), %s2295_s21, 128  }
 0xf47   : > { %2969 = vsyncadd (!%p2831_p8), %s2295_s21, 4294967168  ;;  %s2304_s30 = scalar_lea.sflag [#allocation6], %s2294_s17 }
 0xf48   : > { %2971 = dma.done.wait (!%p2831_p8), %s2304_s30, 128  }
 0xf49   : > { %2973 = vsyncadd (!%p2831_p8), %s2304_s30, 4294967168  ;;  %s3599_s18 = sld [smem:[#allocation9_spill]]  ;;  %s3600_s27 = sld [smem:[#allocation10_spill]] }
 0xf4a   : > { %p27_p5 = scmp.ge.s32.totalorder %s3093_s14, 4   ;;  %s3601_s25 = smov %s2980_s26 }
 0xf4b   : > { %s3603_s28 = smov %s3093_s14 }
 0xf4c   :  { %29 = sbr.rel (!%p27_p5) target bundleno = 9 (0x9), region = 141 }
 0xf4f   : > { %s3602_s26 = smov %s3599_s18 }
 0xf53   :  { %2309 = vsyncpa [#allocation4], 1 }
 0xf54   :  { %2311 = vsyncpa [#allocation4 + $0x1], 1 }
 0xf55   :  { %2312 = vsyncpa [#allocation6], 1 }
 0xf56   :  { %2314 = vsyncpa [#allocation6 + $0x1], 1 }

// kernel: tpu_custom_call.1
= control target key start
LH: loop header
LB: loop body
LE: loop exit
PB: predicated region body
PF: predicated region fallthrough
CT: control target
= control target key end

     0   :  { %s3568_s0 = inlined_call_operand.vmem [shape: f32[2,8,32], index: 0, kind: input, shape index: {}]   ;;  %s3569_s1 = inlined_call_operand.vmem [shape: f32[2,8,32], index: 1, kind: input, shape index: {}]   ;;  %s3570_s2 = inlined_call_operand.vmem [shape: f32[1,32], index: 2, kind: input, shape index: {}]   ;;  %s3571_s3 = inlined_call_operand.vmem [shape: f32[1,32], index: 3, kind: input, shape index: {}]   ;;  %s3572_s4 = inlined_call_operand.vmem [shape: f32[4,32,8], index: 4, kind: input, shape index: {}]   ;;  %s3573_s5 = inlined_call_operand.vmem [shape: f32[4,32,8], index: 5, kind: input, shape index: {}]   ;;  %s3574_s6 = inlined_call_operand.vmem [shape: f32[4,32,8], index: 6, kind: input, shape index: {}]   ;;  %s3575_s7 = inlined_call_operand.vmem [shape: f32[32,32], index: 7, kind: input, shape index: {}]   ;;  %s3576_s8 = inlined_call_operand.vmem [shape: f32[4,1,8], index: 8, kind: input, shape index: {}]   ;;  %s3577_s9 = inlined_call_operand.vmem [shape: f32[4,1,8], index: 9, kind: input, shape index: {}]   ;;  %s3578_s10 = inlined_call_operand.vmem [shape: f32[4,1,8], index: 10, kind: input, shape index: {}]   ;;  %s3579_s11 = inlined_call_operand.vmem [shape: f32[1,32], index: 11, kind: input, shape index: {}]   ;;  %s3580_s12 = inlined_call_operand.hbm [shape: f32[2,8,32], index: 12, kind: output, shape index: {0}]   ;;  %s3581_s13 = inlined_call_operand.hbm [shape: f32[2,8,8], index: 13, kind: output, shape index: {1}]  }
   0x1   :  { %3586 = sst [smem:[#allocation11_spill]] %s3568_s0 }
   0x2   :  { %3587 = sst [smem:[#allocation12_spill]] %s3569_s1 }
   0x3   :  { %3588 = sst [smem:[#allocation13_spill]] %s3570_s2 }
   0x4   :  { %19 = vsyncpa [#allocation4], 0 }
   0x5   :  { %21 = vsyncpa [#allocation4 + $0x1], 0 }
   0x6   :  { %22 = vsyncpa [#allocation6], 0 }
   0x7   :  { %24 = vsyncpa [#allocation6 + $0x1], 0  ;;  %s3068_s25 = smov 0   ;;  %s3070_s26 = smov 0  }
   0x8   :  { %s3072_s27 = smov 0   ;;  %s3074_s28 = smov 0  }
   0x9 LB: > { %3589 = sst [smem:[#allocation9_spill]] %s2984_s27  ;;  %s3089_s29 = sadd.s32 4294967295, %s2988_s28   ;;  %s2988_s28 = sphi %s3074_s28, %s3603_s28   ;;  %s2984_s27 = sphi %s3072_s27, %s3600_s27   ;;  %s2980_s26 = sphi %s3070_s26, %s3602_s26   ;;  %s2976_s25 = sphi %s3068_s25, %s3601_s25  }
   0xa   : > { %s2385_s30 = sadd.s32 4294967294, %s2988_s28   ;;  %s3093_s14 = sadd.s32 1, %s2988_s28  }
   0xb   : > { %s299_s15 = sadd.s32 1, %s2984_s27  ;;  %s296_s16 = ssub.s32 %s2988_s28, %s3093_s14 }
   0xc   : > { %p309_p0 = scmp.ne.s32.totalorder %s2984_s27, %s2980_s26  ;;  %p297_p1 = scmp.eq.s32.totalorder %s296_s16, 0 }
   0xd   : > { %p310_p2 = scmp.eq.s32.totalorder %s3089_s29, 1  ;;  %p315_p3 = scmp.ne.s32.totalorder %s2980_s26, %s2976_s25 }
   0xe   : > { %p316_p4 = scmp.eq.s32.totalorder %s2385_s30, 1  ;;  %p2388_p7 = scmp.ge.s32.totalorder %s2988_s28, 1 }
   0xf   : > { %s3104_s17 = scalar_select %p297_p1, %s2984_s27, %s299_s15  }
  0x10   : > { %p3106_p5 = por %p310_p2, %p309_p0  ;;  %p3110_p6 = por %p316_p4, %p315_p3 }
  0x11   : > { %3590 = sst [smem:[#allocation10_spill]] %s3104_s17  ;;  %p404_p8 = scmp.lt.s32.totalorder %s2988_s28, 3 }
  0x13   : > { %p405_p9 = pnand %p2388_p7, %p404_p8 }
  0x14   : > { %p456_p10 = scmp.lt.s32.totalorder (!%p405_p9), %s3089_s29, 1  ;;  %vm466_vm0 = vcmask (!%p405_p9), 261120   ;;  %s3593_s0 = sld [smem:[#allocation11_spill]] (!%p405_p9)  ;;  %v581_v7 = vld [vmem:[%s3573_s5] sm:$0xff] (!%p405_p9)  ;;  %v582_v8 = vld [vmem:[%s3573_s5 + $0x8] sm:$0xff] (!%p405_p9)  ;;  %v2990_v10 = vmov (!%p405_p9), 0.0|0.0  }
  0x15   : > { %408 = sbr.rel (%p405_p9) target bundleno = 3906 (0xf42), region = 68  ;;  %v497_v9 = vld [vmem:[%s3572_s4] sm:$0xff] (!%p405_p9)  ;;  %2754 = vmatprep.subr.bf16.mxu1 (!%p405_p9), %v2990_v10  ;;  %2748 = vmatprep.subr.bf16.mxu0 (!%p405_p9), %v2990_v10  ;;  %v2755_v11 = vpack.c.bf16 (!%p405_p9), %v582_v8, %v581_v7  ;;  %v498_v12 = vld [vmem:[%s3572_s4 + $0x8] sm:$0xff] (!%p405_p9)  ;;  %v583_v13 = vld [vmem:[%s3573_s5 + $0x10] sm:$0xff] (!%p405_p9)  ;;  %vm2991_vm1 = vmmov (!%p405_p9), 0   ;;  %v2992_v18 = vmov (!%p405_p9), 0.0  }
  0x16   : > { %v584_v14 = vld [vmem:[%s3573_s5 + $0x18] sm:$0xff] (!%p405_p9)  ;;  %v2749_v15 = vpack.c.bf16 (!%p405_p9), %v498_v12, %v497_v9  ;;  %v499_v16 = vld [vmem:[%s3572_s4 + $0x10] sm:$0xff] (!%p405_p9)  ;;  %2584 = vmatprep.mubr.msk.f32.mxu1 (!%p405_p9), %vm2991_vm1, %v2992_v18  ;;  %2573 = vmatprep.mubr.msk.f32.mxu0 (!%p405_p9), %vm2991_vm1, %v2992_v18  ;;  %s3595_s1 = sld [smem:[#allocation12_spill]] (!%p405_p9)  ;;  %s3596_s2 = sld [smem:[#allocation13_spill]] (!%p405_p9)  ;;  %v665_v28 = vld [vmem:[%s3574_s6] sm:$0xff] (!%p405_p9)  ;;  %vm747_vm2 = vcmask (!%p405_p9), 64512  }
  0x17   : > { %v500_v17 = vld [vmem:[%s3572_s4 + $0x18] sm:$0xff] (!%p405_p9)  ;;  %2756 = vmatpush3.bf16.msra.mxu1 (!%p405_p9), %v2755_v11  ;;  %v2758_v19 = vpack.c.bf16 (!%p405_p9), %v584_v14, %v583_v13  ;;  %v666_v29 = vld [vmem:[%s3574_s6 + $0x8] sm:$0xff] (!%p405_p9)  ;;  %v2394_v30 = vld [vmem:[%s3571_s3] ss:$0 sm:$0xff] (!%p405_p9)  ;;  %vm1325_vm3 = vcmask (!%p405_p9), 130112   ;;  %vm1742_vm4 = vcmask (!%p405_p9), 195712  }
  0x18   : > { %2750 = vmatpush3.bf16.msra.mxu0 (!%p405_p9), %v2749_v15  ;;  %2757 = vmatprep.subr.bf16.mxu1 (!%p405_p9), %v2990_v10  ;;  %v2752_v20 = vpack.c.bf16 (!%p405_p9), %v500_v17, %v499_v16  ;;  %v2761_v32 = vpack.c.bf16 (!%p405_p9), %v666_v29, %v665_v28  ;;  %v667_v34 = vld [vmem:[%s3574_s6 + $0x10] sm:$0xff] (!%p405_p9)  ;;  %v668_v35 = vld [vmem:[%s3574_s6 + $0x18] sm:$0xff] (!%p405_p9)  ;;  %v2404_v37 = vld [vmem:[%s3572_s4 + $0x20] sm:$0xff] (!%p405_p9)  ;;  %s3465_s27 = sand.u32 (!%p405_p9), 1, %s2980_s26   ;;  %s2995_s16 = smov (!%p405_p9), 24   ;;  %vm2159_vm5 = vcmask (!%p405_p9), 261312  }
  0x19   : > { %2751 = vmatprep.subr.bf16.mxu0 (!%p405_p9), %v2990_v10  ;;  %v2764_v36 = vpack.c.bf16 (!%p405_p9), %v668_v35, %v667_v34  ;;  %v2405_v38 = vld [vmem:[%s3572_s4 + $0x28] sm:$0xff] (!%p405_p9)  ;;  %v2406_v40 = vld [vmem:[%s3572_s4 + $0x30] sm:$0xff] (!%p405_p9)  ;;  %v2407_v41 = vld [vmem:[%s3572_s4 + $0x38] sm:$0xff] (!%p405_p9)  ;;  %s3584_s17 = sshll.u32 (!%p405_p9), %s3465_s27, 3  ;;  %s3585_s22 = sshll.u32 (!%p405_p9), %s3089_s29, 7 }
  0x1a   : > { %v2767_v39 = vpack.c.bf16 (!%p405_p9), %v2405_v38, %v2404_v37  ;;  %v2770_v42 = vpack.c.bf16 (!%p405_p9), %v2407_v41, %v2406_v40  ;;  %v2418_v43 = vld [vmem:[%s3574_s6 + $0x20] sm:$0xff] (!%p405_p9)  ;;  %v2419_v44 = vld [vmem:[%s3574_s6 + $0x28] sm:$0xff] (!%p405_p9)  ;;  %v2420_v46 = vld [vmem:[%s3574_s6 + $0x30] sm:$0xff] (!%p405_p9)  ;;  %s2256_s30 = scalar_lea.sflag (!%p405_p9), [#allocation6], %s3465_s27 }
  0x1b   : > { %2759 = vmatpush3.bf16.msra.mxu1 (!%p405_p9), %v2758_v19  ;;  %v2779_v45 = vpack.c.bf16 (!%p405_p9), %v2419_v44, %v2418_v43  ;;  %v2421_v47 = vld [vmem:[%s3574_s6 + $0x38] sm:$0xff] (!%p405_p9)  ;;  %v2428_v49 = vld [vmem:[%s3572_s4 + $0x40] sm:$0xff] (!%p405_p9)  ;;  %v2429_v50 = vld [vmem:[%s3572_s4 + $0x48] sm:$0xff] (!%p405_p9) }
  0x1c   : > { %s3118_s20 = scalar_select %p456_p10, %s3089_s29, 1  ;;  %2753 = vmatpush3.bf16.msra.mxu0 %v2752_v20  ;;  %2598 = vmatprep.subr.mxu1 %v2992_v18  ;;  %v2393_v26 = vld [vmem:[%s3596_s2] ss:$0 sm:$0xff]  ;;  %v2782_v48 = vpack.c.bf16 %v2421_v47, %v2420_v46  ;;  %v2785_v51 = vpack.c.bf16 %v2429_v50, %v2428_v49  ;;  %v2430_v52 = vld [vmem:[%s3572_s4 + $0x50] sm:$0xff]  ;;  %v2431_v53 = vld [vmem:[%s3572_s4 + $0x58] sm:$0xff] }
  0x1d   : > { %2760 = vmatprep.subr.bf16.mxu0 %v2990_v10  ;;  %v2788_v54 = vpack.c.bf16 %v2431_v53, %v2430_v52  ;;  %v2442_v55 = vld [vmem:[%s3574_s6 + $0x40] sm:$0xff]  ;;  %v2443_v56 = vld [vmem:[%s3574_s6 + $0x48] sm:$0xff]  ;;  %v2444_v58 = vld [vmem:[%s3574_s6 + $0x50] sm:$0xff] }
  0x1e   : > { %s3582_s21 = sshll.u32 %s3118_s20, 3  ;;  %v2797_v57 = vpack.c.bf16 %v2443_v56, %v2442_v55  ;;  %v2445_v59 = vld [vmem:[%s3574_s6 + $0x58] sm:$0xff]  ;;  %v2452_v61 = vld [vmem:[%s3572_s4 + $0x60] sm:$0xff]  ;;  %v2453_v62 = vld [vmem:[%s3572_s4 + $0x68] sm:$0xff] }
  0x1f   : > { %s459_s24 = scalar_lea.vmem %s3593_s0, %s3582_s21  ;;  %s3594_s0 = sshll.u32 %s3118_s20, 3  ;;  %v2800_v60 = vpack.c.bf16 %v2445_v59, %v2444_v58  ;;  %v2803_v63 = vpack.c.bf16 %v2453_v62, %v2452_v61  ;;  %v2395_v8 = vld [vmem:[%s3576_s8] ss:$0 sm:$0xff]  ;;  %v2412_v40 = vld [vmem:[%s3573_s5 + $0x28] sm:$0xff]  ;;  %v2413_v44 = vld [vmem:[%s3573_s5 + $0x30] sm:$0xff] }
  0x20   : > { %v3126_v0 = vld [vmem:[%s459_s24] sm:$0xff]  ;;  %s463_s15 = scalar_lea.vmem %s3595_s1, %s3594_s0  ;;  %s2993_s0 = smov 8  }
  0x21   : > { %v467_v1 = vsel %vm466_vm0, %v3126_v0, 0.0  ;;  %v3169_v21 = vld [vmem:[%s463_s15] sm:$0xff]  ;;  %s2994_s21 = smov 16   ;;  %s455_s20 = scalar_lea.vmem [#allocation5], %s3584_s17 }
  0x22   : > { %468 = vadd.xlane.f32.xlu0 %v467_v1  ;;  %2585 = vmatmul.mubr.msk.f32.vlgmr.msra.gmra.mrb[0].mxu1 %vm466_vm0, %v3169_v21  ;;  %v2454_v1 = vld [vmem:[%s3572_s4 + $0x70] sm:$0xff]  ;;  %v2399_v14 = vld [vmem:[%s3578_s10] ss:$0 sm:$0xff]  ;;  %v2409_v49 = vld [vmem:[%s3576_s8 + $0x1] ss:$0 sm:$0xff] }
  0x23   : > { %2600 = vmatprep.mubr.msk.f32.mxu1 %vm2991_vm1, %v2992_v18  ;;  %v2416_v50 = vld [vmem:[%s3577_s9 + $0x1] ss:$0 sm:$0xff] }
  0x24   : > { %v2423_v52 = vld [vmem:[%s3578_s10 + $0x1] ss:$0 sm:$0xff] }
  0xaf   : > { %v469_v2 = vpop.xlane.xlu0 %468 }
  0xb0   : > { %v471_v3 = vmul.f32 0.03125, %v469_v2  ;;  %v2455_v2 = vld [vmem:[%s3572_s4 + $0x78] sm:$0xff] }
  0xb2   : > { %v472_v4 = vsub.f32 %v3126_v0, %v471_v3  ;;  %v2806_v3 = vpack.c.bf16 %v2455_v2, %v2454_v1 }
  0xb4   : > { %v473_v5 = vmul.f32 %v472_v4, %v472_v4 }
  0xb6   : > { %v474_v6 = vsel %vm466_vm0, %v473_v5, 0.0 }
  0xb7   : > { %475 = vadd.xlane.f32.xlu0 %v474_v6  ;;  %v2397_v6 = vld [vmem:[%s3577_s9] ss:$0 sm:$0xff] }
 0x144   : > { %v476_v22 = vpop.xlane.xlu0 %475 }
 0x145   : > { %v477_v23 = vmul.f32 0.03125, %v476_v22 }
 0x147   : > { %v478_v24 = vadd.f32 1e-05, %v477_v23 }
 0x149   : > { %2876 = vrsqrt.f32 %v478_v24 }
 0x153   : > { %v2877_v25 = vpop.eup %2876 }
 0x154   : > { %v480_v27 = vmul.f32 %v2877_v25, %v472_v4  ;;  %v661_v4 = vpop.f32.mrb[0].mxu1 }
 0x155   : > { %v2586_v5 = vpop.f32.mrb[1].mxu1  ;;  %v662_v7 = vadd.f32 %v2397_v6, %v661_v4  ;;  %v2435_v4 = vld [vmem:[%s3573_s5 + $0x40] sm:$0xff] }
 0x156   : > { %v488_v31 = vmul.f32 %v2393_v26, %v480_v27  ;;  %v2436_v5 = vld [vmem:[%s3573_s5 + $0x48] sm:$0xff] }
 0x157   : > { %2599 = vmatpush3.xpose.msk.msra.mxu1 %vm747_vm2, %v662_v7  ;;  %v2791_v7 = vpack.c.bf16 %v2436_v5, %v2435_v4  ;;  %v2471_v5 = vld [vmem:[%s3578_s10 + $0x3] ss:$0 sm:$0xff] }
 0x158   : > { %v3189_v33 = vadd.f32 %v2394_v30, %v488_v31  ;;  %2603 = vmatprep.subr.mxu1 %v2992_v18 }
 0x15a   : > { %2574 = vmatmul.mubr.msk.f32.vlgmr.msra.gmra.mrb[0].mxu0 %vm466_vm0, %v3189_v33 }
 0x15b   : > { %2762 = vmatpush3.bf16.msra.mxu0 %v2761_v32  ;;  %2595 = vmatprep.mubr.msk.f32.mxu0 %vm2991_vm1, %v2992_v18 }
 0x15c   : > { %2763 = vmatprep.subr.bf16.mxu0 %v2990_v10 }
 0x15f   : > { %2765 = vmatpush3.bf16.msra.mxu0 %v2764_v36 }
 0x160   : > { %2766 = vmatprep.subr.bf16.mxu0 %v2990_v10 }
 0x162   : > { %2596 = vmatmul.mubr.msk.f32.vlgmr.msra.gmra.mrb[2].mxu0 %vm466_vm0, %v3169_v21 }
 0x163   : > { %2768 = vmatpush3.bf16.msra.mxu0 %v2767_v39  ;;  %2616 = vmatprep.mubr.msk.f32.mxu0 %vm2991_vm1, %v2992_v18  ;;  %v2411_v39 = vld [vmem:[%s3573_s5 + $0x20] sm:$0xff] }
 0x164   : > { %2769 = vmatprep.subr.bf16.mxu0 %v2990_v10 }
 0x167   : > { %2771 = vmatpush3.bf16.msra.mxu0 %v2770_v42  ;;  %v2773_v42 = vpack.c.bf16 %v2412_v40, %v2411_v39 }
 0x168   : > { %2778 = vmatprep.subr.bf16.mxu0 %v2990_v10 }
 0x16a   : > { %2617 = vmatmul.mubr.msk.f32.vlgmr.msra.gmra.mrb[4].mxu0 %vm466_vm0, %v3189_v33 }
 0x16b   : > { %2780 = vmatpush3.bf16.msra.mxu0 %v2779_v45  ;;  %2638 = vmatprep.mubr.msk.f32.mxu0 %vm2991_vm1, %v2992_v18  ;;  %v2414_v45 = vld [vmem:[%s3573_s5 + $0x38] sm:$0xff] }
 0x16c   : > { %2781 = vmatprep.subr.bf16.mxu0 %v2990_v10  ;;  %v2776_v46 = vpack.c.bf16 %v2414_v45, %v2413_v44 }
 0x16f   : > { %2783 = vmatpush3.bf16.msra.mxu0 %v2782_v48 }
 0x170   : > { %2784 = vmatprep.subr.bf16.mxu0 %v2990_v10 }
 0x172   : > { %2639 = vmatmul.mubr.msk.f32.vlgmr.msra.gmra.mrb[6].mxu0 %vm466_vm0, %v3169_v21 }
 0x173   : > { %2786 = vmatpush3.bf16.msra.mxu0 %v2785_v51  ;;  %2659 = vmatprep.mubr.msk.f32.mxu0 %vm2991_vm1, %v2992_v18 }
 0x174   : > { %2787 = vmatprep.subr.bf16.mxu0 %v2990_v10 }
 0x177   : > { %2789 = vmatpush3.bf16.msra.mxu0 %v2788_v54 }
 0x178   : > { %2796 = vmatprep.subr.bf16.mxu0 %v2990_v10 }
 0x17a   : > { %2660 = vmatmul.mubr.msk.f32.vlgmr.msra.gmra.mrb[8].mxu0 %vm466_vm0, %v3189_v33 }
 0x17b   : > { %2798 = vmatpush3.bf16.msra.mxu0 %v2797_v57  ;;  %2681 = vmatprep.mubr.msk.f32.mxu0 %vm2991_vm1, %v2992_v18 }
 0x17c   : > { %2799 = vmatprep.subr.bf16.mxu0 %v2990_v10 }
 0x17f   : > { %2801 = vmatpush3.bf16.msra.mxu0 %v2800_v60 }
 0x180   : > { %2802 = vmatprep.subr.bf16.mxu0 %v2990_v10 }
 0x182   : > { %2682 = vmatmul.mubr.msk.f32.vlgmr.msra.gmra.mrb[10].mxu0 %vm466_vm0, %v3169_v21 }
 0x183   : > { %2804 = vmatpush3.bf16.msra.mxu0 %v2803_v63  ;;  %2702 = vmatprep.mubr.msk.f32.mxu0 %vm2991_vm1, %v2992_v18 }
 0x184   : > { %2805 = vmatprep.subr.bf16.mxu0 %v2990_v10 }
 0x187   : > { %2807 = vmatpush3.bf16.msra.mxu0 %v2806_v3 }
 0x188   : > { %2814 = vmatprep.subr.bf16.mxu0 %v2990_v10 }
 0x18a   : > { %2703 = vmatmul.mubr.msk.f32.vlgmr.msra.gmra.mrb[12].mxu0 %vm466_vm0, %v3189_v33 }
 0x18b   : > { %2724 = vmatprep.mubr.msk.f32.mxu0 %vm2991_vm1, %v2992_v18 }
 0x22d   : > { %v577_v9 = vpop.f32.mrb[0].mxu0 }
 0x22e   : > { %v578_v11 = vadd.f32 %v2395_v8, %v577_v9  ;;  %v2575_v12 = vpop.f32.mrb[1].mxu0  ;;  %v2437_v9 = vld [vmem:[%s3573_s5 + $0x50] sm:$0xff] }
 0x230   : > { %v746_v13 = vmul.f32 0.35355338, %v578_v11  ;;  %v2438_v11 = vld [vmem:[%s3573_s5 + $0x58] sm:$0xff] }
 0x231   : > { %v2794_v12 = vpack.c.bf16 %v2438_v11, %v2437_v9 }
 0x232   : > { %2601 = vmatmul.mubr.msk.f32.vlgmr.msra.gmra.mrb[2].mxu1 %vm747_vm2, %v746_v13 }
 0x233   : > { %2605 = vmatprep.mubr.msk.f32.mxu1 %vm2991_vm1, %v2992_v18 }
 0x235   : > { %v742_v15 = vpop.f32.mrb[2].mxu0 }
 0x236   : > { %v743_v16 = vadd.f32 %v2399_v14, %v742_v15  ;;  %v2597_v17 = vpop.f32.mrb[3].mxu0  ;;  %v2433_v15 = vld [vmem:[%s3576_s8 + $0x2] ss:$0 sm:$0xff] }
 0x238   : > { %2604 = vmatpush3.msra.mxu1 %v743_v16  ;;  %v2440_v16 = vld [vmem:[%s3577_s9 + $0x2] ss:$0 sm:$0xff] }
 0x239   : > { %2772 = vmatprep.subr.bf16.mxu1 %v2990_v10 }
 0x23d   : > { %v989_v19 = vpop.f32.mrb[4].mxu0 }
 0x23e   : > { %v2618_v20 = vpop.f32.mrb[5].mxu0  ;;  %v990_v51 = vadd.f32 %v2409_v49, %v989_v19  ;;  %v2447_v19 = vld [vmem:[%s3578_s10 + $0x2] ss:$0 sm:$0xff]  ;;  %v2464_v49 = vld [vmem:[%s3577_s9 + $0x3] ss:$0 sm:$0xff] }
 0x240   : > { %v1159_v57 = vmul.f32 0.35355338, %v990_v51 }
 0x245   : > { %v1155_v22 = vpop.f32.mrb[6].mxu0 }
 0x246   : > { %v2640_v23 = vpop.f32.mrb[7].mxu0  ;;  %v1156_v56 = vadd.f32 %v2423_v52, %v1155_v22 }
 0x24d   : > { %v3312_v24 = vpop.f32.mrb[8].mxu0 }
 0x24e   : > { %v2661_v25 = vpop.f32.mrb[9].mxu0  ;;  %v1407_v17 = vadd.f32 %v2433_v15, %v3312_v24  ;;  %v2162_v15 = vld [vmem:[%s3575_s7] sm:$0xff] }
 0x255   : > { %v3314_v26 = vpop.f32.mrb[10].mxu0 }
 0x256   : > { %v2683_v27 = vpop.f32.mrb[11].mxu0  ;;  %v1573_v25 = vadd.f32 %v2447_v19, %v3314_v26  ;;  %v2164_v19 = vld [vmem:[%s3575_s7 + $0x10] sm:$0xff] }
 0x257   : > { %v1576_v27 = vmul.f32 0.35355338, %v1407_v17 }
 0x25d   : > { %v3316_v28 = vpop.f32.mrb[12].mxu0 }
 0x25e   : > { %v2704_v29 = vpop.f32.mrb[13].mxu0 }
 0x305   : > { %v820_v30 = vpop.f32.mrb[2].mxu1 }
 0x306   : > { %v2602_v31 = vpop.f32.mrb[3].mxu1  ;;  %v824_v32 = vsel %vm747_vm2, %v820_v30, -inf }
 0x307   : > { %825 = vmax.xlane.f32.xlu1 %v824_v32 }
 0x394   : > { %v826_v33 = vpop.xlane.xlu1 %825 }
 0x395   : > { %v827_v34 = vsub.f32 %v820_v30, %v826_v33 }
 0x397   : > { %v828_v35 = vmul.f32 1.442695, %v827_v34 }
 0x399   : > { %2878 = vpow2.f32 %v828_v35 }
 0x3a3   : > { %v2879_v36 = vpop.eup %2878 }
 0x3a4   : > { %v830_v37 = vsel %vm747_vm2, %v2879_v36, 0.0 }
 0x3a5   : > { %831 = vadd.xlane.f32.xlu1 %v830_v37  ;;  %v2460_v37 = vld [vmem:[%s3573_s5 + $0x68] sm:$0xff] }
 0x432   : > { %v832_v38 = vpop.xlane.xlu1 %831 }
 0x433   : > { %2880 = vrcp.f32 %v832_v38 }
 0x43d   : > { %v2881_v41 = vpop.eup %2880 }
 0x43e   : > { %v3326_v43 = vmul.f32 %v2881_v41, %v2879_v36  ;;  %v2459_v36 = vld [vmem:[%s3573_s5 + $0x60] sm:$0xff]  ;;  %v2461_v41 = vld [vmem:[%s3573_s5 + $0x70] sm:$0xff] }
 0x43f   : > { %v2809_v39 = vpack.c.bf16 %v2460_v37, %v2459_v36 }
 0x440   : > { %2606 = vmatmul.mubr.msk.f32.vlgmr.msra.gmra.mrb[4].mxu1 %vm747_vm2, %v3326_v43 }
 0x441   : > { %2774 = vmatpush3.bf16.msra.mxu1 %v2773_v42  ;;  %2627 = vmatprep.mubr.msk.f32.mxu1 %vm2991_vm1, %v2992_v18  ;;  %v2462_v42 = vld [vmem:[%s3573_s5 + $0x78] sm:$0xff] }
 0x442   : > { %2775 = vmatprep.subr.bf16.mxu1 %v2990_v10 }
 0x445   : > { %2777 = vmatpush3.bf16.msra.mxu1 %v2776_v46  ;;  %v2812_v46 = vpack.c.bf16 %v2462_v42, %v2461_v41 }
 0x446   : > { %2641 = vmatprep.subr.mxu1 %v2992_v18 }
 0x448   : > { %2628 = vmatmul.mubr.msk.f32.vlgmr.msra.gmra.mrb[6].mxu1 %vm466_vm0, %v3169_v21 }
 0x449   : > { %2643 = vmatprep.mubr.msk.f32.mxu1 %vm2991_vm1, %v2992_v18 }
 0x513   : > { %v905_v47 = vpop.f32.mrb[4].mxu1 }
 0x514   : > { %909 = vst.msk [vmem:[#allocation2] sm:$0xff] %vm747_vm2, %v905_v47  ;;  %v2607_v48 = vpop.f32.mrb[5].mxu1 }
 0x515   : > { %v2457_v48 = vld [vmem:[%s3576_s8 + $0x3] ss:$0 sm:$0xff] }
 0x51b   : > { %v1072_v53 = vpop.f32.mrb[6].mxu1 }
 0x51c   : > { %v1073_v54 = vadd.f32 %v2416_v50, %v1072_v53  ;;  %v2629_v55 = vpop.f32.mrb[7].mxu1  ;;  %v1824_v50 = vadd.f32 %v2457_v48, %v3316_v28  ;;  %v2467_v28 = vld [vmem:[%s3574_s6 + $0x68] sm:$0xff] }
 0x51d   : > { %v2466_v55 = vld [vmem:[%s3574_s6 + $0x60] sm:$0xff] }
 0x51e   : > { %2642 = vmatpush3.xpose.msk.msra.mxu1 %vm747_vm2, %v1073_v54  ;;  %v1993_v54 = vmul.f32 0.35355338, %v1824_v50 }
 0x51f   : > { %2646 = vmatprep.subr.mxu1 %v2992_v18 }
 0x521   : > { %2644 = vmatmul.mubr.msk.f32.vlgmr.msra.gmra.mrb[8].mxu1 %vm747_vm2, %v1159_v57  ;;  %v2815_v57 = vpack.c.bf16 %v2467_v28, %v2466_v55 }
 0x522   : > { %2647 = vmatpush3.msra.mxu1 %v1156_v56  ;;  %2648 = vmatprep.mubr.msk.f32.mxu1 %vm2991_vm1, %v2992_v18  ;;  %v2468_v56 = vld [vmem:[%s3574_s6 + $0x70] sm:$0xff] }
 0x523   : > { %2790 = vmatprep.subr.bf16.mxu1 %v2990_v10  ;;  %2816 = vmatpush3.bf16.msra.mxu0 %v2815_v57 }
 0x524   : > { %2817 = vmatprep.subr.bf16.mxu0 %v2990_v10 }
 0x5f4   : > { %v1232_v58 = vpop.f32.mrb[8].mxu1 }
 0x5f5   : > { %v2645_v59 = vpop.f32.mrb[9].mxu1  ;;  %v1236_v60 = vsel %vm747_vm2, %v1232_v58, -inf }
 0x5f6   : > { %1237 = vmax.xlane.f32.xlu0 %v1236_v60 }
 0x683   : > { %v1238_v61 = vpop.xlane.xlu0 %1237 }
 0x684   : > { %v1239_v62 = vsub.f32 %v1232_v58, %v1238_v61  ;;  %v2469_v58 = vld [vmem:[%s3574_s6 + $0x78] sm:$0xff] }
 0x685   : > { %v2818_v59 = vpack.c.bf16 %v2469_v58, %v2468_v56 }
 0x686   : > { %v1240_v63 = vmul.f32 1.442695, %v1239_v62 }
 0x687   : > { %2819 = vmatpush3.bf16.msra.mxu0 %v2818_v59 }
 0x688   : > { %2882 = vpow2.f32 %v1240_v63  ;;  %2820 = vmatprep.subr.bf16.mxu0 %v2990_v10 }
 0x68a   : > { %2725 = vmatmul.mubr.msk.f32.vlgmr.msra.gmra.mrb[14].mxu0 %vm466_vm0, %v3169_v21 }
 0x68b   : > { %2745 = vmatprep.mubr.msk.f32.mxu0 %vm2991_vm1, %v2992_v18 }
 0x692   : > { %v2883_v1 = vpop.eup %2882 }
 0x693   : > { %v1242_v2 = vsel %vm747_vm2, %v2883_v1, 0.0 }
 0x694   : > { %1243 = vadd.xlane.f32.xlu1 %v1242_v2 }
 0x721   : > { %v1244_v3 = vpop.xlane.xlu1 %1243 }
 0x722   : > { %2884 = vrcp.f32 %v1244_v3 }
 0x72c   : > { %v2885_v6 = vpop.eup %2884 }
 0x72d   : > { %v1246_v8 = vmul.f32 %v2885_v6, %v2883_v1 }
 0x72f   : > { %2649 = vmatmul.mubr.msk.f32.vlgmr.msra.gmra.mrb[10].mxu1 %vm747_vm2, %v1246_v8  ;;  %v1247_v44 = vadd.f32 %v1246_v8, %v3326_v43 }
 0x730   : > { %2792 = vmatpush3.bf16.msra.mxu1 %v2791_v7  ;;  %2670 = vmatprep.mubr.msk.f32.mxu1 %vm2991_vm1, %v2992_v18 }
 0x731   : > { %2793 = vmatprep.subr.bf16.mxu1 %v2990_v10 }
 0x734   : > { %2795 = vmatpush3.bf16.msra.mxu1 %v2794_v12 }
 0x735   : > { %2684 = vmatprep.subr.mxu1 %v2992_v18 }
 0x737   : > { %2671 = vmatmul.mubr.msk.f32.vlgmr.msra.gmra.mrb[12].mxu1 %vm466_vm0, %v3169_v21 }
 0x738   : > { %2686 = vmatprep.mubr.msk.f32.mxu1 %vm2991_vm1, %v2992_v18 }
 0x802   : > { %v3383_v13 = vpop.f32.mrb[10].mxu1 }
 0x803   : > { %v2650_v14 = vpop.f32.mrb[11].mxu1 }
 0x80a   : > { %v1489_v20 = vpop.f32.mrb[12].mxu1 }
 0x80b   : > { %v1490_v22 = vadd.f32 %v2440_v16, %v1489_v20  ;;  %v2672_v23 = vpop.f32.mrb[13].mxu1  ;;  %v2163_v16 = vld [vmem:[%s3575_s7 + $0x8] sm:$0xff]  ;;  %v2165_v20 = vld [vmem:[%s3575_s7 + $0x18] sm:$0xff] }
 0x80c   : > { %v2821_v17 = vpack.c.bf16 %v2163_v16, %v2162_v15 }
 0x80d   : > { %2685 = vmatpush3.xpose.msk.msra.mxu1 %vm747_vm2, %v1490_v22  ;;  %v2824_v22 = vpack.c.bf16 %v2165_v20, %v2164_v19 }
 0x80e   : > { %2689 = vmatprep.subr.mxu1 %v2992_v18  ;;  %2822 = vmatpush3.bf16.msra.mxu0 %v2821_v17 }
 0x80f   : > { %2823 = vmatprep.subr.bf16.mxu0 %v2990_v10 }
 0x810   : > { %2687 = vmatmul.mubr.msk.f32.vlgmr.msra.gmra.mrb[14].mxu1 %vm747_vm2, %v1576_v27 }
 0x811   : > { %2690 = vmatpush3.msra.mxu1 %v1573_v25  ;;  %2691 = vmatprep.mubr.msk.f32.mxu1 %vm2991_vm1, %v2992_v18 }
 0x812   : > { %2808 = vmatprep.subr.bf16.mxu1 %v2990_v10  ;;  %2825 = vmatpush3.bf16.msra.mxu0 %v2824_v22 }
 0x8e3   : > { %v1649_v24 = vpop.f32.mrb[14].mxu1 }
 0x8e4   : > { %v2688_v29 = vpop.f32.mrb[15].mxu1  ;;  %v1653_v30 = vsel %vm747_vm2, %v1649_v24, -inf }
 0x8e5   : > { %1654 = vmax.xlane.f32.xlu0 %v1653_v30 }
 0x972   : > { %v1655_v31 = vpop.xlane.xlu0 %1654 }
 0x973   : > { %v1656_v26 = vsub.f32 %v1649_v24, %v1655_v31 }
 0x975   : > { %v1657_v32 = vmul.f32 1.442695, %v1656_v26 }
 0x977   : > { %2886 = vpow2.f32 %v1657_v32 }
 0x981   : > { %v2887_v33 = vpop.eup %2886 }
 0x982   : > { %v1659_v34 = vsel %vm747_vm2, %v2887_v33, 0.0 }
 0x983   : > { %1660 = vadd.xlane.f32.xlu1 %v1659_v34 }
 0xa10   : > { %v1661_v35 = vpop.xlane.xlu1 %1660 }
 0xa11   : > { %2888 = vrcp.f32 %v1661_v35 }
 0xa1b   : > { %v2889_v38 = vpop.eup %2888 }
 0xa1c   : > { %v1663_v40 = vmul.f32 %v2889_v38, %v2887_v33 }
 0xa1e   : > { %2692 = vmatmul.mubr.msk.f32.vlgmr.msra.gmra.mrb[16].mxu1 %vm747_vm2, %v1663_v40  ;;  %v3418_v45 = vadd.f32 %v1663_v40, %v1247_v44 }
 0xa1f   : > { %2810 = vmatpush3.bf16.msra.mxu1 %v2809_v39  ;;  %2713 = vmatprep.mubr.msk.f32.mxu1 %vm2991_vm1, %v2992_v18 }
 0xa20   : > { %2811 = vmatprep.subr.bf16.mxu1 %v2990_v10 }
 0xa23   : > { %2813 = vmatpush3.bf16.msra.mxu1 %v2812_v46 }
 0xa24   : > { %2727 = vmatprep.subr.mxu1 %v2992_v18 }
 0xa26   : > { %2714 = vmatmul.mubr.msk.f32.vlgmr.msra.gmra.mrb[18].mxu1 %vm466_vm0, %v3169_v21 }
 0xa27   : > { %2729 = vmatprep.mubr.msk.f32.mxu1 %vm2991_vm1, %v2992_v18 }
 0xaf1   : > { %v1734_v43 = vpop.f32.mrb[16].mxu1 }
 0xaf2   : > { %v2693_v47 = vpop.f32.mrb[17].mxu1 }
 0xaf9   : > { %v1906_v51 = vpop.f32.mrb[18].mxu1 }
 0xafa   : > { %v1907_v52 = vadd.f32 %v2464_v49, %v1906_v51  ;;  %v2715_v53 = vpop.f32.mrb[19].mxu1 }
 0xafc   : > { %2728 = vmatpush3.xpose.msk.msra.mxu1 %vm747_vm2, %v1907_v52 }
 0xafd   : > { %2732 = vmatprep.subr.mxu1 %v2992_v18 }
 0xaff   : > { %2730 = vmatmul.mubr.msk.f32.vlgmr.msra.gmra.mrb[20].mxu1 %vm747_vm2, %v1993_v54 }
 0xb00   : > { %2734 = vmatprep.mubr.msk.f32.mxu1 %vm2991_vm1, %v2992_v18  ;;  %v1989_v18 = vpop.f32.mrb[14].mxu0 }
 0xb01   : > { %v2726_v6 = vpop.f32.mrb[15].mxu0  ;;  %v1990_v7 = vadd.f32 %v2471_v5, %v1989_v18 }
 0xb03   : > { %2733 = vmatpush3.msra.mxu1 %v1990_v7 }
 0xbd2   : > { %v2066_v60 = vpop.f32.mrb[20].mxu1 }
 0xbd3   : > { %v2731_v61 = vpop.f32.mrb[21].mxu1  ;;  %v2070_v62 = vsel %vm747_vm2, %v2066_v60, -inf }
 0xbd4   : > { %2071 = vmax.xlane.f32.xlu0 %v2070_v62 }
 0xbea   : > { %1322 = vrot.lane.b32.xlu0 %v3383_v13, %s2993_s0  ;;  %s3493_s0 = scalar_lea.hbm %s3581_s13, %s3585_s22 }
 0xc61   : > { %v2072_v63 = vpop.xlane.xlu0 %2071 }
 0xc62   : > { %v2073_v1 = vsub.f32 %v2066_v60, %v2072_v63 }
 0xc64   : > { %v2074_v2 = vmul.f32 1.442695, %v2073_v1 }
 0xc65   : > { %v1323_v3 = vpop.permute.xlu0 %1322 }
 0xc66   : > { %2890 = vpow2.f32 %v2074_v2  ;;  %1326 = vst.msk [vmem:[#allocation2] sm:$0xff] %vm1325_vm3, %v1323_v3 }
 0xc70   : > { %v2891_v21 = vpop.eup %2890 }
 0xc71   : > { %v2076_v4 = vsel %vm747_vm2, %v2891_v21, 0.0 }
 0xc72   : > { %2077 = vadd.xlane.f32.xlu1 %v2076_v4 }
 0xc83   : > { %1739 = vrot.lane.b32.xlu1 %v1734_v43, %s2994_s21  ;;  %s2282_s21 = sshll.u32 %s455_s20, 4  ;;  %s2283_s21 = int_to_ptr.vmem [resolvable:$true] %s2282_s21 }
 0xc84   : > { %s2894_s15 = scalar_lea.vmem %s2283_s21, 128 }
 0xc85   : > { %p2895_p11 = scmp.ne.s32.totalorder %s2283_s21, %s2894_s15 }
 0xc87   : > { %p2896_p12 = pnand %p2895_p11, %p3106_p5 }
 0xc89   : > { %p2897_p13 = pneg %p2896_p12 }
 0xcff   : > { %v2078_v8 = vpop.xlane.xlu1 %2077 }
 0xd00   : > { %2892 = vrcp.f32 %v2078_v8 }
 0xd03   : > { %v1740_v9 = vpop.permute.xlu1 %1739 }
 0xd04   : > { %1743 = vst.msk [vmem:[#allocation2] sm:$0xff] %vm1742_vm4, %v1740_v9 }
 0xd0a   : > { %v2893_v11 = vpop.eup %2892 }
 0xd0b   : > { %v2080_v12 = vmul.f32 %v2893_v11, %v2891_v21 }
 0xd0d   : > { %2735 = vmatmul.mubr.msk.f32.vlgmr.msra.gmra.mrb[22].mxu1 %vm747_vm2, %v2080_v12  ;;  %v2081_v13 = vadd.f32 %v2080_v12, %v3418_v45 }
 0xd0f   : > { %v2248_v14 = vmul.f32 0.25, %v2081_v13 }
 0xd11   : > { %2249 = vst.msk [vmem:[%s455_s20] sm:$0xff] %vm747_vm2, %v2248_v14 }
 0xde0   : > { %v2151_v23 = vpop.f32.mrb[22].mxu1 }
 0xde1   : > { %2156 = vrot.lane.b32.xlu1 %v2151_v23, %s2995_s16  ;;  %v2736_v25 = vpop.f32.mrb[23].mxu1  ;;  %s2996_s16 = smov [#allocation5]  }
 0xde2   : > { %s2898_s17 = sshll.u32 %s2996_s16, 4  ;;  %s2899_s17 = int_to_ptr.vmem [resolvable:$false] %s2898_s17 }
 0xde3   : > { %s2900_s1 = scalar_lea.vmem %s2899_s17, 256  ;;  %p2901_p0 = scmp.lt.s32.totalorder %s2283_s21, %s2899_s17 }
 0xde4   : > { %p2902_p1 = scmp.lt.s32.totalorder %s2900_s1, %s2894_s15 }
 0xde6   : > { %p2903_p2 = por %p2902_p1, %p2901_p0 }
 0xde8   : > { %p2904_p3 = pnand %p2903_p2, %p2897_p13 }
 0xe53   : > { %v2157_v27 = vpop.permute.xlu1 %2156 }
 0xe54   : > { %2160 = vst.msk [vmem:[#allocation2] sm:$0xff] %vm2159_vm5, %v2157_v27 }
 0xe5b   : > { %v2161_v24 = vld [vmem:[#allocation2] sm:$0xff] }
 0xe5c   : > { %2746 = vmatmul.mubr.msk.f32.vlgmr.msra.gmra.mrb[16].mxu0 %vm466_vm0, %v2161_v24 }
 0xe5d   : > { %2907 = shalt.err (!%p2904_p3)
}
 0xe5e   : > { %s2908_s20 = scalar_lea.hbm %s3493_s0, 128  ;;  %s2912_s16 = scalar_lea.hbm %s3581_s13, 256 }
 0xe5f   : > { %p2909_p4 = scmp.ne.s32.totalorder %s3493_s0, %s2908_s20  ;;  %p2913_p9 = scmp.lt.u32.totalorder %s3493_s0, %s3581_s13 }
 0xe60   : > { %p2914_p10 = scmp.lt.u32.totalorder %s2912_s16, %s2908_s20  ;;  %p2916_p12 = scmp.lt.u32.totalorder %s2908_s20, %s3493_s0 }
 0xe61   : > { %p2910_p7 = pnand %p2909_p4, %p3106_p5 }
 0xe62   : > { %p2915_p11 = por %p2914_p10, %p2913_p9 }
 0xe63   : > { %p2911_p8 = pneg %p2910_p7 }
 0xe64   : > { %p2917_p13 = por %p2916_p12, %p2915_p11 }
 0xe66   : > { %p2918_p0 = pnand %p2917_p13, %p2911_p8 }
 0xe68   : > { %2921 = shalt.err (!%p2918_p0)
}
 0xe69   : > { %2827 = dma.vmem_to_hbm [thread:$0]  (%p3106_p5), %s2283_s21, 128, %s3493_s0, %s2256_s30   ;;  %v2476_v10 = vld [vmem:[%s3579_s11] ss:$0 sm:$0xff] }
 0xe6a   : > { %s3597_s22 = sshll.u32 %s3465_s27, 3  ;;  %s3598_s20 = sshll.u32 %s3089_s29, 7 }
 0xe6b   : > { %s448_s23 = scalar_lea.vmem [#allocation3], %s3597_s22  ;;  %s3524_s2 = scalar_lea.hbm %s3580_s12, %s3598_s20 }
 0xe6c   : > { %s2269_s24 = sshll.u32 %s448_s23, 4  ;;  %s2251_s0 = scalar_lea.sflag [#allocation4], %s3465_s27  ;;  %s3526_s24 = int_to_ptr.vmem [resolvable:$true] %s2269_s24 }
 0xe6d   : > { %s2922_s21 = scalar_lea.vmem %s3526_s24, 128  ;;  %s2997_s30 = smov [#allocation3]  }
 0xe6e   : > { %p2923_p1 = scmp.ne.s32.totalorder %s3526_s24, %s2922_s21  ;;  %s2926_s29 = sshll.u32 %s2997_s30, 4  ;;  %s2927_s29 = int_to_ptr.vmem [resolvable:$false] %s2926_s29 }
 0xe6f   : > { %s2928_s1 = scalar_lea.vmem %s2927_s29, 256  ;;  %p2929_p4 = scmp.lt.s32.totalorder %s3526_s24, %s2927_s29 }
 0xe70   : > { %p2924_p2 = pnand %p2923_p1, %p3106_p5  ;;  %p2930_p7 = scmp.lt.s32.totalorder %s2928_s1, %s2922_s21 }
 0xe72   : > { %p2925_p3 = pneg %p2924_p2  ;;  %p2931_p8 = por %p2930_p7, %p2929_p4 }
 0xe74   : > { %p2932_p9 = pnand %p2931_p8, %p2925_p3 }
 0xf2f   : > { %v2242_v29 = vpop.f32.mrb[16].mxu0 }
 0xf30   : > { %v2243_v30 = vadd.f32 %v2476_v10, %v2242_v29  ;;  %v2747_v31 = vpop.f32.mrb[17].mxu0 }
 0xf32   : > { %v2246_v26 = vadd.f32 %v2243_v30, %v3126_v0 }
 0xf34   : > { %2247 = vst.msk [vmem:[%s448_s23] sm:$0xff] %vm466_vm0, %v2246_v26 }
 0xf35   : > { %2935 = shalt.err (!%p2932_p9)
}
 0xf36   : > { %s2936_s27 = scalar_lea.hbm %s3524_s2, 128  ;;  %s2940_s23 = scalar_lea.hbm %s3580_s12, 256 }
 0xf37   : > { %p2937_p10 = scmp.ne.s32.totalorder %s3524_s2, %s2936_s27  ;;  %p2941_p13 = scmp.lt.u32.totalorder %s3524_s2, %s3580_s12 }
 0xf38   : > { %p2942_p0 = scmp.lt.u32.totalorder %s2940_s23, %s2936_s27  ;;  %p2944_p2 = scmp.lt.u32.totalorder %s2936_s27, %s3524_s2 }
 0xf39   : > { %p2938_p11 = pnand %p2937_p10, %p3106_p5 }
 0xf3a   : > { %p2943_p1 = por %p2942_p0, %p2941_p13 }
 0xf3b   : > { %p2939_p12 = pneg %p2938_p11 }
 0xf3c   : > { %p2945_p3 = por %p2944_p2, %p2943_p1 }
 0xf3e   : > { %p2946_p4 = pnand %p2945_p3, %p2939_p12 }
 0xf40   : > { %2949 = shalt.err (!%p2946_p4)
}
 0xf41   : > { %2826 = dma.vmem_to_hbm [thread:$0]  (%p3106_p5), %s3526_s24, 128, %s3524_s2, %s2251_s0  }
 0xf42 PF: > { %p2837_p7 = scmp.ge.s32.totalorder %s2988_s28, 2  ;;  %s2294_s17 = sand.u32 1, %s2976_s25  }
 0xf43   : > { %s2295_s21 = scalar_lea.sflag [#allocation4], %s2294_s17 }
 0xf44   : > { %p2831_p8 = pnand %p2837_p7, %p3110_p6 }
 0xf46   : > { %2967 = dma.done.wait (!%p2831_p8), %s2295_s21, 128  }
 0xf47   : > { %2969 = vsyncadd (!%p2831_p8), %s2295_s21, 4294967168  ;;  %s2304_s30 = scalar_lea.sflag [#allocation6], %s2294_s17 }
 0xf48   : > { %2971 = dma.done.wait (!%p2831_p8), %s2304_s30, 128  }
 0xf49   : > { %2973 = vsyncadd (!%p2831_p8), %s2304_s30, 4294967168  ;;  %s3599_s18 = sld [smem:[#allocation9_spill]]  ;;  %s3600_s27 = sld [smem:[#allocation10_spill]] }
 0xf4a   : > { %p27_p5 = scmp.ge.s32.totalorder %s3093_s14, 4   ;;  %s3601_s25 = smov %s2980_s26 }
 0xf4b   : > { %s3603_s28 = smov %s3093_s14 }
 0xf4c   :  { %29 = sbr.rel (!%p27_p5) target bundleno = 9 (0x9), region = 141 }
 0xf4f   : > { %s3602_s26 = smov %s3599_s18 }
 0xf53   :  { %2309 = vsyncpa [#allocation4], 1 }
 0xf54   :  { %2311 = vsyncpa [#allocation4 + $0x1], 1 }
 0xf55   :  { %2312 = vsyncpa [#allocation6], 1 }
 0xf56   :  { %2314 = vsyncpa [#allocation6 + $0x1], 1 }

</bundles_post_ra>
